<compile_context>
chip_gen: v7x
topology: tpu7x:2x2x1
jax: 0.10.0
libtpu: 0.0.40
codegen_flags: <defaults>
</compile_context>

<pallas_src>
from functools import partial

import jax
import jax.numpy as jnp
import numpy as np
from jax.experimental import pallas as pl
from jax.experimental.pallas import tpu as pltpu


XYZ_PAD = 128  # lane-padded width of the xyz-offset output (3 real cols + pad)


# ----------------------------------------------------------------------------
# Pallas kernel: fused VotingModule (2x [1x1 conv + folded BN + ReLU] +
# lane-aligned fused conv3) + feature residual + L2 normalisation for one tile
# of points.  Matmuls run on the MXU in bf16; epilogue stays in f32.
# ----------------------------------------------------------------------------
def _vote_kernel(feat_ref,
                 w1_ref, b1_ref, w2_ref, b2_ref, w3_ref, b3_ref,
                 off_ref, vfeat_ref):
    x = feat_ref[...]                          # (tile_rows, C) f32 seed features

    # conv1 + folded BN1 + ReLU   (bf16 MXU, f32 accumulate + epilogue)
    h = jnp.dot(x.astype(jnp.bfloat16), w1_ref[...],
                preferred_element_type=jnp.float32) + b1_ref[...]
    h = jnp.maximum(h, 0.0)
    # conv2 + folded BN2 + ReLU
    h = jnp.dot(h.astype(jnp.bfloat16), w2_ref[...],
                preferred_element_type=jnp.float32) + b2_ref[...]
    h = jnp.maximum(h, 0.0)
    # conv3 fused: cols [0:128) = lane-padded xyz offset, [128:) = feat residual
    o3 = jnp.dot(h.astype(jnp.bfloat16), w3_ref[...],
                 preferred_element_type=jnp.float32) + b3_ref[...]

    xp = off_ref.shape[-1]                     # = XYZ_PAD (128), lane aligned
    off_ref[...] = o3[:, :xp]                  # raw xyz offset (padded, f32)

    # vote_features = seed_features + residual, L2-normalised over channels
    resid = o3[:, xp:]
    vf = x + resid
    inv_norm = jax.lax.rsqrt(jnp.sum(vf * vf, axis=-1, keepdims=True) + 1e-12)
    vfeat_ref[...] = vf * inv_norm


@partial(jax.jit, static_argnames=("tile_rows",))
def vote_and_normalize(seed_xyz, seed_feat_nc, params, *, tile_rows=512):
    """seed_xyz: (B, N, 3); seed_feat_nc: (B, N, C).  Returns vote_xyz
    (B, N, 3) and L2-normalised vote_features in NWC layout (B, N, C)."""
    B, N, C = seed_feat_nc.shape
    w1, b1, w2, b2, w3p, b3p = params
    cout = w3p.shape[1]                        # XYZ_PAD + C

    # bf16 MXU operands (weights); biases stay f32.
    w1b = w1.astype(jnp.bfloat16)
    w2b = w2.astype(jnp.bfloat16)
    w3b = w3p.astype(jnp.bfloat16)

    # Flatten batch into the point axis -> one big row dimension.
    R = B * N
    Rp = pl.cdiv(R, tile_rows) * tile_rows
    feat = seed_feat_nc.reshape(R, C).astype(jnp.float32)
    if Rp != R:
        feat = jnp.pad(feat, ((0, Rp - R), (0, 0)))

    grid = (Rp // tile_rows,)
    row_map = lambda i: (i, 0)
    const_map = lambda i: (0, 0)

    off_pad, vfeat = pl.pallas_call(
        _vote_kernel,
        out_shape=(
            jax.ShapeDtypeStruct((Rp, XYZ_PAD), jnp.float32),
            jax.ShapeDtypeStruct((Rp, C), jnp.float32),
        ),
        grid_spec=pltpu.PrefetchScalarGridSpec(
            num_scalar_prefetch=0,
            grid=grid,
            in_specs=[
                pl.BlockSpec((tile_rows, C), row_map),         # seed features
                pl.BlockSpec((C, C), const_map),               # w1 (BN folded, bf16)
                pl.BlockSpec((1, C), const_map),               # b1 (f32)
                pl.BlockSpec((C, C), const_map),               # w2 (BN folded, bf16)
                pl.BlockSpec((1, C), const_map),               # b2 (f32)
                pl.BlockSpec((C, cout), const_map),            # fused w3 (bf16)
                pl.BlockSpec((1, cout), const_map),            # fused b3 (f32)
            ],
            out_specs=[
                pl.BlockSpec((tile_rows, XYZ_PAD), row_map),   # raw xyz offset
                pl.BlockSpec((tile_rows, C), row_map),         # vote features
            ],
        ),
        compiler_params=pltpu.CompilerParams(
            dimension_semantics=("parallel",)),
    )(feat, w1b, b1, w2b, b2, w3b, b3p)

    # vote_xyz = seed_xyz + offset (tiny op; fuses with the output slice under jit)
    vote_xyz = seed_xyz.astype(jnp.float32) + off_pad[:R, :3].reshape(B, N, 3)
    vote_feat = vfeat[:R].reshape(B, N, C)
    return vote_xyz, vote_feat


# ----------------------------------------------------------------------------
# Deterministic parameter construction for VotingModule(vote_factor=1, 256),
# with eval-mode BatchNorm folded into the conv weights/biases and conv3
# packed into a lane-aligned (C, 128 + C) weight.
# ----------------------------------------------------------------------------
def make_params(key, C=256):
    ks = jax.random.split(key, 16)

    def nrm(k, shape, s=0.05):
        return (s * jax.random.normal(k, shape)).astype(jnp.float32)

    # conv weights in (C_in, C_out) layout (matmul form of 1x1 Conv1d)
    w1 = nrm(ks[0], (C, C)); b1 = nrm(ks[1], (1, C))
    w2 = nrm(ks[2], (C, C)); b2 = nrm(ks[3], (1, C))
    w3 = nrm(ks[4], (C, 3 + C)); b3 = nrm(ks[5], (1, 3 + C))

    eps = 1e-5

    def bn(kg, kb, km, kv):
        gamma = 1.0 + 0.1 * jax.random.normal(kg, (C,))
        beta = 0.1 * jax.random.normal(kb, (C,))
        mean = 0.1 * jax.random.normal(km, (C,))
        var = 0.5 + jnp.abs(jax.random.normal(kv, (C,)))
        scale = gamma / jnp.sqrt(var + eps)
        return scale.astype(jnp.float32), (beta - mean * scale).astype(jnp.float32)

    s1, t1 = bn(ks[6], ks[7], ks[8], ks[9])
    s2, t2 = bn(ks[10], ks[11], ks[12], ks[13])

    # fold BN (eval mode): BN(x @ W + b) = x @ (W*s) + (b*s + t)
    w1e = w1 * s1[None, :]
    b1e = b1 * s1[None, :] + t1[None, :]
    w2e = w2 * s2[None, :]
    b2e = b2 * s2[None, :] + t2[None, :]

    # conv3 packed lane-aligned: cols [0:3) = xyz offset (rest of first
    # 128-lane group zero), cols [128:128+C) = feature residual.
    w3p = jnp.zeros((C, XYZ_PAD + C), jnp.float32)
    w3p = w3p.at[:, :3].set(w3[:, :3])
    w3p = w3p.at[:, XYZ_PAD:].set(w3[:, 3:])
    b3p = jnp.zeros((1, XYZ_PAD + C), jnp.float32)
    b3p = b3p.at[:, :3].set(b3[:, :3])
    b3p = b3p.at[:, XYZ_PAD:].set(b3[:, 3:])

    return (w1e, b1e, w2e, b2e, w3p, b3p)


def reference(seed_xyz, seed_feat_nc, params):
    """Pure-JAX f32 reference mirroring the PyTorch VotingModule + RefNet L2 norm."""
    w1, b1, w2, b2, w3p, b3p = params
    h = jnp.maximum(seed_feat_nc @ w1 + b1, 0.0)
    h = jnp.maximum(h @ w2 + b2, 0.0)
    o3 = h @ w3p + b3p
    offset = o3[..., :3]
    resid = o3[..., XYZ_PAD:]
    vxyz = seed_xyz + offset
    vf = seed_feat_nc + resid
    vf = vf / jnp.linalg.norm(vf, axis=-1, keepdims=True)
    return vxyz, vf


if __name__ == "__main__":
    key = jax.random.PRNGKey(0)
    k_xyz, k_feat, k_par = jax.random.split(key, 3)

    # Canonical VoteNet seed counts produced by the (not reimplemented) backbone.
    B, N, C = 2, 1024, 256
    seed_xyz = jax.random.normal(k_xyz, (B, N, 3), dtype=jnp.float32)
    # PyTorch seed_features are (B, C, N); kernel layout is (B, N, C).
    seed_feat_nc = jax.random.normal(k_feat, (B, N, C), dtype=jnp.float32)

    params = make_params(k_par, C)

    vote_xyz, vote_feat_nc = vote_and_normalize(seed_xyz, seed_feat_nc, params,
                                                tile_rows=512)
    jax.block_until_ready((vote_xyz, vote_feat_nc))
    # NOTE: vote_features are kept in NWC (B, N, C); downstream modules are not
    # part of this spec, and a standalone NCW transpose would add a full HBM pass.

    # correctness check against pure-JAX f32 reference (bf16 MXU operands ->
    # loosened tolerance per review)
    ref_xyz, ref_feat = reference(seed_xyz, seed_feat_nc, params)
    np.testing.assert_allclose(np.asarray(vote_xyz), np.asarray(ref_xyz),
                               rtol=5e-2, atol=5e-2)
    np.testing.assert_allclose(np.asarray(vote_feat_nc), np.asarray(ref_feat),
                               rtol=5e-2, atol=5e-2)

    print("KERNEL_OK")
</pallas_src>

<mosaic_0001>
module attributes {stable_mosaic.version = 11 : i64} {
  func.func @_vote_kernel(%arg0: i32, %arg1: memref<512x256xf32, #tpu.memory_space<vmem>>, %arg2: memref<256x256xbf16, #tpu.memory_space<vmem>>, %arg3: memref<1x256xf32, #tpu.memory_space<vmem>>, %arg4: memref<256x256xbf16, #tpu.memory_space<vmem>>, %arg5: memref<1x256xf32, #tpu.memory_space<vmem>>, %arg6: memref<256x384xbf16, #tpu.memory_space<vmem>>, %arg7: memref<1x384xf32, #tpu.memory_space<vmem>>, %arg8: memref<512x128xf32, #tpu.memory_space<vmem>>, %arg9: memref<512x256xf32, #tpu.memory_space<vmem>>) attributes {dimension_semantics = [#tpu.dimension_semantics<parallel>], iteration_bounds = array<i64: 4>, scalar_prefetch = 0 : i64, scratch_operands = 0 : i64, tpu.core_type = #tpu.core_type<tc>, window_params = [{transform_indices = @transform_0, window_bounds = array<i64: 512, 256>}, {pipeline_mode = #tpu.pipeline_mode<synchronous>, transform_indices = @transform_1, window_bounds = array<i64: 256, 256>}, {pipeline_mode = #tpu.pipeline_mode<synchronous>, transform_indices = @transform_2, window_bounds = array<i64: 1, 256>}, {pipeline_mode = #tpu.pipeline_mode<synchronous>, transform_indices = @transform_3, window_bounds = array<i64: 256, 256>}, {pipeline_mode = #tpu.pipeline_mode<synchronous>, transform_indices = @transform_4, window_bounds = array<i64: 1, 256>}, {pipeline_mode = #tpu.pipeline_mode<synchronous>, transform_indices = @transform_5, window_bounds = array<i64: 256, 384>}, {pipeline_mode = #tpu.pipeline_mode<synchronous>, transform_indices = @transform_6, window_bounds = array<i64: 1, 384>}, {transform_indices = @transform_7, window_bounds = array<i64: 512, 128>}, {transform_indices = @transform_8, window_bounds = array<i64: 512, 256>}]} {
    %c0 = arith.constant 0 : index
    %c0_0 = arith.constant 0 : index
    %0 = vector.load %arg1[%c0, %c0_0] : memref<512x256xf32, #tpu.memory_space<vmem>>, vector<512x256xf32>
    %1 = arith.truncf %0 : vector<512x256xf32> to vector<512x256xbf16>
    %c0_1 = arith.constant 0 : index
    %c0_2 = arith.constant 0 : index
    %2 = vector.load %arg2[%c0_1, %c0_2] : memref<256x256xbf16, #tpu.memory_space<vmem>>, vector<256x256xbf16>
    %cst = arith.constant dense<0.000000e+00> : vector<512x256xf32>
    %3 = tpu.matmul %1, %2, %cst {dimension_numbers = #tpu.dot_dimension_numbers<[1], [0], [0], [1], [0, 0, 1, 1], [], []>} : vector<512x256xbf16>, vector<256x256xbf16>, vector<512x256xf32> -> vector<512x256xf32>
    %c0_3 = arith.constant 0 : index
    %c0_4 = arith.constant 0 : index
    %4 = vector.load %arg3[%c0_3, %c0_4] : memref<1x256xf32, #tpu.memory_space<vmem>>, vector<1x256xf32>
    %5 = vector.broadcast %4 : vector<1x256xf32> to vector<512x256xf32>
    %6 = arith.addf %3, %5 : vector<512x256xf32>
    %cst_5 = arith.constant 0.000000e+00 : f32
    %7 = vector.broadcast %cst_5 : f32 to vector<512x256xf32>
    %8 = arith.maximumf %6, %7 : vector<512x256xf32>
    %9 = arith.truncf %8 : vector<512x256xf32> to vector<512x256xbf16>
    %c0_6 = arith.constant 0 : index
    %c0_7 = arith.constant 0 : index
    %10 = vector.load %arg4[%c0_6, %c0_7] : memref<256x256xbf16, #tpu.memory_space<vmem>>, vector<256x256xbf16>
    %cst_8 = arith.constant dense<0.000000e+00> : vector<512x256xf32>
    %11 = tpu.matmul %9, %10, %cst_8 {dimension_numbers = #tpu.dot_dimension_numbers<[1], [0], [0], [1], [0, 0, 1, 1], [], []>} : vector<512x256xbf16>, vector<256x256xbf16>, vector<512x256xf32> -> vector<512x256xf32>
    %c0_9 = arith.constant 0 : index
    %c0_10 = arith.constant 0 : index
    %12 = vector.load %arg5[%c0_9, %c0_10] : memref<1x256xf32, #tpu.memory_space<vmem>>, vector<1x256xf32>
    %13 = vector.broadcast %12 : vector<1x256xf32> to vector<512x256xf32>
    %14 = arith.addf %11, %13 : vector<512x256xf32>
    %cst_11 = arith.constant 0.000000e+00 : f32
    %15 = vector.broadcast %cst_11 : f32 to vector<512x256xf32>
    %16 = arith.maximumf %14, %15 : vector<512x256xf32>
    %17 = arith.truncf %16 : vector<512x256xf32> to vector<512x256xbf16>
    %c0_12 = arith.constant 0 : index
    %c0_13 = arith.constant 0 : index
    %18 = vector.load %arg6[%c0_12, %c0_13] : memref<256x384xbf16, #tpu.memory_space<vmem>>, vector<256x384xbf16>
    %cst_14 = arith.constant dense<0.000000e+00> : vector<512x384xf32>
    %19 = tpu.matmul %17, %18, %cst_14 {dimension_numbers = #tpu.dot_dimension_numbers<[1], [0], [0], [1], [0, 0, 1, 1], [], []>} : vector<512x256xbf16>, vector<256x384xbf16>, vector<512x384xf32> -> vector<512x384xf32>
    %c0_15 = arith.constant 0 : index
    %c0_16 = arith.constant 0 : index
    %20 = vector.load %arg7[%c0_15, %c0_16] : memref<1x384xf32, #tpu.memory_space<vmem>>, vector<1x384xf32>
    %21 = vector.broadcast %20 : vector<1x384xf32> to vector<512x384xf32>
    %22 = arith.addf %19, %21 : vector<512x384xf32>
    %23 = vector.extract_strided_slice %22 {offsets = [0, 0], sizes = [512, 128], strides = [1, 1]} : vector<512x384xf32> to vector<512x128xf32>
    %c0_17 = arith.constant 0 : index
    %c0_18 = arith.constant 0 : index
    %24 = vector.load %arg8[%c0_17, %c0_18] : memref<512x128xf32, #tpu.memory_space<vmem>>, vector<512x128xf32>
    tpu.vector_store %arg8[%c0_17, %c0_18], %23 {strides = array<i32>} : memref<512x128xf32, #tpu.memory_space<vmem>>, vector<512x128xf32>,
    %25 = vector.extract_strided_slice %22 {offsets = [0, 128], sizes = [512, 256], strides = [1, 1]} : vector<512x384xf32> to vector<512x256xf32>
    %26 = arith.addf %0, %25 : vector<512x256xf32>
    %27 = arith.mulf %26, %26 : vector<512x256xf32>
    %cst_19 = arith.constant dense<0.000000e+00> : vector<512xf32>
    %28 = vector.multi_reduction <add>, %27, %cst_19 [1] : vector<512x256xf32> to vector<512xf32>
    %29 = vector.shape_cast %28 : vector<512xf32> to vector<512x1xf32>
    %cst_20 = arith.constant 9.99999996E-13 : f32
    %30 = vector.broadcast %cst_20 : f32 to vector<512x1xf32>
    %31 = arith.addf %29, %30 : vector<512x1xf32>
    %32 = math.rsqrt %31 : vector<512x1xf32>
    %33 = vector.broadcast %32 : vector<512x1xf32> to vector<512x256xf32>
    %34 = arith.mulf %26, %33 : vector<512x256xf32>
    %c0_21 = arith.constant 0 : index
    %c0_22 = arith.constant 0 : index
    %35 = vector.load %arg9[%c0_21, %c0_22] : memref<512x256xf32, #tpu.memory_space<vmem>>, vector<512x256xf32>
    tpu.vector_store %arg9[%c0_21, %c0_22], %34 {strides = array<i32>} : memref<512x256xf32, #tpu.memory_space<vmem>>, vector<512x256xf32>,
    return
  }
  func.func @transform_0(%arg0: i32) -> (i32, i32) {
    %c0_i32 = arith.constant 0 : i32
    %c0_i32_0 = arith.constant 0 : i32
    return %arg0, %c0_i32 : i32, i32
  }
  func.func @transform_1(%arg0: i32) -> (i32, i32) {
    %c0_i32 = arith.constant 0 : i32
    %c0_i32_0 = arith.constant 0 : i32
    %c0_i32_1 = arith.constant 0 : i32
    return %c0_i32, %c0_i32_0 : i32, i32
  }
  func.func @transform_2(%arg0: i32) -> (i32, i32) {
    %c0_i32 = arith.constant 0 : i32
    %c0_i32_0 = arith.constant 0 : i32
    %c0_i32_1 = arith.constant 0 : i32
    return %c0_i32, %c0_i32_0 : i32, i32
  }
  func.func @transform_3(%arg0: i32) -> (i32, i32) {
    %c0_i32 = arith.constant 0 : i32
    %c0_i32_0 = arith.constant 0 : i32
    %c0_i32_1 = arith.constant 0 : i32
    return %c0_i32, %c0_i32_0 : i32, i32
  }
  func.func @transform_4(%arg0: i32) -> (i32, i32) {
    %c0_i32 = arith.constant 0 : i32
    %c0_i32_0 = arith.constant 0 : i32
    %c0_i32_1 = arith.constant 0 : i32
    return %c0_i32, %c0_i32_0 : i32, i32
  }
  func.func @transform_5(%arg0: i32) -> (i32, i32) {
    %c0_i32 = arith.constant 0 : i32
    %c0_i32_0 = arith.constant 0 : i32
    %c0_i32_1 = arith.constant 0 : i32
    return %c0_i32, %c0_i32_0 : i32, i32
  }
  func.func @transform_6(%arg0: i32) -> (i32, i32) {
    %c0_i32 = arith.constant 0 : i32
    %c0_i32_0 = arith.constant 0 : i32
    %c0_i32_1 = arith.constant 0 : i32
    return %c0_i32, %c0_i32_0 : i32, i32
  }
  func.func @transform_7(%arg0: i32) -> (i32, i32) {
    %c0_i32 = arith.constant 0 : i32
    %c0_i32_0 = arith.constant 0 : i32
    return %arg0, %c0_i32 : i32, i32
  }
  func.func @transform_8(%arg0: i32) -> (i32, i32) {
    %c0_i32 = arith.constant 0 : i32
    %c0_i32_0 = arith.constant 0 : i32
    return %arg0, %c0_i32 : i32, i32
  }
}

</mosaic_0001>

<bundles_post_ra>
// kernel: vote_and_normalize.1
= control target key start
LH: loop header
LB: loop body
LE: loop exit
PB: predicated region body
PF: predicated region fallthrough
CT: control target
= control target key end

     0   :  { %14 = vsyncpa [#allocation3], 0  ;;  %s7619_s0 = inlined_call_operand.hbm [shape: f32[2048,256], index: 0, kind: input, shape index: {}]   ;;  %s7620_s1 = inlined_call_operand.vmem [shape: bf16[256,256], index: 1, kind: input, shape index: {}]   ;;  %s7621_s2 = inlined_call_operand.hbm [shape: f32[1,256], index: 2, kind: input, shape index: {}]   ;;  %s7622_s3 = inlined_call_operand.vmem [shape: bf16[256,256], index: 3, kind: input, shape index: {}]   ;;  %s7623_s4 = inlined_call_operand.hbm [shape: f32[1,256], index: 4, kind: input, shape index: {}]   ;;  %s7624_s5 = inlined_call_operand.vmem [shape: bf16[256,384], index: 5, kind: input, shape index: {}]   ;;  %s7625_s6 = inlined_call_operand.hbm [shape: f32[1,384], index: 6, kind: input, shape index: {}]   ;;  %s7626_s7 = inlined_call_operand.vmem [shape: f32[2048,128], index: 7, kind: output, shape index: {0}]   ;;  %s7627_s8 = inlined_call_operand.hbm [shape: f32[2048,256], index: 8, kind: output, shape index: {1}]  }
   0x1   :  { %16 = vsyncpa [#allocation3 + $0x1], 0 }
   0x2   :  { %17 = vsyncpa [#allocation6], 0 }
   0x3   :  { %18 = vsyncpa [#allocation9], 0 }
   0x4   :  { %19 = vsyncpa [#allocation4], 0 }
   0x5   :  { %21 = vsyncpa [#allocation4 + $0x1], 0  ;;  %s4979_s27 = smov 0   ;;  %s4981_s28 = smov 0  }
   0x6   :  { %s4983_s29 = smov 0   ;;  %s4985_s30 = smov 0  }
   0x7 LB: > { %s5000_s9 = sadd.s32 4294967295, %s4922_s30   ;;  %s4096_s10 = sadd.s32 4294967294, %s4922_s30   ;;  %s4922_s30 = sphi %s4985_s30, %s7793_s30   ;;  %s4918_s29 = sphi %s4983_s29, %s7792_s29   ;;  %s4914_s28 = sphi %s4981_s28, %s7791_s28   ;;  %s4910_s27 = sphi %s4979_s27, %s7790_s27  }
   0x8   : > { %p47_p0 = scmp.ne.s32.totalorder %s4914_s28, %s4910_s27  ;;  %p7628_p1 = scmp.eq.s32.totalorder %s5000_s9, 0 }
   0x9   : > { %p229_p3 = scmp.eq.s32.totalorder %s4096_s10, 3  ;;  %p4097_p5 = scmp.ge.s32.totalorder %s4922_s30, 1 }
   0xa   : > { %p5009_p4 = por %p7628_p1, %p47_p0  ;;  %p236_p7 = scmp.lt.s32.totalorder %s4922_s30, 5 }
   0xb   : > { %p5014_p6 = por %p229_p3, %p47_p0  ;;  %s4924_s14 = smov [#allocation5]  }
   0xc   : > { %s7679_s11 = scalar_select %p5009_p4, 1, 0 }
   0xd   : > { %s7680_s12 = scalar_select %p5014_p6, 1, 0 }
   0xe   : > { %p5019_p8 = pnand %p4097_p5, %p236_p7  ;;  %s252_s15 = sshll.u32 %s4924_s14, 4  ;;  %s253_s15 = int_to_ptr.vmem [resolvable:$true] %s252_s15 }
   0xf   : > { %s4925_s16 = smov [#allocation7]   ;;  %s4926_s19 = smov [#allocation8]  }
  0x10   : > { %s7681_s13 = scalar_select %p5019_p8, 1, 0 }
  0x11   : > { %p4252_p9 = pneg %p5019_p8  ;;  %s266_s17 = sshll.u32 %s4925_s16, 4  ;;  %s5031_s17 = int_to_ptr.vmem [resolvable:$true] %s266_s17 }
  0x12   : > { %s280_s20 = sshll.u32 %s4926_s19, 4  ;;  %s4734_s23 = scalar_lea.hbm %s7621_s2, 32  ;;  %s5033_s20 = int_to_ptr.vmem [resolvable:$true] %s280_s20 }
  0x13   : > { %p5027_p10 = pnand %p4252_p9, %p7628_p1  ;;  %p4735_p11 = scmp.ne.s32.totalorder %s7621_s2, %s4734_s23 }
  0x14   : > { %p4741_p3 = scmp.lt.u32.totalorder %s4734_s23, %s7621_s2 }
  0x15   : > { %p5043_p12 = pneg %p5027_p10 }
  0x17   : > { %p4737_p13 = pnand %p5043_p12, %p4735_p11 }
  0x19   : > { %p4738_p0 = pneg %p4737_p13 }
  0x1b   : > { %p4743_p5 = pnand %p4741_p3, %p4738_p0 }
  0x1d   : > { %4746 = shalt.err (!%p4743_p5)
}
  0x1e   : > { %s4747_s16 = scalar_lea.vmem %s253_s15, 32  ;;  %p4755_p2 = scmp.lt.s32.totalorder %s253_s15, %s253_s15 }
  0x1f   : > { %p4748_p7 = scmp.ne.s32.totalorder %s253_s15, %s4747_s16  ;;  %p4756_p6 = scmp.lt.s32.totalorder %s4747_s16, %s4747_s16 }
  0x21   : > { %p4750_p9 = pnand %p4748_p7, %p5043_p12  ;;  %p4757_p4 = por %p4756_p6, %p4755_p2 }
  0x23   : > { %p4751_p1 = pneg %p4750_p9 }
  0x25   : > { %p4758_p8 = pnand %p4757_p4, %p4751_p1 }
  0x27   : > { %4761 = shalt.err (!%p4758_p8)
}
  0x28   : > { %4255 = dma.hbm_to_vmem [thread:$0]  (!%p5027_p10), %s7621_s2, 32, %s253_s15, [#allocation6]  }
  0x29   : > { %s4762_s24 = scalar_lea.hbm %s7623_s4, 32 }
  0x2a   : > { %p4763_p11 = scmp.ne.s32.totalorder %s7623_s4, %s4762_s24  ;;  %p4769_p1 = scmp.lt.u32.totalorder %s4762_s24, %s7623_s4 }
  0x2c   : > { %p4765_p13 = pnand %p4763_p11, %p5043_p12 }
  0x2e   : > { %p4766_p2 = pneg %p4765_p13 }
  0x30   : > { %p4771_p4 = pnand %p4769_p1, %p4766_p2 }
  0x32   : > { %4774 = shalt.err (!%p4771_p4)
}
  0x33   : > { %s4775_s15 = scalar_lea.vmem %s5031_s17, 32  ;;  %p4783_p3 = scmp.lt.s32.totalorder %s5031_s17, %s5031_s17 }
  0x34   : > { %p4776_p6 = scmp.ne.s32.totalorder %s5031_s17, %s4775_s15  ;;  %p4784_p5 = scmp.lt.s32.totalorder %s4775_s15, %s4775_s15 }
  0x36   : > { %p4778_p8 = pnand %p4776_p6, %p5043_p12  ;;  %p4785_p7 = por %p4784_p5, %p4783_p3 }
  0x38   : > { %p4779_p0 = pneg %p4778_p8 }
  0x3a   : > { %p4786_p9 = pnand %p4785_p7, %p4779_p0 }
  0x3c   : > { %4789 = shalt.err (!%p4786_p9)
}
  0x3d   : > { %4258 = dma.hbm_to_vmem [thread:$0]  (!%p5027_p10), %s7623_s4, 32, %s5031_s17, [#allocation6]  }
  0x3e   : > { %s4790_s24 = scalar_lea.hbm %s7625_s6, 48 }
  0x3f   : > { %p4791_p11 = scmp.ne.s32.totalorder %s7625_s6, %s4790_s24  ;;  %p4797_p1 = scmp.lt.u32.totalorder %s4790_s24, %s7625_s6 }
  0x41   : > { %p4793_p13 = pnand %p4791_p11, %p5043_p12 }
  0x43   : > { %p4794_p2 = pneg %p4793_p13 }
  0x45   : > { %p4799_p4 = pnand %p4797_p1, %p4794_p2 }
  0x47   : > { %4802 = shalt.err (!%p4799_p4)
}
  0x48   : > { %s4803_s17 = scalar_lea.vmem %s5033_s20, 48  ;;  %s4810_s15 = scalar_lea.vmem %s5033_s20, 64 }
  0x49   : > { %p4804_p6 = scmp.ne.s32.totalorder %s5033_s20, %s4803_s17  ;;  %p4811_p3 = scmp.lt.s32.totalorder %s5033_s20, %s5033_s20 }
  0x4a   : > { %p4812_p5 = scmp.lt.s32.totalorder %s4810_s15, %s4803_s17 }
  0x4b   : > { %p4806_p8 = pnand %p4804_p6, %p5043_p12 }
  0x4c   : > { %p4813_p7 = por %p4812_p5, %p4811_p3 }
  0x4d   : > { %p4807_p0 = pneg %p4806_p8 }
  0x4f   : > { %p4814_p9 = pnand %p4813_p7, %p4807_p0 }
  0x51   : > { %4817 = shalt.err (!%p4814_p9)
}
  0x52   : > { %4261 = dma.hbm_to_vmem [thread:$0]  (!%p5027_p10), %s7625_s6, 48, %s5033_s20, [#allocation9]  }
  0x53   : > { %s5107_s26 = sadd.s32 1, %s4922_s30   ;;  %s34_s22 = sadd.s32 1, %s4918_s29 }
  0x54   : > { %s31_s18 = ssub.s32 %s4922_s30, %s5107_s26  ;;  %p41_p11 = scmp.ne.s32.totalorder %s4918_s29, %s4914_s28 }
  0x55   : > { %p32_p12 = scmp.eq.s32.totalorder %s31_s18, 0  ;;  %p42_p13 = scmp.eq.s32.totalorder %s4922_s30, 0 }
  0x56   : > { %p4273_p2 = scmp.lt.s32.totalorder %s4922_s30, 4  ;;  %p7684_p4 = scmp.eq.s32.totalorder %s5000_s9, 3 }
  0x57   : > { %s5117_s23 = scalar_select %p32_p12, %s4918_s29, %s34_s22  }
  0x58   : > { %p43_p1 = por %p42_p13, %p41_p11  ;;  %p5121_p6 = por %p7684_p4, %p41_p11 }
  0x59   : > { %s291_s25 = sand.u32 1, %s4918_s29   ;;  %s4233_s10 = sshll.u32 %s4922_s30, 14 }
  0x5a   : > { %s4102_s20 = sshll.u32 %s291_s25, 10  ;;  %s5130_s17 = scalar_lea.hbm %s7619_s0, %s4233_s10 }
  0x5b   : > { %s295_s15 = scalar_lea.vmem [#allocation2], %s4102_s20  ;;  %p5132_p10 = pnand %p4273_p2, %p43_p1 }
  0x5c   : > { %s303_s19 = sshll.u32 %s295_s15, 4  ;;  %s5138_s18 = scalar_lea.sflag [#allocation3], %s291_s25  ;;  %s5136_s19 = int_to_ptr.vmem [resolvable:$true] %s303_s19 }
  0x5d   : > { %s4818_s22 = scalar_lea.hbm %s5130_s17, 16384  ;;  %p4820_p0 = pneg %p5132_p10 }
  0x5e   : > { %p4819_p8 = scmp.ne.s32.totalorder %s5130_s17, %s4818_s22  ;;  %s4823_s14 = scalar_lea.hbm %s7619_s0, 65536 }
  0x5f   : > { %p4824_p7 = scmp.lt.u32.totalorder %s5130_s17, %s7619_s0  ;;  %p4825_p9 = scmp.lt.u32.totalorder %s4823_s14, %s4818_s22 }
  0x60   : > { %p4821_p3 = pnand %p4820_p0, %p4819_p8  ;;  %p4827_p11 = scmp.lt.u32.totalorder %s4818_s22, %s5130_s17 }
  0x61   : > { %p4826_p12 = por %p4825_p9, %p4824_p7 }
  0x62   : > { %p4822_p5 = pneg %p4821_p3 }
  0x63   : > { %p4828_p13 = por %p4827_p11, %p4826_p12 }
  0x65   : > { %p4829_p2 = pnand %p4828_p13, %p4822_p5 }
  0x67   : > { %4832 = shalt.err (!%p4829_p2)
}
  0x68   : > { %s4833_s25 = scalar_lea.vmem %s5136_s19, 16384  ;;  %s4927_s10 = smov [#allocation2]  }
  0x69   : > { %p4834_p1 = scmp.ne.s32.totalorder %s5136_s19, %s4833_s25  ;;  %s4838_s20 = sshll.u32 %s4927_s10, 4  ;;  %s4839_s20 = int_to_ptr.vmem [resolvable:$false] %s4838_s20 }
  0x6a   : > { %s4840_s16 = scalar_lea.vmem %s4839_s20, 32768  ;;  %p4841_p3 = scmp.lt.s32.totalorder %s5136_s19, %s4839_s20 }
  0x6b   : > { %p4836_p4 = pnand %p4834_p1, %p4820_p0  ;;  %p4842_p7 = scmp.lt.s32.totalorder %s4840_s16, %s4833_s25 }
  0x6d   : > { %p4837_p8 = pneg %p4836_p4  ;;  %p4843_p9 = por %p4842_p7, %p4841_p3 }
  0x6f   : > { %p4844_p12 = pnand %p4843_p9, %p4837_p8 }
  0x71   : > { %4847 = shalt.err (!%p4844_p12)
}
  0x72   : > { %s4928_s22 = smov 256   ;;  %s4929_s14 = smov 16  }
  0x73   : > { %4265 = dma.hbm_to_vmem [thread:$0]  (!%p5132_p10), %s5130_s17, 16384, %s5136_s19, %s5138_s18, %s4928_s22, %s4928_s22, %s4929_s14  }
  0x74   : > { %p7687_p0 = scmp.ne.s32.totalorder %s7681_s13, 0 }
  0x76   : > { %315 = sbr.rel (%p7687_p0) target bundleno = 1320 (0x528), region = 48 }
  0x7d   : > { %s5169_s15 = sand.u32 1, %s4914_s28   ;;  %p7688_p5 = scmp.ne.s32.totalorder %s7679_s11, 0 }
  0x7e   : > { %s4107_s25 = sshll.u32 %s5169_s15, 10  ;;  %s318_s10 = scalar_lea.sflag [#allocation3], %s5169_s15 }
  0x7f   : > { %s5175_s20 = scalar_lea.vmem [#allocation2], %s4107_s25 }
  0x80   : > { %4893 = dma.done.wait (%p7688_p5), %s318_s10, 16384  }
  0x81   : > { %4895 = vsyncadd (%p7688_p5), %s318_s10, 4294950912  ;;  %p7689_p10 = scmp.eq.s32.totalorder %s5000_s9, 0 }
  0x83   : > { %4897 = dma.done.wait (%p7689_p10), [#allocation6], 64   ;;  %p7690_p11 = pmov %p7689_p10 }
  0x84   : > { %p7691_p13 = pmov %p7689_p10 }
  0x85   : > { %4899 = vsyncadd (%p7690_p11), [#allocation6], 4294967232 }
  0x86   : > { %4901 = dma.done.wait (%p7691_p13), [#allocation9], 48   ;;  %p7692_p2 = pmov %p7689_p10 }
  0x87   : > { %v4318_v0 = vld [vmem:[%s7620_s1 + $0x4] ss:$8 sps:$4 sm:$0xff]   ;;  %v4320_v1 = vld [vmem:[%s7620_s1] ss:$8 sps:$4 sm:$0xff]   ;;  %v4321_v2 = vld [vmem:[%s7620_s1 + $0x14] ss:$8 sps:$4 sm:$0xff]  }
  0x88   : > { %4903 = vsyncadd (%p7692_p2), [#allocation9], 4294967248  ;;  %776 = vmatprep.subr.bf16.mxu0 %v4318_v0  ;;  %v4323_v3 = vld [vmem:[%s7620_s1 + $0x10] ss:$8 sps:$4 sm:$0xff]   ;;  %v4324_v4 = vld [vmem:[%s7620_s1 + $0x24] ss:$8 sps:$4 sm:$0xff]  }
  0x89   : > { %777 = vmatpush1.bf16.msra.mxu0 %v4320_v1  ;;  %v4326_v5 = vld [vmem:[%s7620_s1 + $0x20] ss:$8 sps:$4 sm:$0xff]   ;;  %v4327_v6 = vld [vmem:[%s7620_s1 + $0x34] ss:$8 sps:$4 sm:$0xff]   ;;  %v4329_v7 = vld [vmem:[%s7620_s1 + $0x30] ss:$8 sps:$4 sm:$0xff]  }
  0x8a   : > { %778 = vmatprep.subr.bf16.mxu0 %v4321_v2  ;;  %v4330_v8 = vld [vmem:[%s7620_s1 + $0x44] ss:$8 sps:$4 sm:$0xff]   ;;  %v4332_v9 = vld [vmem:[%s7620_s1 + $0x40] ss:$8 sps:$4 sm:$0xff]   ;;  %v4333_v10 = vld [vmem:[%s7620_s1 + $0x54] ss:$8 sps:$4 sm:$0xff]  }
  0x8b   : > { %v4335_v11 = vld [vmem:[%s7620_s1 + $0x50] ss:$8 sps:$4 sm:$0xff]   ;;  %v4336_v12 = vld [vmem:[%s7620_s1 + $0x64] ss:$8 sps:$4 sm:$0xff]   ;;  %v4338_v16 = vld [vmem:[%s7620_s1 + $0x60] ss:$8 sps:$4 sm:$0xff]  }
  0x8c   : > { %v381_v13 = vld [vmem:[%s5175_s20 + $0x8] sm:$0xff]  ;;  %v383_v14 = vld [vmem:[%s5175_s20 + $0x18] sm:$0xff]  ;;  %v380_v35 = vld [vmem:[%s5175_s20] sm:$0xff]  ;;  %s4112_s11 = sshll.u32 %s5000_s9, 6  ;;  %s6969_s10 = scalar_lea.vmem [#allocation10], %s4107_s25 }
  0x8d   : > { %779 = vmatpush1.bf16.msra.mxu0 %v4323_v3  ;;  %v509_v15 = vpack.c.bf16 %v383_v14, %v381_v13  ;;  %v4339_v17 = vld [vmem:[%s7620_s1 + $0x74] ss:$8 sps:$4 sm:$0xff]   ;;  %v4341_v18 = vld [vmem:[%s7620_s1 + $0x70] ss:$8 sps:$4 sm:$0xff]   ;;  %v4342_v19 = vld [vmem:[%s7620_s1 + $0x84] ss:$8 sps:$4 sm:$0xff]  }
  0x8e   : > { %780 = vmatprep.subr.bf16.mxu0 %v4324_v4  ;;  %v4344_v20 = vld [vmem:[%s7620_s1 + $0x80] ss:$8 sps:$4 sm:$0xff]   ;;  %v4345_v21 = vld [vmem:[%s7620_s1 + $0x94] ss:$8 sps:$4 sm:$0xff]   ;;  %v4347_v22 = vld [vmem:[%s7620_s1 + $0x90] ss:$8 sps:$4 sm:$0xff]  }
  0x8f   : > { %808 = vmatprep.mubr.bf16.mxu0 %v509_v15  ;;  %v4348_v23 = vld [vmem:[%s7620_s1 + $0xa4] ss:$8 sps:$4 sm:$0xff]   ;;  %v4350_v24 = vld [vmem:[%s7620_s1 + $0xa0] ss:$8 sps:$4 sm:$0xff]   ;;  %v4351_v25 = vld [vmem:[%s7620_s1 + $0xb4] ss:$8 sps:$4 sm:$0xff]  }
  0x90   : > { %v4353_v26 = vld [vmem:[%s7620_s1 + $0xb0] ss:$8 sps:$4 sm:$0xff]   ;;  %v4354_v27 = vld [vmem:[%s7620_s1 + $0xc4] ss:$8 sps:$4 sm:$0xff]   ;;  %v4356_v28 = vld [vmem:[%s7620_s1 + $0xc0] ss:$8 sps:$4 sm:$0xff]  }
  0x91   : > { %781 = vmatpush1.bf16.msra.mxu0 %v4326_v5  ;;  %v4357_v29 = vld [vmem:[%s7620_s1 + $0xd4] ss:$8 sps:$4 sm:$0xff]   ;;  %v4359_v30 = vld [vmem:[%s7620_s1 + $0xd0] ss:$8 sps:$4 sm:$0xff]   ;;  %v4360_v31 = vld [vmem:[%s7620_s1 + $0xe4] ss:$8 sps:$4 sm:$0xff]  }
  0x92   : > { %782 = vmatprep.subr.bf16.mxu0 %v4327_v6  ;;  %v4362_v32 = vld [vmem:[%s7620_s1 + $0xe0] ss:$8 sps:$4 sm:$0xff]   ;;  %v4363_v33 = vld [vmem:[%s7620_s1 + $0xf4] ss:$8 sps:$4 sm:$0xff]   ;;  %v4365_v34 = vld [vmem:[%s7620_s1 + $0xf0] ss:$8 sps:$4 sm:$0xff]  }
  0x93   : > { %v382_v36 = vld [vmem:[%s5175_s20 + $0x10] sm:$0xff]  ;;  %v385_v37 = vld [vmem:[%s5175_s20 + $0x28] sm:$0xff]  ;;  %v387_v38 = vld [vmem:[%s5175_s20 + $0x38] sm:$0xff]  ;;  %p373_p1 = scmp.lt.s32.totalorder %s4112_s11, 255  ;;  %s4235_s25 = sshll.u32 %s5000_s9, 14 }
  0x94   : > { %v508_v39 = vpack.c.bf16 %v382_v36, %v380_v35  ;;  %v511_v40 = vpack.c.bf16 %v387_v38, %v385_v37  ;;  %v384_v41 = vld [vmem:[%s5175_s20 + $0x20] sm:$0xff]  ;;  %v386_v42 = vld [vmem:[%s5175_s20 + $0x30] sm:$0xff]  ;;  %v389_v43 = vld [vmem:[%s5175_s20 + $0x48] sm:$0xff]  ;;  %s7568_s19 = scalar_lea.hbm %s7627_s8, %s4235_s25  ;;  %s3951_s9 = scalar_lea.sflag [#allocation4], %s5169_s15 }
  0x95   : > { %783 = vmatpush1.bf16.msra.mxu0 %v4329_v7  ;;  %v391_v44 = vld [vmem:[%s5175_s20 + $0x58] sm:$0xff]  ;;  %v510_v45 = vpack.c.bf16 %v386_v42, %v384_v41  ;;  %v388_v47 = vld [vmem:[%s5175_s20 + $0x40] sm:$0xff]  ;;  %v390_v48 = vld [vmem:[%s5175_s20 + $0x50] sm:$0xff]  ;;  %s7795_s11 = smov (!%p373_p1, %s4112_s11), 255 }
  0x96   : > { %784 = vmatprep.subr.bf16.mxu0 %v4330_v8  ;;  %v513_v46 = vpack.c.bf16 %v391_v44, %v389_v43  ;;  %v393_v49 = vld [vmem:[%s5175_s20 + $0x68] sm:$0xff]  ;;  %v395_v50 = vld [vmem:[%s5175_s20 + $0x78] sm:$0xff]  ;;  %v512_v51 = vpack.c.bf16 %v390_v48, %v388_v47  ;;  %v392_v53 = vld [vmem:[%s5175_s20 + $0x60] sm:$0xff]  ;;  %s4113_s18 = sshll.u32 %s7795_s11, 3  ;;  %s4931_s11 = smov [#allocation10]  }
  0x97   : > { %v515_v52 = vpack.c.bf16 %v395_v50, %v393_v49  ;;  %v394_v54 = vld [vmem:[%s5175_s20 + $0x70] sm:$0xff]  ;;  %v397_v55 = vld [vmem:[%s5175_s20 + $0x88] sm:$0xff]  ;;  %v399_v56 = vld [vmem:[%s5175_s20 + $0x98] sm:$0xff]  ;;  %s6147_s14 = scalar_lea.vmem %s7626_s7, %s4113_s18  ;;  %s4852_s18 = sshll.u32 %s4931_s11, 4  ;;  %s4853_s18 = int_to_ptr.vmem [resolvable:$false] %s4852_s18 }
  0x98   : > { %v514_v57 = vpack.c.bf16 %v394_v54, %v392_v53  ;;  %v517_v58 = vpack.c.bf16 %v399_v56, %v397_v55  ;;  %v4366_v59 = vld [vmem:[%s7622_s3 + $0x4] ss:$8 sps:$4 sm:$0xff]   ;;  %v4368_v60 = vld [vmem:[%s7622_s3] ss:$8 sps:$4 sm:$0xff]   ;;  %v398_v62 = vld [vmem:[%s5175_s20 + $0x90] sm:$0xff]  ;;  %s4854_s16 = scalar_lea.vmem %s4853_s18, 32768 }
  0x99   : > { %785 = vmatpush1.bf16.msra.mxu0 %v4332_v9  ;;  %v396_v61 = vld [vmem:[%s5175_s20 + $0x80] sm:$0xff]  ;;  %v401_v63 = vld [vmem:[%s5175_s20 + $0xa8] sm:$0xff]  ;;  %v403_v0 = vld [vmem:[%s5175_s20 + $0xb8] sm:$0xff]  ;;  %1525 = vmatprep.subr.bf16.mxu1 %v4366_v59 }
  0x9a   : > { %786 = vmatprep.subr.bf16.mxu0 %v4333_v10  ;;  %1526 = vmatpush1.bf16.msra.mxu1 %v4368_v60  ;;  %v516_v1 = vpack.c.bf16 %v398_v62, %v396_v61  ;;  %v519_v2 = vpack.c.bf16 %v403_v0, %v401_v63  ;;  %v4369_v3 = vld [vmem:[%s7622_s3 + $0x14] ss:$8 sps:$4 sm:$0xff]   ;;  %v4371_v4 = vld [vmem:[%s7622_s3 + $0x10] ss:$8 sps:$4 sm:$0xff]   ;;  %v4372_v5 = vld [vmem:[%s7622_s3 + $0x24] ss:$8 sps:$4 sm:$0xff]  }
  0x9b   : > { %v400_v6 = vld [vmem:[%s5175_s20 + $0xa0] sm:$0xff]  ;;  %v402_v7 = vld [vmem:[%s5175_s20 + $0xb0] sm:$0xff]  ;;  %v405_v8 = vld [vmem:[%s5175_s20 + $0xc8] sm:$0xff]  ;;  %1527 = vmatprep.subr.bf16.mxu1 %v4369_v3 }
  0x9c   : > { %v407_v9 = vld [vmem:[%s5175_s20 + $0xd8] sm:$0xff]  ;;  %v4374_v10 = vld [vmem:[%s7622_s3 + $0x20] ss:$8 sps:$4 sm:$0xff]   ;;  %v4378_v15 = vld [vmem:[%s7622_s3 + $0x44] ss:$8 sps:$4 sm:$0xff]  }
  0x9d   : > { %787 = vmatpush1.bf16.msra.mxu0 %v4335_v11  ;;  %v518_v11 = vpack.c.bf16 %v402_v7, %v400_v6  ;;  %v4375_v13 = vld [vmem:[%s7622_s3 + $0x34] ss:$8 sps:$4 sm:$0xff]   ;;  %v4377_v14 = vld [vmem:[%s7622_s3 + $0x30] ss:$8 sps:$4 sm:$0xff]   ;;  %v4390_v35 = vld [vmem:[%s7622_s3 + $0x84] ss:$8 sps:$4 sm:$0xff]  }
  0x9e   : > { %788 = vmatprep.subr.bf16.mxu0 %v4336_v12  ;;  %1528 = vmatpush1.bf16.msra.mxu1 %v4371_v4  ;;  %v521_v12 = vpack.c.bf16 %v407_v9, %v405_v8  ;;  %v412_v36 = vld [vmem:[%s5175_s20 + $0x100] sm:$0xff]  ;;  %v414_v37 = vld [vmem:[%s5175_s20 + $0x110] sm:$0xff]  ;;  %v417_v38 = vld [vmem:[%s5175_s20 + $0x128] sm:$0xff] }
  0x9f   : > { %1529 = vmatprep.subr.bf16.mxu1 %v4372_v5  ;;  %v524_v41 = vpack.c.bf16 %v414_v37, %v412_v36  ;;  %v4393_v43 = vld [vmem:[%s7622_s3 + $0x94] ss:$8 sps:$4 sm:$0xff]   ;;  %v4395_v44 = vld [vmem:[%s7622_s3 + $0x90] ss:$8 sps:$4 sm:$0xff]   ;;  %v421_v48 = vld [vmem:[%s5175_s20 + $0x148] sm:$0xff] }
  0xa0   : > { %v418_v47 = vld [vmem:[%s5175_s20 + $0x130] sm:$0xff]  ;;  %v423_v49 = vld [vmem:[%s5175_s20 + $0x158] sm:$0xff]  ;;  %v4398_v50 = vld [vmem:[%s7622_s3 + $0xa0] ss:$8 sps:$4 sm:$0xff]  }
  0xa1   : > { %789 = vmatpush1.bf16.msra.mxu0 %v4338_v16  ;;  %v404_v16 = vld [vmem:[%s5175_s20 + $0xc0] sm:$0xff]  ;;  %v4399_v53 = vld [vmem:[%s7622_s3 + $0xb4] ss:$8 sps:$4 sm:$0xff]   ;;  %v4401_v54 = vld [vmem:[%s7622_s3 + $0xb0] ss:$8 sps:$4 sm:$0xff]  }
  0xa2   : > { %790 = vmatprep.subr.bf16.mxu0 %v4339_v17  ;;  %1530 = vmatpush1.bf16.msra.mxu1 %v4374_v10  ;;  %v406_v17 = vld [vmem:[%s5175_s20 + $0xd0] sm:$0xff]  ;;  %v4402_v55 = vld [vmem:[%s7622_s3 + $0xc4] ss:$8 sps:$4 sm:$0xff]   ;;  %v427_v59 = vld [vmem:[%s5175_s20 + $0x178] sm:$0xff] }
  0xa3   : > { %1531 = vmatprep.subr.bf16.mxu1 %v4375_v13  ;;  %v420_v56 = vld [vmem:[%s5175_s20 + $0x140] sm:$0xff]  ;;  %v4405_v63 = vld [vmem:[%s7622_s3 + $0xd4] ss:$8 sps:$4 sm:$0xff]   ;;  %v4407_v0 = vld [vmem:[%s7622_s3 + $0xd0] ss:$8 sps:$4 sm:$0xff]  }
  0xa4   : > { %v4404_v60 = vld [vmem:[%s7622_s3 + $0xc0] ss:$8 sps:$4 sm:$0xff]   ;;  %v431_v4 = vld [vmem:[%s5175_s20 + $0x198] sm:$0xff]  ;;  %v4408_v6 = vld [vmem:[%s7622_s3 + $0xe4] ss:$8 sps:$4 sm:$0xff]  }
  0xa5   : > { %791 = vmatpush1.bf16.msra.mxu0 %v4341_v18  ;;  %v409_v18 = vld [vmem:[%s5175_s20 + $0xe8] sm:$0xff]  ;;  %v4411_v9 = vld [vmem:[%s7622_s3 + $0xf4] ss:$8 sps:$4 sm:$0xff]   ;;  %v428_v10 = vld [vmem:[%s5175_s20 + $0x180] sm:$0xff] }
  0xa6   : > { %792 = vmatprep.subr.bf16.mxu0 %v4342_v19  ;;  %v411_v19 = vld [vmem:[%s5175_s20 + $0xf8] sm:$0xff]  ;;  %1532 = vmatpush1.bf16.msra.mxu1 %v4377_v14  ;;  %v429_v3 = vld [vmem:[%s5175_s20 + $0x188] sm:$0xff] }
  0xa7   : > { %1533 = vmatprep.subr.bf16.mxu1 %v4378_v15  ;;  %v533_v7 = vpack.c.bf16 %v431_v4, %v429_v3  ;;  %v4410_v8 = vld [vmem:[%s7622_s3 + $0xe0] ss:$8 sps:$4 sm:$0xff]   ;;  %v435_v14 = vld [vmem:[%s5175_s20 + $0x1b8] sm:$0xff] }
  0xa8   : > { %v433_v13 = vld [vmem:[%s5175_s20 + $0x1a8] sm:$0xff]  ;;  %v447_v37 = vld [vmem:[%s5175_s20 + $0x218] sm:$0xff]  ;;  %v460_v4 = vld [vmem:[%s5175_s20 + $0x280] sm:$0xff] }
  0xa9   : > { %793 = vmatpush1.bf16.msra.mxu0 %v4344_v20  ;;  %v4380_v20 = vld [vmem:[%s7622_s3 + $0x40] ss:$8 sps:$4 sm:$0xff]  }
  0xaa   : > { %794 = vmatprep.subr.bf16.mxu0 %v4345_v21  ;;  %v520_v21 = vpack.c.bf16 %v406_v17, %v404_v16  ;;  %1534 = vmatpush1.bf16.msra.mxu1 %v4380_v20  ;;  %v535_v16 = vpack.c.bf16 %v435_v14, %v433_v13  ;;  %v4414_v17 = vld [vmem:[%s7624_s5] ss:$12 sps:$4 sm:$0xff]   ;;  %v434_v20 = vld [vmem:[%s5175_s20 + $0x1b0] sm:$0xff] }
  0xab   : > { %v445_v36 = vld [vmem:[%s5175_s20 + $0x208] sm:$0xff]  ;;  %v466_v13 = vld [vmem:[%s5175_s20 + $0x2b0] sm:$0xff] }
  0xac   : > { %v469_v14 = vld [vmem:[%s5175_s20 + $0x2c8] sm:$0xff] }
  0xad   : > { %795 = vmatpush1.bf16.msra.mxu0 %v4347_v22  ;;  %v523_v22 = vpack.c.bf16 %v411_v19, %v409_v18  ;;  %v4416_v18 = vld [vmem:[%s7624_s5 + $0x4] ss:$12 sps:$4 sm:$0xff]  }
  0xae   : > { %796 = vmatprep.subr.bf16.mxu0 %v4348_v23  ;;  %v4381_v23 = vld [vmem:[%s7622_s3 + $0x54] ss:$8 sps:$4 sm:$0xff]   ;;  %v432_v19 = vld [vmem:[%s5175_s20 + $0x1a0] sm:$0xff] }
  0xaf   : > { %1535 = vmatprep.subr.bf16.mxu1 %v4381_v23  ;;  %v4930_v23 = vmov 0  }
  0xb1   : > { %797 = vmatpush1.bf16.msra.mxu0 %v4350_v24  ;;  %v4383_v24 = vld [vmem:[%s7622_s3 + $0x50] ss:$8 sps:$4 sm:$0xff]  }
  0xb2   : > { %798 = vmatprep.subr.bf16.mxu0 %v4351_v25  ;;  %v4384_v25 = vld [vmem:[%s7622_s3 + $0x64] ss:$8 sps:$4 sm:$0xff]   ;;  %1536 = vmatpush1.bf16.msra.mxu1 %v4383_v24  ;;  %v534_v24 = vpack.c.bf16 %v434_v20, %v432_v19  ;;  %v470_v19 = vld [vmem:[%s5175_s20 + $0x2d0] sm:$0xff] }
  0xb3   : > { %1537 = vmatprep.subr.bf16.mxu1 %v4384_v25  ;;  %v473_v20 = vld [vmem:[%s5175_s20 + $0x2e8] sm:$0xff] }
  0xb5   : > { %799 = vmatpush1.bf16.msra.mxu0 %v4353_v26  ;;  %v408_v26 = vld [vmem:[%s5175_s20 + $0xe0] sm:$0xff] }
  0xb6   : > { %800 = vmatprep.subr.bf16.mxu0 %v4354_v27  ;;  %v410_v27 = vld [vmem:[%s5175_s20 + $0xf0] sm:$0xff] }
  0xb9   : > { %801 = vmatpush1.bf16.msra.mxu0 %v4356_v28  ;;  %v413_v28 = vld [vmem:[%s5175_s20 + $0x108] sm:$0xff] }
  0xba   : > { %802 = vmatprep.subr.bf16.mxu0 %v4357_v29  ;;  %v415_v29 = vld [vmem:[%s5175_s20 + $0x118] sm:$0xff] }
  0xbd   : > { %803 = vmatpush1.bf16.msra.mxu0 %v4359_v30  ;;  %v4386_v30 = vld [vmem:[%s7622_s3 + $0x60] ss:$8 sps:$4 sm:$0xff]  }
  0xbe   : > { %804 = vmatprep.subr.bf16.mxu0 %v4360_v31  ;;  %v522_v31 = vpack.c.bf16 %v410_v27, %v408_v26  ;;  %1538 = vmatpush1.bf16.msra.mxu1 %v4386_v30  ;;  %v436_v26 = vld [vmem:[%s5175_s20 + $0x1c0] sm:$0xff]  ;;  %v438_v27 = vld [vmem:[%s5175_s20 + $0x1d0] sm:$0xff] }
  0xbf   : > { %v536_v30 = vpack.c.bf16 %v438_v27, %v436_v26  ;;  %v4436_v26 = vld [vmem:[%s7624_s5 + $0x7c] ss:$12 sps:$4 sm:$0xff]   ;;  %v472_v27 = vld [vmem:[%s5175_s20 + $0x2e0] sm:$0xff] }
  0xc1   : > { %805 = vmatpush1.bf16.msra.mxu0 %v4362_v32  ;;  %v525_v32 = vpack.c.bf16 %v415_v29, %v413_v28  ;;  %v441_v28 = vld [vmem:[%s5175_s20 + $0x1e8] sm:$0xff]  ;;  %v443_v29 = vld [vmem:[%s5175_s20 + $0x1f8] sm:$0xff] }
  0xc2   : > { %806 = vmatprep.subr.bf16.mxu0 %v4363_v33  ;;  %v4387_v33 = vld [vmem:[%s7622_s3 + $0x74] ss:$8 sps:$4 sm:$0xff]  }
  0xc3   : > { %1539 = vmatprep.subr.bf16.mxu1 %v4387_v33  ;;  %v4420_v33 = vld [vmem:[%s7624_s5 + $0x1c] ss:$12 sps:$4 sm:$0xff]  }
  0xc5   : > { %807 = vmatpush1.bf16.msra.mxu0 %v4365_v34  ;;  %v4389_v34 = vld [vmem:[%s7622_s3 + $0x70] ss:$8 sps:$4 sm:$0xff]  }
  0xc6   : > { %1540 = vmatpush1.bf16.msra.mxu1 %v4389_v34  ;;  %2407 = vmatprep.subr.bf16.mxu0 %v4416_v18  ;;  %v440_v34 = vld [vmem:[%s5175_s20 + $0x1e0] sm:$0xff] }
  0xc7   : > { %1541 = vmatprep.subr.bf16.mxu1 %v4390_v35  ;;  %v442_v35 = vld [vmem:[%s5175_s20 + $0x1f0] sm:$0xff]  ;;  %v468_v18 = vld [vmem:[%s5175_s20 + $0x2c0] sm:$0xff] }
  0xc8   : > { %809 = vmatmul.mubr.bf16.vlgmr.msra.gmra.mrb[0].mxu0 %v508_v39  ;;  %v419_v39 = vld [vmem:[%s5175_s20 + $0x138] sm:$0xff] }
  0xc9   : > { %818 = vmatprep.mubr.bf16.mxu0 %v511_v40  ;;  %v4392_v40 = vld [vmem:[%s7622_s3 + $0x80] ss:$8 sps:$4 sm:$0xff]   ;;  %v527_v42 = vpack.c.bf16 %v419_v39, %v417_v38  ;;  %2408 = vmatpush1.bf16.msra.mxu0 %v4414_v17  ;;  %v538_v38 = vpack.c.bf16 %v442_v35, %v440_v34  ;;  %v541_v39 = vpack.c.bf16 %v447_v37, %v445_v36  ;;  %v478_v34 = vld [vmem:[%s5175_s20 + $0x310] sm:$0xff]  ;;  %v483_v36 = vld [vmem:[%s5175_s20 + $0x338] sm:$0xff] }
  0xca   : > { %1542 = vmatpush1.bf16.msra.mxu1 %v4392_v40  ;;  %2409 = vmatprep.subr.bf16.mxu0 %v4420_v33  ;;  %v444_v40 = vld [vmem:[%s5175_s20 + $0x200] sm:$0xff]  ;;  %v481_v35 = vld [vmem:[%s5175_s20 + $0x328] sm:$0xff] }
  0xcb   : > { %1543 = vmatprep.subr.bf16.mxu1 %v4393_v43  ;;  %v451_v43 = vld [vmem:[%s5175_s20 + $0x238] sm:$0xff]  ;;  %v476_v33 = vld [vmem:[%s5175_s20 + $0x300] sm:$0xff] }
  0xcc   : > { %v556_v37 = vpack.c.bf16 %v478_v34, %v476_v33  ;;  %v4421_v34 = vld [vmem:[%s7624_s5 + $0x20] ss:$12 sps:$4 sm:$0xff]  }
  0xce   : > { %1544 = vmatpush1.bf16.msra.mxu1 %v4395_v44 }
  0xd0   : > { %819 = vmatmul.mubr.bf16.gmra.mrb[4].mxu0 %v510_v45  ;;  %v4396_v45 = vld [vmem:[%s7622_s3 + $0xa4] ss:$8 sps:$4 sm:$0xff]  }
  0xd1   : > { %828 = vmatprep.mubr.bf16.mxu0 %v513_v46  ;;  %v416_v46 = vld [vmem:[%s5175_s20 + $0x120] sm:$0xff]  ;;  %1545 = vmatprep.subr.bf16.mxu1 %v4396_v45 }
  0xd2   : > { %1546 = vmatpush1.bf16.msra.mxu1 %v4398_v50  ;;  %v453_v50 = vld [vmem:[%s5175_s20 + $0x248] sm:$0xff] }
  0xd3   : > { %1547 = vmatprep.subr.bf16.mxu1 %v4399_v53 }
  0xd6   : > { %1548 = vmatpush1.bf16.msra.mxu1 %v4401_v54  ;;  %v452_v54 = vld [vmem:[%s5175_s20 + $0x240] sm:$0xff] }
  0xd7   : > { %1549 = vmatprep.subr.bf16.mxu1 %v4402_v55  ;;  %v454_v55 = vld [vmem:[%s5175_s20 + $0x250] sm:$0xff] }
  0xd8   : > { %829 = vmatmul.mubr.bf16.gmra.mrb[8].mxu0 %v512_v51  ;;  %v526_v51 = vpack.c.bf16 %v418_v47, %v416_v46  ;;  %v4422_v46 = vld [vmem:[%s7624_s5 + $0x30] ss:$12 sps:$4 sm:$0xff]   ;;  %v4424_v47 = vld [vmem:[%s7624_s5 + $0x34] ss:$12 sps:$4 sm:$0xff]  }
  0xd9   : > { %838 = vmatprep.mubr.bf16.mxu0 %v515_v52  ;;  %v529_v52 = vpack.c.bf16 %v423_v49, %v421_v48  ;;  %v448_v48 = vld [vmem:[%s5175_s20 + $0x220] sm:$0xff]  ;;  %v450_v49 = vld [vmem:[%s5175_s20 + $0x230] sm:$0xff] }
  0xda   : > { %1550 = vmatpush1.bf16.msra.mxu1 %v4404_v60  ;;  %v4426_v60 = vld [vmem:[%s7624_s5 + $0x48] ss:$12 sps:$4 sm:$0xff]  }
  0xdb   : > { %1551 = vmatprep.subr.bf16.mxu1 %v4405_v63  ;;  %v458_v63 = vld [vmem:[%s5175_s20 + $0x270] sm:$0xff] }
  0xde   : > { %1552 = vmatpush1.bf16.msra.mxu1 %v4407_v0  ;;  %v461_v0 = vld [vmem:[%s5175_s20 + $0x288] sm:$0xff] }
  0xdf   : > { %1553 = vmatprep.subr.bf16.mxu1 %v4408_v6  ;;  %v465_v6 = vld [vmem:[%s5175_s20 + $0x2a8] sm:$0xff] }
  0xe0   : > { %839 = vmatmul.mubr.bf16.gmra.mrb[12].mxu0 %v514_v57  ;;  %v422_v57 = vld [vmem:[%s5175_s20 + $0x150] sm:$0xff] }
  0xe1   : > { %848 = vmatprep.mubr.bf16.mxu0 %v517_v58  ;;  %v425_v58 = vld [vmem:[%s5175_s20 + $0x168] sm:$0xff]  ;;  %v528_v61 = vpack.c.bf16 %v422_v57, %v420_v56  ;;  %v459_v57 = vld [vmem:[%s5175_s20 + $0x278] sm:$0xff] }
  0xe2   : > { %v531_v62 = vpack.c.bf16 %v427_v59, %v425_v58  ;;  %1554 = vmatpush1.bf16.msra.mxu1 %v4410_v8  ;;  %v457_v56 = vld [vmem:[%s5175_s20 + $0x268] sm:$0xff]  ;;  %v544_v58 = vpack.c.bf16 %v454_v55, %v452_v54  ;;  %v604_v55 = vld [vmem:[#allocation5] sm:$0x3] }
  0xe3   : > { %1555 = vmatprep.subr.bf16.mxu1 %v4411_v9  ;;  %v547_v59 = vpack.c.bf16 %v459_v57, %v457_v56 }
  0xe8   : > { %849 = vmatmul.mubr.bf16.gmra.mrb[16].mxu0 %v516_v1  ;;  %v424_v1 = vld [vmem:[%s5175_s20 + $0x160] sm:$0xff] }
  0xe9   : > { %858 = vmatprep.mubr.bf16.mxu0 %v519_v2  ;;  %v426_v2 = vld [vmem:[%s5175_s20 + $0x170] sm:$0xff] }
  0xea   : > { %v530_v5 = vpack.c.bf16 %v426_v2, %v424_v1  ;;  %v463_v1 = vld [vmem:[%s5175_s20 + $0x298] sm:$0xff] }
  0xeb   : > { %v549_v3 = vpack.c.bf16 %v463_v1, %v461_v0  ;;  %v493_v0 = vld [vmem:[%s5175_s20 + $0x388] sm:$0xff]  ;;  %v495_v1 = vld [vmem:[%s5175_s20 + $0x398] sm:$0xff] }
  0xf0   : > { %859 = vmatmul.mubr.bf16.gmra.mrb[20].mxu0 %v518_v11  ;;  %v430_v11 = vld [vmem:[%s5175_s20 + $0x190] sm:$0xff] }
  0xf1   : > { %868 = vmatprep.mubr.bf16.mxu0 %v521_v12  ;;  %v4413_v12 = vld [vmem:[%s7622_s3 + $0xf0] ss:$8 sps:$4 sm:$0xff]   ;;  %v532_v15 = vpack.c.bf16 %v430_v11, %v428_v10  ;;  %v4430_v10 = vld [vmem:[%s7624_s5 + $0x60] ss:$12 sps:$4 sm:$0xff]  }
  0xf2   : > { %1556 = vmatpush1.bf16.msra.mxu1 %v4413_v12  ;;  %v4432_v11 = vld [vmem:[%s7624_s5 + $0x64] ss:$12 sps:$4 sm:$0xff]  }
  0xf3   : > { %2760 = vmatprep.subr.bf16.mxu1 %v4930_v23  ;;  %v464_v12 = vld [vmem:[%s5175_s20 + $0x2a0] sm:$0xff] }
  0xf8   : > { %869 = vmatmul.mubr.bf16.gmra.mrb[24].mxu0 %v520_v21  ;;  %v437_v21 = vld [vmem:[%s5175_s20 + $0x1c8] sm:$0xff] }
  0xf9   : > { %878 = vmatprep.mubr.bf16.mxu0 %v523_v22  ;;  %v439_v22 = vld [vmem:[%s5175_s20 + $0x1d8] sm:$0xff] }
  0xfa   : > { %v537_v25 = vpack.c.bf16 %v439_v22, %v437_v21  ;;  %v475_v21 = vld [vmem:[%s5175_s20 + $0x2f8] sm:$0xff]  ;;  %v552_v22 = vpack.c.bf16 %v470_v19, %v468_v18  ;;  %v497_v19 = vld [vmem:[%s5175_s20 + $0x3a8] sm:$0xff] }
 0x100   : > { %879 = vmatmul.mubr.bf16.gmra.mrb[28].mxu0 %v522_v31  ;;  %v539_v31 = vpack.c.bf16 %v443_v29, %v441_v28  ;;  %v474_v28 = vld [vmem:[%s5175_s20 + $0x2f0] sm:$0xff]  ;;  %v477_v29 = vld [vmem:[%s5175_s20 + $0x308] sm:$0xff] }
 0x101   : > { %888 = vmatprep.mubr.bf16.mxu0 %v525_v32  ;;  %v4418_v32 = vld [vmem:[%s7624_s5 + $0x18] ss:$12 sps:$4 sm:$0xff]  }
 0x102   : > { %2410 = vmatpush1.bf16.msra.mxu0 %v4418_v32 }
 0x103   : > { %2411 = vmatprep.subr.bf16.mxu0 %v4424_v47 }
 0x106   : > { %2412 = vmatpush1.bf16.msra.mxu0 %v4422_v46  ;;  %v606_v46 = vlaneseq }
 0x108   : > { %889 = vmatmul.mubr.bf16.gmra.mrb[32].mxu0 %v524_v41  ;;  %v446_v41 = vld [vmem:[%s5175_s20 + $0x210] sm:$0xff] }
 0x109   : > { %898 = vmatprep.mubr.bf16.mxu0 %v527_v42  ;;  %v449_v42 = vld [vmem:[%s5175_s20 + $0x228] sm:$0xff]  ;;  %v540_v44 = vpack.c.bf16 %v446_v41, %v444_v40  ;;  %v4440_v40 = vld [vmem:[%s7624_s5 + $0x94] ss:$12 sps:$4 sm:$0xff]  }
 0x10a   : > { %v543_v45 = vpack.c.bf16 %v451_v43, %v449_v42  ;;  %v480_v41 = vld [vmem:[%s5175_s20 + $0x320] sm:$0xff]  ;;  %v482_v42 = vld [vmem:[%s5175_s20 + $0x330] sm:$0xff]  ;;  %v485_v43 = vld [vmem:[%s5175_s20 + $0x348] sm:$0xff] }
 0x110   : > { %899 = vmatmul.mubr.bf16.gmra.mrb[36].mxu0 %v526_v51  ;;  %v455_v51 = vld [vmem:[%s5175_s20 + $0x258] sm:$0xff] }
 0x111   : > { %908 = vmatprep.mubr.bf16.mxu0 %v529_v52  ;;  %v542_v52 = vpack.c.bf16 %v450_v49, %v448_v48  ;;  %v545_v53 = vpack.c.bf16 %v455_v51, %v453_v50  ;;  %v5530_v48 = vshrl.u32 %v606_v46, 7  ;;  %v484_v49 = vld [vmem:[%s5175_s20 + $0x340] sm:$0xff]  ;;  %v486_v50 = vld [vmem:[%s5175_s20 + $0x350] sm:$0xff]  ;;  %v489_v51 = vld [vmem:[%s5175_s20 + $0x368] sm:$0xff] }
 0x113   : > { %v5537_v54 = vsub.s32 0, %v5530_v48  ;;  %v5540_v56 = vsub.s32 1, %v5530_v48 }
 0x118   : > { %909 = vmatmul.mubr.bf16.gmra.mrb[40].mxu0 %v528_v61  ;;  %v4428_v61 = vld [vmem:[%s7624_s5 + $0x4c] ss:$12 sps:$4 sm:$0xff]  }
 0x119   : > { %918 = vmatprep.mubr.bf16.mxu0 %v531_v62  ;;  %v456_v62 = vld [vmem:[%s5175_s20 + $0x260] sm:$0xff]  ;;  %2413 = vmatprep.subr.bf16.mxu0 %v4428_v61  ;;  %v5552_v61 = vrot.slane %v604_v55, %v5540_v56 }
 0x11a   : > { %2414 = vmatpush1.bf16.msra.mxu0 %v4426_v60  ;;  %v546_v2 = vpack.c.bf16 %v458_v63, %v456_v62  ;;  %v5549_v60 = vrot.slane %v604_v55, %v5537_v54  ;;  %v488_v62 = vld [vmem:[%s5175_s20 + $0x360] sm:$0xff]  ;;  %v490_v63 = vld [vmem:[%s5175_s20 + $0x370] sm:$0xff] }
 0x11b   : > { %2415 = vmatprep.subr.bf16.mxu0 %v4432_v11 }
 0x11e   : > { %2416 = vmatpush1.bf16.msra.mxu0 %v4430_v10 }
 0x11f   : > { %2417 = vmatprep.subr.bf16.mxu0 %v4436_v26 }
 0x120   : > { %919 = vmatmul.mubr.bf16.gmra.mrb[44].mxu0 %v530_v5  ;;  %v462_v5 = vld [vmem:[%s5175_s20 + $0x290] sm:$0xff] }
 0x121   : > { %928 = vmatprep.mubr.bf16.mxu0 %v533_v7  ;;  %v467_v7 = vld [vmem:[%s5175_s20 + $0x2b8] sm:$0xff]  ;;  %v548_v8 = vpack.c.bf16 %v462_v5, %v460_v4  ;;  %v562_v5 = vpack.c.bf16 %v490_v63, %v488_v62 }
 0x122   : > { %v551_v9 = vpack.c.bf16 %v467_v7, %v465_v6  ;;  %v4429_v63 = vld [vmem:[%s7624_s5 + $0x50] ss:$12 sps:$4 sm:$0xff]  }
 0x128   : > { %929 = vmatmul.mubr.bf16.gmra.mrb[48].mxu0 %v532_v15  ;;  %v471_v15 = vld [vmem:[%s5175_s20 + $0x2d8] sm:$0xff] }
 0x129   : > { %938 = vmatprep.mubr.bf16.mxu0 %v535_v16  ;;  %v550_v16 = vpack.c.bf16 %v466_v13, %v464_v12  ;;  %v553_v17 = vpack.c.bf16 %v471_v15, %v469_v14 }
 0x130   : > { %939 = vmatmul.mubr.bf16.gmra.mrb[52].mxu0 %v534_v24  ;;  %v555_v24 = vpack.c.bf16 %v475_v21, %v473_v20  ;;  %v499_v20 = vld [vmem:[%s5175_s20 + $0x3b8] sm:$0xff] }
 0x131   : > { %948 = vmatprep.mubr.bf16.mxu0 %v537_v25  ;;  %v4434_v25 = vld [vmem:[%s7624_s5 + $0x78] ss:$12 sps:$4 sm:$0xff]  }
 0x132   : > { %2418 = vmatpush1.bf16.msra.mxu0 %v4434_v25 }
 0x133   : > { %2419 = vmatprep.subr.bf16.mxu0 %v4440_v40 }
 0x138   : > { %949 = vmatmul.mubr.bf16.gmra.mrb[56].mxu0 %v536_v30  ;;  %v479_v30 = vld [vmem:[%s5175_s20 + $0x318] sm:$0xff] }
 0x139   : > { %958 = vmatprep.mubr.bf16.mxu0 %v539_v31  ;;  %v554_v31 = vpack.c.bf16 %v474_v28, %v472_v27  ;;  %v557_v32 = vpack.c.bf16 %v479_v30, %v477_v29  ;;  %v567_v30 = vpack.c.bf16 %v499_v20, %v497_v19 }
 0x140   : > { %959 = vmatmul.mubr.bf16.gmra.mrb[60].mxu0 %v538_v38  ;;  %v559_v38 = vpack.c.bf16 %v483_v36, %v481_v35  ;;  %v4446_v35 = vld [vmem:[%s7624_s5 + $0xc0] ss:$12 sps:$4 sm:$0xff]   ;;  %v4448_v36 = vld [vmem:[%s7624_s5 + $0xc4] ss:$12 sps:$4 sm:$0xff]  }
 0x141   : > { %968 = vmatprep.mubr.bf16.mxu0 %v541_v39  ;;  %v4438_v39 = vld [vmem:[%s7624_s5 + $0x90] ss:$12 sps:$4 sm:$0xff]  }
 0x142   : > { %2420 = vmatpush1.bf16.msra.mxu0 %v4438_v39 }
 0x148   : > { %969 = vmatmul.mubr.bf16.gmra.mrb[64].mxu0 %v540_v44  ;;  %v487_v44 = vld [vmem:[%s5175_s20 + $0x358] sm:$0xff] }
 0x149   : > { %978 = vmatprep.mubr.bf16.mxu0 %v543_v45  ;;  %v558_v45 = vpack.c.bf16 %v482_v42, %v480_v41  ;;  %v561_v47 = vpack.c.bf16 %v487_v44, %v485_v43  ;;  %v496_v41 = vld [vmem:[%s5175_s20 + $0x3a0] sm:$0xff]  ;;  %v498_v42 = vld [vmem:[%s5175_s20 + $0x3b0] sm:$0xff]  ;;  %v501_v44 = vld [vmem:[%s5175_s20 + $0x3c8] sm:$0xff] }
 0x150   : > { %979 = vmatmul.mubr.bf16.gmra.mrb[68].mxu0 %v542_v52  ;;  %v491_v52 = vld [vmem:[%s5175_s20 + $0x378] sm:$0xff] }
 0x151   : > { %988 = vmatprep.mubr.bf16.mxu0 %v545_v53  ;;  %v560_v53 = vpack.c.bf16 %v486_v50, %v484_v49  ;;  %v563_v57 = vpack.c.bf16 %v491_v52, %v489_v51  ;;  %v4425_v49 = vld [vmem:[%s7624_s5 + $0x38] ss:$12 sps:$4 sm:$0xff]   ;;  %v566_v52 = vpack.c.bf16 %v498_v42, %v496_v41 }
 0x158   : > { %989 = vmatmul.mubr.bf16.gmra.mrb[72].mxu0 %v544_v58  ;;  %v4442_v58 = vld [vmem:[%s7624_s5 + $0xa8] ss:$12 sps:$4 sm:$0xff]  }
 0x159   : > { %998 = vmatprep.mubr.bf16.mxu0 %v547_v59  ;;  %v4444_v59 = vld [vmem:[%s7624_s5 + $0xac] ss:$12 sps:$4 sm:$0xff]  }
 0x15a   : > { %2421 = vmatprep.subr.bf16.mxu0 %v4444_v59 }
 0x15b   : > { %2422 = vmatpush1.bf16.msra.mxu0 %v4442_v58 }
 0x15c   : > { %2423 = vmatprep.subr.bf16.mxu0 %v4448_v36 }
 0x15f   : > { %2424 = vmatpush1.bf16.msra.mxu0 %v4446_v35 }
 0x160   : > { %999 = vmatmul.mubr.bf16.gmra.mrb[76].mxu0 %v546_v2 }
 0x161   : > { %1008 = vmatprep.mubr.bf16.mxu0 %v549_v3 }
 0x168   : > { %1009 = vmatmul.mubr.bf16.gmra.mrb[80].mxu0 %v548_v8  ;;  %v565_v8 = vpack.c.bf16 %v495_v1, %v493_v0 }
 0x169   : > { %1018 = vmatprep.mubr.bf16.mxu0 %v551_v9 }
 0x170   : > { %1019 = vmatmul.mubr.bf16.gmra.mrb[84].mxu0 %v550_v16  ;;  %v492_v16 = vld [vmem:[%s5175_s20 + $0x380] sm:$0xff] }
 0x171   : > { %1028 = vmatprep.mubr.bf16.mxu0 %v553_v17  ;;  %v494_v17 = vld [vmem:[%s5175_s20 + $0x390] sm:$0xff] }
 0x172   : > { %v564_v27 = vpack.c.bf16 %v494_v17, %v492_v16 }
 0x178   : > { %1029 = vmatmul.mubr.bf16.gmra.mrb[88].mxu0 %v552_v22 }
 0x179   : > { %1038 = vmatprep.mubr.bf16.mxu0 %v555_v24  ;;  %v4417_v24 = vld [vmem:[%s7624_s5 + $0x8] ss:$12 sps:$4 sm:$0xff]  }
 0x180   : > { %1039 = vmatmul.mubr.bf16.gmra.mrb[92].mxu0 %v554_v31 }
 0x181   : > { %1048 = vmatprep.mubr.bf16.mxu0 %v557_v32 }
 0x188   : > { %1049 = vmatmul.mubr.bf16.gmra.mrb[96].mxu0 %v556_v37 }
 0x189   : > { %1058 = vmatprep.mubr.bf16.mxu0 %v559_v38 }
 0x190   : > { %1059 = vmatmul.mubr.bf16.gmra.mrb[100].mxu0 %v558_v45  ;;  %v503_v45 = vld [vmem:[%s5175_s20 + $0x3d8] sm:$0xff] }
 0x191   : > { %1068 = vmatprep.mubr.bf16.mxu0 %v561_v47 }
 0x198   : > { %1069 = vmatmul.mubr.bf16.gmra.mrb[104].mxu0 %v560_v53 }
 0x199   : > { %1078 = vmatprep.mubr.bf16.mxu0 %v563_v57  ;;  %v569_v57 = vpack.c.bf16 %v503_v45, %v501_v44 }
 0x19b   : > { %v810_v2 = vpop.f32.mrb[0].mxu0 }
 0x19c   : > { %v811_v3 = vadd.f32 %v810_v2, %v5549_v60  ;;  %v812_v4 = vpop.f32.mrb[1].mxu0 }
 0x19d   : > { %v813_v6 = vadd.f32 %v812_v4, %v5552_v61  ;;  %v814_v7 = vpop.f32.mrb[2].mxu0  ;;  %v500_v4 = vld [vmem:[%s5175_s20 + $0x3c0] sm:$0xff] }
 0x19e   : > { %v815_v9 = vadd.f32 %v814_v7, %v5549_v60  ;;  %v816_v10 = vpop.f32.mrb[3].mxu0  ;;  %v1129_v12 = vmax.f32 %v811_v3, 0.0  ;;  %v505_v7 = vld [vmem:[%s5175_s20 + $0x3e8] sm:$0xff] }
 0x19f   : > { %v817_v11 = vadd.f32 %v816_v10, %v5552_v61  ;;  %v1130_v14 = vmax.f32 %v813_v6, 0.0 }
 0x1a0   : > { %v1131_v13 = vmax.f32 %v815_v9, 0.0  ;;  %1079 = vmatmul.mubr.bf16.gmra.mrb[108].mxu0 %v562_v5  ;;  %v502_v5 = vld [vmem:[%s5175_s20 + $0x3d0] sm:$0xff] }
 0x1a1   : > { %v1132_v15 = vmax.f32 %v817_v11, 0.0  ;;  %1088 = vmatprep.mubr.bf16.mxu0 %v565_v8  ;;  %v507_v8 = vld [vmem:[%s5175_s20 + $0x3f8] sm:$0xff]  ;;  %v4433_v11 = vld [vmem:[%s7624_s5 + $0x68] ss:$12 sps:$4 sm:$0xff]  }
 0x1a2   : > { %v1257_v18 = vpack.c.bf16 %v1131_v13, %v1129_v12  ;;  %v571_v17 = vpack.c.bf16 %v507_v8, %v505_v7 }
 0x1a3   : > { %v820_v21 = vpop.f32.mrb[4].mxu0  ;;  %v1258_v22 = vpack.c.bf16 %v1132_v15, %v1130_v14  ;;  %v568_v14 = vpack.c.bf16 %v502_v5, %v500_v4 }
 0x1a4   : > { %v821_v25 = vadd.f32 %v820_v21, %v5549_v60  ;;  %v822_v26 = vpop.f32.mrb[5].mxu0  ;;  %v4437_v21 = vld [vmem:[%s7624_s5 + $0x80] ss:$12 sps:$4 sm:$0xff]  }
 0x1a5   : > { %v823_v28 = vadd.f32 %v822_v26, %v5552_v61  ;;  %v824_v29 = vpop.f32.mrb[6].mxu0  ;;  %1557 = vmatprep.mubr.bf16.mxu1 %v1258_v22  ;;  %v4450_v22 = vld [vmem:[%s7624_s5 + $0xd8] ss:$12 sps:$4 sm:$0xff]  }
 0x1a6   : > { %v825_v31 = vadd.f32 %v824_v29, %v5549_v60  ;;  %v826_v32 = vpop.f32.mrb[7].mxu0  ;;  %1558 = vmatmul.mubr.bf16.vlgmr.msra.gmra.mrb[0].mxu1 %v1257_v18  ;;  %v1133_v37 = vmax.f32 %v821_v25, 0.0  ;;  %v504_v29 = vld [vmem:[%s5175_s20 + $0x3e0] sm:$0xff] }
 0x1a7   : > { %v827_v33 = vadd.f32 %v826_v32, %v5552_v61  ;;  %2761 = vmatpush1.bf16.msra.mxu1 %v4417_v24  ;;  %v1134_v39 = vmax.f32 %v823_v28, 0.0  ;;  %v4452_v24 = vld [vmem:[%s7624_s5 + $0xdc] ss:$12 sps:$4 sm:$0xff]  }
 0x1a8   : > { %v1135_v38 = vmax.f32 %v825_v31, 0.0  ;;  %1089 = vmatmul.mubr.bf16.gmra.mrb[112].mxu0 %v564_v27  ;;  %2762 = vmatprep.subr.bf16.mxu1 %v4930_v23 }
 0x1a9   : > { %v1136_v40 = vmax.f32 %v827_v33, 0.0  ;;  %1098 = vmatprep.mubr.bf16.mxu0 %v567_v30  ;;  %v506_v30 = vld [vmem:[%s5175_s20 + $0x3f0] sm:$0xff]  ;;  %2425 = vmatprep.subr.bf16.mxu0 %v4452_v24 }
 0x1aa   : > { %v1259_v43 = vpack.c.bf16 %v1135_v38, %v1133_v37  ;;  %2426 = vmatpush1.bf16.msra.mxu0 %v4450_v22  ;;  %v570_v37 = vpack.c.bf16 %v506_v30, %v504_v29 }
 0x1ab   : > { %v1260_v46 = vpack.c.bf16 %v1136_v40, %v1134_v39  ;;  %v830_v47 = vpop.f32.mrb[8].mxu0  ;;  %2763 = vmatpush1.bf16.msra.mxu1 %v4421_v34  ;;  %v4441_v34 = vld [vmem:[%s7624_s5 + $0x98] ss:$12 sps:$4 sm:$0xff]  }
 0x1ac   : > { %v831_v50 = vadd.f32 %v830_v47, %v5549_v60  ;;  %v832_v51 = vpop.f32.mrb[9].mxu0  ;;  %2764 = vmatprep.subr.bf16.mxu1 %v4930_v23 }
 0x1ad   : > { %v833_v53 = vadd.f32 %v832_v51, %v5552_v61  ;;  %v834_v55 = vpop.f32.mrb[10].mxu0  ;;  %1567 = vmatprep.mubr.bf16.mxu1 %v1260_v46 }
 0x1ae   : > { %v835_v58 = vadd.f32 %v834_v55, %v5549_v60  ;;  %v836_v59 = vpop.f32.mrb[11].mxu0  ;;  %1568 = vmatmul.mubr.bf16.gmra.mrb[4].mxu1 %v1259_v43  ;;  %v1137_v0 = vmax.f32 %v831_v50, 0.0  ;;  %v4445_v43 = vld [vmem:[%s7624_s5 + $0xb0] ss:$12 sps:$4 sm:$0xff]  }
 0x1af   : > { %v837_v62 = vadd.f32 %v836_v59, %v5552_v61  ;;  %2765 = vmatpush1.bf16.msra.mxu1 %v4425_v49  ;;  %v1138_v2 = vmax.f32 %v833_v53, 0.0 }
 0x1b0   : > { %v1139_v1 = vmax.f32 %v835_v58, 0.0  ;;  %1099 = vmatmul.mubr.bf16.gmra.mrb[116].mxu0 %v566_v52  ;;  %2766 = vmatprep.subr.bf16.mxu1 %v4930_v23  ;;  %v4449_v52 = vld [vmem:[%s7624_s5 + $0xc8] ss:$12 sps:$4 sm:$0xff]  }
 0x1b1   : > { %v1140_v3 = vmax.f32 %v837_v62, 0.0  ;;  %1108 = vmatprep.mubr.bf16.mxu0 %v569_v57 }
 0x1b2   : > { %v1261_v6 = vpack.c.bf16 %v1139_v1, %v1137_v0  ;;  %v4453_v0 = vld [vmem:[%s7624_s5 + $0xe0] ss:$12 sps:$4 sm:$0xff]   ;;  %v4454_v1 = vld [vmem:[%s7624_s5 + $0xf0] ss:$12 sps:$4 sm:$0xff]  }
 0x1b3   : > { %v1262_v9 = vpack.c.bf16 %v1140_v3, %v1138_v2  ;;  %v840_v10 = vpop.f32.mrb[12].mxu0  ;;  %2767 = vmatpush1.bf16.msra.mxu1 %v4429_v63  ;;  %v4456_v2 = vld [vmem:[%s7624_s5 + $0xf4] ss:$12 sps:$4 sm:$0xff]  }
 0x1b4   : > { %v841_v12 = vadd.f32 %v840_v10, %v5549_v60  ;;  %v842_v13 = vpop.f32.mrb[13].mxu0  ;;  %2768 = vmatprep.subr.bf16.mxu1 %v4930_v23  ;;  %2427 = vmatprep.subr.bf16.mxu0 %v4456_v2  ;;  %v4457_v10 = vld [vmem:[%s7624_s5 + $0xf8] ss:$12 sps:$4 sm:$0xff]  }
 0x1b5   : > { %v843_v15 = vadd.f32 %v842_v13, %v5552_v61  ;;  %v844_v16 = vpop.f32.mrb[14].mxu0  ;;  %1577 = vmatprep.mubr.bf16.mxu1 %v1262_v9  ;;  %2428 = vmatpush1.bf16.msra.mxu0 %v4454_v1 }
 0x1b6   : > { %v845_v18 = vadd.f32 %v844_v16, %v5549_v60  ;;  %v846_v19 = vpop.f32.mrb[15].mxu0  ;;  %1578 = vmatmul.mubr.bf16.gmra.mrb[8].mxu1 %v1261_v6  ;;  %v1141_v25 = vmax.f32 %v841_v12, 0.0 }
 0x1b7   : > { %v847_v20 = vadd.f32 %v846_v19, %v5552_v61  ;;  %2769 = vmatpush1.bf16.msra.mxu1 %v4433_v11  ;;  %v1142_v27 = vmax.f32 %v843_v15, 0.0 }
 0x1b8   : > { %v1143_v26 = vmax.f32 %v845_v18, 0.0  ;;  %1109 = vmatmul.mubr.bf16.gmra.mrb[120].mxu0 %v568_v14  ;;  %2770 = vmatprep.subr.bf16.mxu1 %v4930_v23 }
 0x1b9   : > { %v1144_v28 = vmax.f32 %v847_v20, 0.0  ;;  %1118 = vmatprep.mubr.bf16.mxu0 %v571_v17 }
 0x1ba   : > { %v1263_v31 = vpack.c.bf16 %v1143_v26, %v1141_v25 }
 0x1bb   : > { %v1264_v32 = vpack.c.bf16 %v1144_v28, %v1142_v27  ;;  %v850_v33 = vpop.f32.mrb[16].mxu0  ;;  %2771 = vmatpush1.bf16.msra.mxu1 %v4437_v21 }
 0x1bc   : > { %v851_v35 = vadd.f32 %v850_v33, %v5549_v60  ;;  %v852_v36 = vpop.f32.mrb[17].mxu0  ;;  %2772 = vmatprep.subr.bf16.mxu1 %v4930_v23  ;;  %v4458_v33 = vld [vmem:[%s7624_s5 + $0x108] ss:$12 sps:$4 sm:$0xff]  }
 0x1bd   : > { %v853_v38 = vadd.f32 %v852_v36, %v5552_v61  ;;  %v854_v39 = vpop.f32.mrb[18].mxu0  ;;  %1587 = vmatprep.mubr.bf16.mxu1 %v1264_v32 }
 0x1be   : > { %v855_v40 = vadd.f32 %v854_v39, %v5549_v60  ;;  %v856_v41 = vpop.f32.mrb[19].mxu0  ;;  %1588 = vmatmul.mubr.bf16.gmra.mrb[12].mxu1 %v1263_v31  ;;  %v1145_v44 = vmax.f32 %v851_v35, 0.0 }
 0x1bf   : > { %v857_v42 = vadd.f32 %v856_v41, %v5552_v61  ;;  %2773 = vmatpush1.bf16.msra.mxu1 %v4441_v34  ;;  %v1146_v46 = vmax.f32 %v853_v38, 0.0  ;;  %v4460_v34 = vld [vmem:[%s7624_s5 + $0x10c] ss:$12 sps:$4 sm:$0xff]  }
 0x1c0   : > { %v1147_v45 = vmax.f32 %v855_v40, 0.0  ;;  %1119 = vmatmul.mubr.bf16.gmra.mrb[124].mxu0 %v570_v37  ;;  %2774 = vmatprep.subr.bf16.mxu1 %v4930_v23 }
 0x1c1   : > { %v1148_v47 = vmax.f32 %v857_v42, 0.0  ;;  %2429 = vmatprep.subr.bf16.mxu0 %v4460_v34  ;;  %v4461_v42 = vld [vmem:[%s7624_s5 + $0x110] ss:$12 sps:$4 sm:$0xff]  }
 0x1c2   : > { %v1265_v49 = vpack.c.bf16 %v1147_v45, %v1145_v44  ;;  %2430 = vmatpush1.bf16.msra.mxu0 %v4458_v33 }
 0x1c3   : > { %v1266_v50 = vpack.c.bf16 %v1148_v47, %v1146_v46  ;;  %v860_v51 = vpop.f32.mrb[20].mxu0  ;;  %2775 = vmatpush1.bf16.msra.mxu1 %v4445_v43 }
 0x1c4   : > { %v861_v53 = vadd.f32 %v860_v51, %v5549_v60  ;;  %v862_v55 = vpop.f32.mrb[21].mxu0  ;;  %2776 = vmatprep.subr.bf16.mxu1 %v4930_v23 }
 0x1c5   : > { %v863_v57 = vadd.f32 %v862_v55, %v5552_v61  ;;  %v864_v58 = vpop.f32.mrb[22].mxu0  ;;  %1597 = vmatprep.mubr.bf16.mxu1 %v1266_v50 }
 0x1c6   : > { %v865_v59 = vadd.f32 %v864_v58, %v5549_v60  ;;  %v866_v62 = vpop.f32.mrb[23].mxu0  ;;  %1598 = vmatmul.mubr.bf16.gmra.mrb[16].mxu1 %v1265_v49  ;;  %v1149_v3 = vmax.f32 %v861_v53, 0.0 }
 0x1c7   : > { %v867_v63 = vadd.f32 %v866_v62, %v5552_v61  ;;  %2777 = vmatpush1.bf16.msra.mxu1 %v4449_v52  ;;  %v1150_v5 = vmax.f32 %v863_v57, 0.0 }
 0x1c8   : > { %v1151_v4 = vmax.f32 %v865_v59, 0.0  ;;  %2778 = vmatprep.subr.bf16.mxu1 %v4930_v23 }
 0x1c9   : > { %v1152_v6 = vmax.f32 %v867_v63, 0.0 }
 0x1ca   : > { %v1267_v7 = vpack.c.bf16 %v1151_v4, %v1149_v3 }
 0x1cb   : > { %v1268_v8 = vpack.c.bf16 %v1152_v6, %v1150_v5  ;;  %v870_v9 = vpop.f32.mrb[24].mxu0  ;;  %2779 = vmatpush1.bf16.msra.mxu1 %v4453_v0  ;;  %v4462_v5 = vld [vmem:[%s7624_s5 + $0x120] ss:$12 sps:$4 sm:$0xff]   ;;  %v4464_v6 = vld [vmem:[%s7624_s5 + $0x124] ss:$12 sps:$4 sm:$0xff]  }
 0x1cc   : > { %v871_v11 = vadd.f32 %v870_v9, %v5549_v60  ;;  %v872_v12 = vpop.f32.mrb[25].mxu0  ;;  %2780 = vmatprep.subr.bf16.mxu1 %v4930_v23  ;;  %2431 = vmatprep.subr.bf16.mxu0 %v4464_v6 }
 0x1cd   : > { %v873_v13 = vadd.f32 %v872_v12, %v5552_v61  ;;  %v874_v14 = vpop.f32.mrb[26].mxu0  ;;  %1607 = vmatprep.mubr.bf16.mxu1 %v1268_v8  ;;  %2432 = vmatpush1.bf16.msra.mxu0 %v4462_v5 }
 0x1ce   : > { %v875_v15 = vadd.f32 %v874_v14, %v5549_v60  ;;  %v876_v16 = vpop.f32.mrb[27].mxu0  ;;  %1608 = vmatmul.mubr.bf16.gmra.mrb[20].mxu1 %v1267_v7  ;;  %v1153_v18 = vmax.f32 %v871_v11, 0.0  ;;  %v4465_v14 = vld [vmem:[%s7624_s5 + $0x128] ss:$12 sps:$4 sm:$0xff]  }
 0x1cf   : > { %v877_v17 = vadd.f32 %v876_v16, %v5552_v61  ;;  %2781 = vmatpush1.bf16.msra.mxu1 %v4457_v10  ;;  %v1154_v20 = vmax.f32 %v873_v13, 0.0 }
 0x1d0   : > { %v1155_v19 = vmax.f32 %v875_v15, 0.0  ;;  %2782 = vmatprep.subr.bf16.mxu1 %v4930_v23 }
 0x1d1   : > { %v1156_v21 = vmax.f32 %v877_v17, 0.0 }
 0x1d2   : > { %v1269_v22 = vpack.c.bf16 %v1155_v19, %v1153_v18 }
 0x1d3   : > { %v1270_v24 = vpack.c.bf16 %v1156_v21, %v1154_v20  ;;  %v880_v25 = vpop.f32.mrb[28].mxu0  ;;  %2783 = vmatpush1.bf16.msra.mxu1 %v4461_v42 }
 0x1d4   : > { %v881_v26 = vadd.f32 %v880_v25, %v5549_v60  ;;  %v882_v27 = vpop.f32.mrb[29].mxu0  ;;  %2784 = vmatprep.subr.bf16.mxu1 %v4930_v23 }
 0x1d5   : > { %v883_v28 = vadd.f32 %v882_v27, %v5552_v61  ;;  %v884_v29 = vpop.f32.mrb[30].mxu0  ;;  %1617 = vmatprep.mubr.bf16.mxu1 %v1270_v24 }
 0x1d6   : > { %v885_v30 = vadd.f32 %v884_v29, %v5549_v60  ;;  %v886_v31 = vpop.f32.mrb[31].mxu0  ;;  %1618 = vmatmul.mubr.bf16.gmra.mrb[24].mxu1 %v1269_v22  ;;  %v1157_v35 = vmax.f32 %v881_v26, 0.0 }
 0x1d7   : > { %v887_v32 = vadd.f32 %v886_v31, %v5552_v61  ;;  %v1158_v37 = vmax.f32 %v883_v28, 0.0  ;;  %2785 = vmatpush1.bf16.msra.mxu1 %v4465_v14 }
 0x1d8   : > { %v1159_v36 = vmax.f32 %v885_v30, 0.0  ;;  %2786 = vmatprep.subr.bf16.mxu1 %v4930_v23 }
 0x1d9   : > { %v1160_v38 = vmax.f32 %v887_v32, 0.0 }
 0x1da   : > { %v1271_v39 = vpack.c.bf16 %v1159_v36, %v1157_v35  ;;  %v4468_v36 = vld [vmem:[%s7624_s5 + $0x13c] ss:$12 sps:$4 sm:$0xff]  }
 0x1db   : > { %v1272_v40 = vpack.c.bf16 %v1160_v38, %v1158_v37  ;;  %v890_v41 = vpop.f32.mrb[32].mxu0  ;;  %v4466_v38 = vld [vmem:[%s7624_s5 + $0x138] ss:$12 sps:$4 sm:$0xff]   ;;  %2433 = vmatprep.subr.bf16.mxu0 %v4468_v36 }
 0x1dc   : > { %v891_v43 = vadd.f32 %v890_v41, %v5549_v60  ;;  %v892_v44 = vpop.f32.mrb[33].mxu0  ;;  %2434 = vmatpush1.bf16.msra.mxu0 %v4466_v38 }
 0x1dd   : > { %v893_v45 = vadd.f32 %v892_v44, %v5552_v61  ;;  %v894_v46 = vpop.f32.mrb[34].mxu0  ;;  %1627 = vmatprep.mubr.bf16.mxu1 %v1272_v40  ;;  %v4472_v44 = vld [vmem:[%s7624_s5 + $0x154] ss:$12 sps:$4 sm:$0xff]  }
 0x1de   : > { %v895_v47 = vadd.f32 %v894_v46, %v5549_v60  ;;  %v896_v49 = vpop.f32.mrb[35].mxu0  ;;  %1628 = vmatmul.mubr.bf16.gmra.mrb[28].mxu1 %v1271_v39  ;;  %v1161_v51 = vmax.f32 %v891_v43, 0.0  ;;  %2435 = vmatprep.subr.bf16.mxu0 %v4472_v44 }
 0x1df   : > { %v897_v50 = vadd.f32 %v896_v49, %v5552_v61  ;;  %v1162_v53 = vmax.f32 %v893_v45, 0.0  ;;  %v4470_v49 = vld [vmem:[%s7624_s5 + $0x150] ss:$12 sps:$4 sm:$0xff]  }
 0x1e0   : > { %v1163_v52 = vmax.f32 %v895_v47, 0.0  ;;  %v4469_v47 = vld [vmem:[%s7624_s5 + $0x140] ss:$12 sps:$4 sm:$0xff]   ;;  %2436 = vmatpush1.bf16.msra.mxu0 %v4470_v49 }
 0x1e1   : > { %v1164_v55 = vmax.f32 %v897_v50, 0.0  ;;  %2787 = vmatpush1.bf16.msra.mxu1 %v4469_v47 }
 0x1e2   : > { %v1273_v57 = vpack.c.bf16 %v1163_v52, %v1161_v51  ;;  %2788 = vmatprep.subr.bf16.mxu1 %v4930_v23 }
 0x1e3   : > { %v1274_v58 = vpack.c.bf16 %v1164_v55, %v1162_v53  ;;  %v900_v59 = vpop.f32.mrb[36].mxu0 }
 0x1e4   : > { %v901_v62 = vadd.f32 %v900_v59, %v5549_v60  ;;  %v902_v63 = vpop.f32.mrb[37].mxu0 }
 0x1e5   : > { %v903_v0 = vadd.f32 %v902_v63, %v5552_v61  ;;  %v904_v1 = vpop.f32.mrb[38].mxu0  ;;  %1637 = vmatprep.mubr.bf16.mxu1 %v1274_v58  ;;  %v4475_v58 = vld [vmem:[%s7624_s5 + $0x16c] ss:$12 sps:$4 sm:$0xff]  }
 0x1e6   : > { %v905_v2 = vadd.f32 %v904_v1, %v5549_v60  ;;  %v906_v3 = vpop.f32.mrb[39].mxu0  ;;  %1638 = vmatmul.mubr.bf16.gmra.mrb[32].mxu1 %v1273_v57  ;;  %v1165_v7 = vmax.f32 %v901_v62, 0.0  ;;  %v4473_v62 = vld [vmem:[%s7624_s5 + $0x168] ss:$12 sps:$4 sm:$0xff]   ;;  %2437 = vmatprep.subr.bf16.mxu0 %v4475_v58 }
 0x1e7   : > { %v907_v4 = vadd.f32 %v906_v3, %v5552_v61  ;;  %v1166_v9 = vmax.f32 %v903_v0, 0.0  ;;  %2438 = vmatpush1.bf16.msra.mxu0 %v4473_v62 }
 0x1e8   : > { %v1167_v8 = vmax.f32 %v905_v2, 0.0 }
 0x1e9   : > { %v1168_v10 = vmax.f32 %v907_v4, 0.0 }
 0x1ea   : > { %v1275_v11 = vpack.c.bf16 %v1167_v8, %v1165_v7 }
 0x1eb   : > { %v1276_v12 = vpack.c.bf16 %v1168_v10, %v1166_v9  ;;  %v910_v13 = vpop.f32.mrb[40].mxu0 }
 0x1ec   : > { %v911_v15 = vadd.f32 %v910_v13, %v5549_v60  ;;  %v912_v16 = vpop.f32.mrb[41].mxu0 }
 0x1ed   : > { %v913_v17 = vadd.f32 %v912_v16, %v5552_v61  ;;  %v914_v18 = vpop.f32.mrb[42].mxu0  ;;  %1647 = vmatprep.mubr.bf16.mxu1 %v1276_v12 }
 0x1ee   : > { %v915_v19 = vadd.f32 %v914_v18, %v5549_v60  ;;  %v916_v20 = vpop.f32.mrb[43].mxu0  ;;  %1648 = vmatmul.mubr.bf16.gmra.mrb[36].mxu1 %v1275_v11  ;;  %v1169_v22 = vmax.f32 %v911_v15, 0.0 }
 0x1ef   : > { %v917_v21 = vadd.f32 %v916_v20, %v5552_v61  ;;  %v1170_v25 = vmax.f32 %v913_v17, 0.0  ;;  %v4476_v20 = vld [vmem:[%s7624_s5 + $0x158] ss:$12 sps:$4 sm:$0xff]  }
 0x1f0   : > { %v1171_v24 = vmax.f32 %v915_v19, 0.0  ;;  %2789 = vmatpush1.bf16.msra.mxu1 %v4476_v20 }
 0x1f1   : > { %v1172_v26 = vmax.f32 %v917_v21, 0.0  ;;  %2790 = vmatprep.subr.bf16.mxu1 %v4930_v23 }
 0x1f2   : > { %v1277_v27 = vpack.c.bf16 %v1171_v24, %v1169_v22 }
 0x1f3   : > { %v1278_v28 = vpack.c.bf16 %v1172_v26, %v1170_v25  ;;  %v920_v29 = vpop.f32.mrb[44].mxu0 }
 0x1f4   : > { %v921_v30 = vadd.f32 %v920_v29, %v5549_v60  ;;  %v922_v31 = vpop.f32.mrb[45].mxu0 }
 0x1f5   : > { %v923_v32 = vadd.f32 %v922_v31, %v5552_v61  ;;  %v924_v33 = vpop.f32.mrb[46].mxu0  ;;  %1657 = vmatprep.mubr.bf16.mxu1 %v1278_v28 }
 0x1f6   : > { %v925_v34 = vadd.f32 %v924_v33, %v5549_v60  ;;  %v926_v35 = vpop.f32.mrb[47].mxu0  ;;  %1658 = vmatmul.mubr.bf16.gmra.mrb[40].mxu1 %v1277_v27  ;;  %v1173_v39 = vmax.f32 %v921_v30, 0.0 }
 0x1f7   : > { %v927_v37 = vadd.f32 %v926_v35, %v5552_v61  ;;  %v1174_v41 = vmax.f32 %v923_v32, 0.0 }
 0x1f8   : > { %v1175_v40 = vmax.f32 %v925_v34, 0.0 }
 0x1f9   : > { %v1176_v42 = vmax.f32 %v927_v37, 0.0 }
 0x1fa   : > { %v1279_v43 = vpack.c.bf16 %v1175_v40, %v1173_v39 }
 0x1fb   : > { %v1280_v45 = vpack.c.bf16 %v1176_v42, %v1174_v41  ;;  %v930_v46 = vpop.f32.mrb[48].mxu0 }
 0x1fc   : > { %v931_v50 = vadd.f32 %v930_v46, %v5549_v60  ;;  %v932_v51 = vpop.f32.mrb[49].mxu0 }
 0x1fd   : > { %v933_v52 = vadd.f32 %v932_v51, %v5552_v61  ;;  %v934_v53 = vpop.f32.mrb[50].mxu0  ;;  %1667 = vmatprep.mubr.bf16.mxu1 %v1280_v45 }
 0x1fe   : > { %v935_v55 = vadd.f32 %v934_v53, %v5549_v60  ;;  %v936_v57 = vpop.f32.mrb[51].mxu0  ;;  %1668 = vmatmul.mubr.bf16.gmra.mrb[44].mxu1 %v1279_v43  ;;  %v1177_v63 = vmax.f32 %v931_v50, 0.0  ;;  %v4477_v50 = vld [vmem:[%s7624_s5 + $0x170] ss:$12 sps:$4 sm:$0xff]  }
 0x1ff   : > { %v937_v59 = vadd.f32 %v936_v57, %v5552_v61  ;;  %v1178_v1 = vmax.f32 %v933_v52, 0.0  ;;  %2791 = vmatpush1.bf16.msra.mxu1 %v4477_v50 }
 0x200   : > { %v1179_v0 = vmax.f32 %v935_v55, 0.0 }
 0x201   : > { %v1180_v2 = vmax.f32 %v937_v59, 0.0 }
 0x202   : > { %v1281_v3 = vpack.c.bf16 %v1179_v0, %v1177_v63 }
 0x203   : > { %v1282_v4 = vpack.c.bf16 %v1180_v2, %v1178_v1  ;;  %v940_v5 = vpop.f32.mrb[52].mxu0 }
 0x204   : > { %v941_v6 = vadd.f32 %v940_v5, %v5549_v60  ;;  %v942_v7 = vpop.f32.mrb[53].mxu0 }
 0x205   : > { %v943_v8 = vadd.f32 %v942_v7, %v5552_v61  ;;  %v944_v9 = vpop.f32.mrb[54].mxu0  ;;  %1677 = vmatprep.mubr.bf16.mxu1 %v1282_v4 }
 0x206   : > { %v945_v10 = vadd.f32 %v944_v9, %v5549_v60  ;;  %v946_v11 = vpop.f32.mrb[55].mxu0  ;;  %1678 = vmatmul.mubr.bf16.gmra.mrb[48].mxu1 %v1281_v3  ;;  %v1181_v13 = vmax.f32 %v941_v6, 0.0 }
 0x207   : > { %v947_v12 = vadd.f32 %v946_v11, %v5552_v61  ;;  %v1182_v15 = vmax.f32 %v943_v8, 0.0 }
 0x208   : > { %v1183_v14 = vmax.f32 %v945_v10, 0.0 }
 0x209   : > { %v1184_v16 = vmax.f32 %v947_v12, 0.0 }
 0x20a   : > { %v1283_v17 = vpack.c.bf16 %v1183_v14, %v1181_v13 }
 0x20b   : > { %v1284_v18 = vpack.c.bf16 %v1184_v16, %v1182_v15  ;;  %v950_v19 = vpop.f32.mrb[56].mxu0 }
 0x20c   : > { %v951_v21 = vadd.f32 %v950_v19, %v5549_v60  ;;  %v952_v22 = vpop.f32.mrb[57].mxu0 }
 0x20d   : > { %v953_v24 = vadd.f32 %v952_v22, %v5552_v61  ;;  %v954_v25 = vpop.f32.mrb[58].mxu0  ;;  %1687 = vmatprep.mubr.bf16.mxu1 %v1284_v18 }
 0x20e   : > { %v955_v26 = vadd.f32 %v954_v25, %v5549_v60  ;;  %v956_v27 = vpop.f32.mrb[59].mxu0  ;;  %1688 = vmatmul.mubr.bf16.gmra.mrb[52].mxu1 %v1283_v17  ;;  %v1185_v29 = vmax.f32 %v951_v21, 0.0 }
 0x20f   : > { %v957_v28 = vadd.f32 %v956_v27, %v5552_v61  ;;  %v1186_v31 = vmax.f32 %v953_v24, 0.0 }
 0x210   : > { %v1187_v30 = vmax.f32 %v955_v26, 0.0 }
 0x211   : > { %v1188_v32 = vmax.f32 %v957_v28, 0.0 }
 0x212   : > { %v1285_v33 = vpack.c.bf16 %v1187_v30, %v1185_v29 }
 0x213   : > { %v1286_v34 = vpack.c.bf16 %v1188_v32, %v1186_v31  ;;  %v960_v35 = vpop.f32.mrb[60].mxu0 }
 0x214   : > { %v961_v36 = vadd.f32 %v960_v35, %v5549_v60  ;;  %v962_v37 = vpop.f32.mrb[61].mxu0 }
 0x215   : > { %v963_v38 = vadd.f32 %v962_v37, %v5552_v61  ;;  %v964_v39 = vpop.f32.mrb[62].mxu0  ;;  %1697 = vmatprep.mubr.bf16.mxu1 %v1286_v34 }
 0x216   : > { %v965_v40 = vadd.f32 %v964_v39, %v5549_v60  ;;  %v966_v41 = vpop.f32.mrb[63].mxu0  ;;  %1698 = vmatmul.mubr.bf16.gmra.mrb[56].mxu1 %v1285_v33  ;;  %v1189_v42 = vmax.f32 %v961_v36, 0.0 }
 0x217   : > { %v967_v23 = vadd.f32 %v966_v41, %v5552_v61  ;;  %v1190_v44 = vmax.f32 %v963_v38, 0.0 }
 0x218   : > { %v1191_v43 = vmax.f32 %v965_v40, 0.0 }
 0x219   : > { %v1192_v45 = vmax.f32 %v967_v23, 0.0 }
 0x21a   : > { %v1287_v46 = vpack.c.bf16 %v1191_v43, %v1189_v42 }
 0x21b   : > { %v1288_v47 = vpack.c.bf16 %v1192_v45, %v1190_v44  ;;  %v970_v49 = vpop.f32.mrb[64].mxu0 }
 0x21c   : > { %v971_v51 = vadd.f32 %v970_v49, %v5549_v60  ;;  %v972_v52 = vpop.f32.mrb[65].mxu0 }
 0x21d   : > { %v973_v53 = vadd.f32 %v972_v52, %v5552_v61  ;;  %v974_v55 = vpop.f32.mrb[66].mxu0  ;;  %1707 = vmatprep.mubr.bf16.mxu1 %v1288_v47 }
 0x21e   : > { %v975_v57 = vadd.f32 %v974_v55, %v5549_v60  ;;  %v976_v58 = vpop.f32.mrb[67].mxu0  ;;  %1708 = vmatmul.mubr.bf16.gmra.mrb[60].mxu1 %v1287_v46  ;;  %v1193_v62 = vmax.f32 %v971_v51, 0.0 }
 0x21f   : > { %v977_v59 = vadd.f32 %v976_v58, %v5552_v61  ;;  %v1194_v0 = vmax.f32 %v973_v53, 0.0 }
 0x220   : > { %v1195_v63 = vmax.f32 %v975_v57, 0.0 }
 0x221   : > { %v1196_v1 = vmax.f32 %v977_v59, 0.0 }
 0x222   : > { %v1289_v2 = vpack.c.bf16 %v1195_v63, %v1193_v62 }
 0x223   : > { %v1290_v3 = vpack.c.bf16 %v1196_v1, %v1194_v0  ;;  %v980_v4 = vpop.f32.mrb[68].mxu0 }
 0x224   : > { %v981_v5 = vadd.f32 %v980_v4, %v5549_v60  ;;  %v982_v6 = vpop.f32.mrb[69].mxu0 }
 0x225   : > { %v983_v7 = vadd.f32 %v982_v6, %v5552_v61  ;;  %v984_v8 = vpop.f32.mrb[70].mxu0  ;;  %1717 = vmatprep.mubr.bf16.mxu1 %v1290_v3 }
 0x226   : > { %v985_v9 = vadd.f32 %v984_v8, %v5549_v60  ;;  %v986_v10 = vpop.f32.mrb[71].mxu0  ;;  %1718 = vmatmul.mubr.bf16.gmra.mrb[64].mxu1 %v1289_v2  ;;  %v1197_v12 = vmax.f32 %v981_v5, 0.0 }
 0x227   : > { %v987_v11 = vadd.f32 %v986_v10, %v5552_v61  ;;  %v1198_v14 = vmax.f32 %v983_v7, 0.0 }
 0x228   : > { %v1199_v13 = vmax.f32 %v985_v9, 0.0 }
 0x229   : > { %v1200_v15 = vmax.f32 %v987_v11, 0.0 }
 0x22a   : > { %v1291_v16 = vpack.c.bf16 %v1199_v13, %v1197_v12 }
 0x22b   : > { %v1292_v17 = vpack.c.bf16 %v1200_v15, %v1198_v14  ;;  %v990_v18 = vpop.f32.mrb[72].mxu0 }
 0x22c   : > { %v991_v19 = vadd.f32 %v990_v18, %v5549_v60  ;;  %v992_v20 = vpop.f32.mrb[73].mxu0 }
 0x22d   : > { %v993_v21 = vadd.f32 %v992_v20, %v5552_v61  ;;  %v994_v22 = vpop.f32.mrb[74].mxu0  ;;  %1727 = vmatprep.mubr.bf16.mxu1 %v1292_v17 }
 0x22e   : > { %v995_v24 = vadd.f32 %v994_v22, %v5549_v60  ;;  %v996_v25 = vpop.f32.mrb[75].mxu0  ;;  %1728 = vmatmul.mubr.bf16.gmra.mrb[68].mxu1 %v1291_v16  ;;  %v1201_v27 = vmax.f32 %v991_v19, 0.0 }
 0x22f   : > { %v997_v26 = vadd.f32 %v996_v25, %v5552_v61  ;;  %v1202_v29 = vmax.f32 %v993_v21, 0.0 }
 0x230   : > { %v1203_v28 = vmax.f32 %v995_v24, 0.0 }
 0x231   : > { %v1204_v30 = vmax.f32 %v997_v26, 0.0 }
 0x232   : > { %v1293_v31 = vpack.c.bf16 %v1203_v28, %v1201_v27 }
 0x233   : > { %v1294_v32 = vpack.c.bf16 %v1204_v30, %v1202_v29  ;;  %v1000_v33 = vpop.f32.mrb[76].mxu0 }
 0x234   : > { %v1001_v34 = vadd.f32 %v1000_v33, %v5549_v60  ;;  %v1002_v35 = vpop.f32.mrb[77].mxu0 }
 0x235   : > { %v1003_v36 = vadd.f32 %v1002_v35, %v5552_v61  ;;  %v1004_v37 = vpop.f32.mrb[78].mxu0  ;;  %1737 = vmatprep.mubr.bf16.mxu1 %v1294_v32 }
 0x236   : > { %v1005_v38 = vadd.f32 %v1004_v37, %v5549_v60  ;;  %v1006_v39 = vpop.f32.mrb[79].mxu0  ;;  %1738 = vmatmul.mubr.bf16.gmra.mrb[72].mxu1 %v1293_v31  ;;  %v1205_v41 = vmax.f32 %v1001_v34, 0.0 }
 0x237   : > { %v1007_v40 = vadd.f32 %v1006_v39, %v5552_v61  ;;  %v1206_v42 = vmax.f32 %v1003_v36, 0.0 }
 0x238   : > { %v1207_v23 = vmax.f32 %v1005_v38, 0.0 }
 0x239   : > { %v1208_v43 = vmax.f32 %v1007_v40, 0.0 }
 0x23a   : > { %v1295_v44 = vpack.c.bf16 %v1207_v23, %v1205_v41 }
 0x23b   : > { %v1296_v45 = vpack.c.bf16 %v1208_v43, %v1206_v42  ;;  %v1010_v46 = vpop.f32.mrb[80].mxu0 }
 0x23c   : > { %v1011_v47 = vadd.f32 %v1010_v46, %v5549_v60  ;;  %v1012_v49 = vpop.f32.mrb[81].mxu0 }
 0x23d   : > { %v1013_v50 = vadd.f32 %v1012_v49, %v5552_v61  ;;  %v1014_v51 = vpop.f32.mrb[82].mxu0  ;;  %1747 = vmatprep.mubr.bf16.mxu1 %v1296_v45 }
 0x23e   : > { %v1015_v52 = vadd.f32 %v1014_v51, %v5549_v60  ;;  %v1016_v53 = vpop.f32.mrb[83].mxu0  ;;  %1748 = vmatmul.mubr.bf16.gmra.mrb[76].mxu1 %v1295_v44  ;;  %v1209_v57 = vmax.f32 %v1011_v47, 0.0 }
 0x23f   : > { %v1017_v55 = vadd.f32 %v1016_v53, %v5552_v61  ;;  %v1210_v59 = vmax.f32 %v1013_v50, 0.0 }
 0x240   : > { %v1211_v58 = vmax.f32 %v1015_v52, 0.0 }
 0x241   : > { %v1212_v62 = vmax.f32 %v1017_v55, 0.0 }
 0x242   : > { %v1297_v63 = vpack.c.bf16 %v1211_v58, %v1209_v57 }
 0x243   : > { %v1298_v0 = vpack.c.bf16 %v1212_v62, %v1210_v59  ;;  %v1020_v1 = vpop.f32.mrb[84].mxu0 }
 0x244   : > { %v1021_v2 = vadd.f32 %v1020_v1, %v5549_v60  ;;  %v1022_v3 = vpop.f32.mrb[85].mxu0 }
 0x245   : > { %v1023_v4 = vadd.f32 %v1022_v3, %v5552_v61  ;;  %v1024_v5 = vpop.f32.mrb[86].mxu0  ;;  %1757 = vmatprep.mubr.bf16.mxu1 %v1298_v0 }
 0x246   : > { %v1025_v6 = vadd.f32 %v1024_v5, %v5549_v60  ;;  %v1026_v7 = vpop.f32.mrb[87].mxu0  ;;  %1758 = vmatmul.mubr.bf16.gmra.mrb[80].mxu1 %v1297_v63  ;;  %v1213_v9 = vmax.f32 %v1021_v2, 0.0 }
 0x247   : > { %v1027_v8 = vadd.f32 %v1026_v7, %v5552_v61  ;;  %v1214_v11 = vmax.f32 %v1023_v4, 0.0 }
 0x248   : > { %v1215_v10 = vmax.f32 %v1025_v6, 0.0 }
 0x249   : > { %v1216_v12 = vmax.f32 %v1027_v8, 0.0 }
 0x24a   : > { %v1299_v13 = vpack.c.bf16 %v1215_v10, %v1213_v9 }
 0x24b   : > { %v1300_v14 = vpack.c.bf16 %v1216_v12, %v1214_v11  ;;  %v1030_v15 = vpop.f32.mrb[88].mxu0 }
 0x24c   : > { %v1031_v16 = vadd.f32 %v1030_v15, %v5549_v60  ;;  %v1032_v17 = vpop.f32.mrb[89].mxu0 }
 0x24d   : > { %v1033_v18 = vadd.f32 %v1032_v17, %v5552_v61  ;;  %v1034_v19 = vpop.f32.mrb[90].mxu0  ;;  %1767 = vmatprep.mubr.bf16.mxu1 %v1300_v14 }
 0x24e   : > { %v1035_v20 = vadd.f32 %v1034_v19, %v5549_v60  ;;  %v1036_v21 = vpop.f32.mrb[91].mxu0  ;;  %1768 = vmatmul.mubr.bf16.gmra.mrb[84].mxu1 %v1299_v13  ;;  %v1217_v24 = vmax.f32 %v1031_v16, 0.0 }
 0x24f   : > { %v1037_v22 = vadd.f32 %v1036_v21, %v5552_v61  ;;  %v1218_v26 = vmax.f32 %v1033_v18, 0.0 }
 0x250   : > { %v1219_v25 = vmax.f32 %v1035_v20, 0.0 }
 0x251   : > { %v1220_v27 = vmax.f32 %v1037_v22, 0.0 }
 0x252   : > { %v1301_v28 = vpack.c.bf16 %v1219_v25, %v1217_v24 }
 0x253   : > { %v1302_v29 = vpack.c.bf16 %v1220_v27, %v1218_v26  ;;  %v1040_v30 = vpop.f32.mrb[92].mxu0 }
 0x254   : > { %v1041_v31 = vadd.f32 %v1040_v30, %v5549_v60  ;;  %v1042_v32 = vpop.f32.mrb[93].mxu0 }
 0x255   : > { %v1043_v33 = vadd.f32 %v1042_v32, %v5552_v61  ;;  %v1044_v34 = vpop.f32.mrb[94].mxu0  ;;  %1777 = vmatprep.mubr.bf16.mxu1 %v1302_v29 }
 0x256   : > { %v1045_v35 = vadd.f32 %v1044_v34, %v5549_v60  ;;  %v1046_v36 = vpop.f32.mrb[95].mxu0  ;;  %1778 = vmatmul.mubr.bf16.gmra.mrb[88].mxu1 %v1301_v28  ;;  %v1221_v38 = vmax.f32 %v1041_v31, 0.0  ;;  %v1353_v28 = vld [vmem:[#allocation7] sm:$0x3] }
 0x257   : > { %v1047_v37 = vadd.f32 %v1046_v36, %v5552_v61  ;;  %v1222_v40 = vmax.f32 %v1043_v33, 0.0 }
 0x258   : > { %v1223_v39 = vmax.f32 %v1045_v35, 0.0  ;;  %v5795_v35 = vrot.slane %v1353_v28, %v5537_v54 }
 0x259   : > { %v1224_v41 = vmax.f32 %v1047_v37, 0.0  ;;  %v5799_v37 = vrot.slane %v1353_v28, %v5540_v56 }
 0x25a   : > { %v1303_v23 = vpack.c.bf16 %v1223_v39, %v1221_v38 }
 0x25b   : > { %v1304_v42 = vpack.c.bf16 %v1224_v41, %v1222_v40  ;;  %v1050_v43 = vpop.f32.mrb[96].mxu0 }
 0x25c   : > { %v1051_v44 = vadd.f32 %v1050_v43, %v5549_v60  ;;  %v1052_v45 = vpop.f32.mrb[97].mxu0 }
 0x25d   : > { %v1053_v46 = vadd.f32 %v1052_v45, %v5552_v61  ;;  %v1054_v47 = vpop.f32.mrb[98].mxu0  ;;  %1787 = vmatprep.mubr.bf16.mxu1 %v1304_v42 }
 0x25e   : > { %v1055_v49 = vadd.f32 %v1054_v47, %v5549_v60  ;;  %v1056_v50 = vpop.f32.mrb[99].mxu0  ;;  %1788 = vmatmul.mubr.bf16.gmra.mrb[92].mxu1 %v1303_v23  ;;  %v1225_v52 = vmax.f32 %v1051_v44, 0.0 }
 0x25f   : > { %v1057_v51 = vadd.f32 %v1056_v50, %v5552_v61  ;;  %v1226_v55 = vmax.f32 %v1053_v46, 0.0 }
 0x260   : > { %v1227_v53 = vmax.f32 %v1055_v49, 0.0 }
 0x261   : > { %v1228_v57 = vmax.f32 %v1057_v51, 0.0 }
 0x262   : > { %v1305_v58 = vpack.c.bf16 %v1227_v53, %v1225_v52 }
 0x263   : > { %v1306_v59 = vpack.c.bf16 %v1228_v57, %v1226_v55  ;;  %v1060_v62 = vpop.f32.mrb[100].mxu0 }
 0x264   : > { %v1061_v63 = vadd.f32 %v1060_v62, %v5549_v60  ;;  %v1062_v0 = vpop.f32.mrb[101].mxu0 }
 0x265   : > { %v1063_v1 = vadd.f32 %v1062_v0, %v5552_v61  ;;  %v1064_v2 = vpop.f32.mrb[102].mxu0  ;;  %1797 = vmatprep.mubr.bf16.mxu1 %v1306_v59 }
 0x266   : > { %v1065_v3 = vadd.f32 %v1064_v2, %v5549_v60  ;;  %v1066_v4 = vpop.f32.mrb[103].mxu0  ;;  %1798 = vmatmul.mubr.bf16.gmra.mrb[96].mxu1 %v1305_v58  ;;  %v1229_v6 = vmax.f32 %v1061_v63, 0.0 }
 0x267   : > { %v1067_v5 = vadd.f32 %v1066_v4, %v5552_v61  ;;  %v1230_v8 = vmax.f32 %v1063_v1, 0.0 }
 0x268   : > { %v1231_v7 = vmax.f32 %v1065_v3, 0.0 }
 0x269   : > { %v1232_v9 = vmax.f32 %v1067_v5, 0.0 }
 0x26a   : > { %v1307_v10 = vpack.c.bf16 %v1231_v7, %v1229_v6 }
 0x26b   : > { %v1308_v11 = vpack.c.bf16 %v1232_v9, %v1230_v8  ;;  %v1070_v12 = vpop.f32.mrb[104].mxu0 }
 0x26c   : > { %v1071_v13 = vadd.f32 %v1070_v12, %v5549_v60  ;;  %v1072_v14 = vpop.f32.mrb[105].mxu0 }
 0x26d   : > { %v1073_v15 = vadd.f32 %v1072_v14, %v5552_v61  ;;  %v1074_v16 = vpop.f32.mrb[106].mxu0  ;;  %1807 = vmatprep.mubr.bf16.mxu1 %v1308_v11 }
 0x26e   : > { %v1075_v17 = vadd.f32 %v1074_v16, %v5549_v60  ;;  %v1076_v18 = vpop.f32.mrb[107].mxu0  ;;  %1808 = vmatmul.mubr.bf16.gmra.mrb[100].mxu1 %v1307_v10  ;;  %v1233_v20 = vmax.f32 %v1071_v13, 0.0 }
 0x26f   : > { %v1077_v19 = vadd.f32 %v1076_v18, %v5552_v61  ;;  %v1234_v22 = vmax.f32 %v1073_v15, 0.0 }
 0x270   : > { %v1235_v21 = vmax.f32 %v1075_v17, 0.0 }
 0x271   : > { %v1236_v24 = vmax.f32 %v1077_v19, 0.0 }
 0x272   : > { %v1309_v25 = vpack.c.bf16 %v1235_v21, %v1233_v20 }
 0x273   : > { %v1310_v26 = vpack.c.bf16 %v1236_v24, %v1234_v22  ;;  %v1080_v27 = vpop.f32.mrb[108].mxu0 }
 0x274   : > { %v1081_v29 = vadd.f32 %v1080_v27, %v5549_v60  ;;  %v1082_v30 = vpop.f32.mrb[109].mxu0 }
 0x275   : > { %v1083_v31 = vadd.f32 %v1082_v30, %v5552_v61  ;;  %v1084_v32 = vpop.f32.mrb[110].mxu0  ;;  %1817 = vmatprep.mubr.bf16.mxu1 %v1310_v26 }
 0x276   : > { %v1085_v33 = vadd.f32 %v1084_v32, %v5549_v60  ;;  %v1086_v34 = vpop.f32.mrb[111].mxu0  ;;  %1818 = vmatmul.mubr.bf16.gmra.mrb[104].mxu1 %v1309_v25  ;;  %v1237_v38 = vmax.f32 %v1081_v29, 0.0 }
 0x277   : > { %v1087_v36 = vadd.f32 %v1086_v34, %v5552_v61  ;;  %v1238_v40 = vmax.f32 %v1083_v31, 0.0 }
 0x278   : > { %v1239_v39 = vmax.f32 %v1085_v33, 0.0 }
 0x279   : > { %v1240_v41 = vmax.f32 %v1087_v36, 0.0  ;;  %v1559_v23 = vpop.f32.mrb[0].mxu1 }
 0x27a   : > { %v1311_v42 = vpack.c.bf16 %v1239_v39, %v1237_v38  ;;  %v1560_v43 = vadd.f32 %v1559_v23, %v5795_v35  ;;  %v1561_v44 = vpop.f32.mrb[1].mxu1 }
 0x27b   : > { %v1312_v45 = vpack.c.bf16 %v1240_v41, %v1238_v40  ;;  %v1562_v46 = vadd.f32 %v1561_v44, %v5799_v37  ;;  %v1090_v47 = vpop.f32.mrb[112].mxu0  ;;  %v1563_v49 = vpop.f32.mrb[2].mxu1 }
 0x27c   : > { %v1091_v50 = vadd.f32 %v1090_v47, %v5549_v60  ;;  %v1564_v51 = vadd.f32 %v1563_v49, %v5795_v35  ;;  %v1092_v52 = vpop.f32.mrb[113].mxu0  ;;  %v1565_v53 = vpop.f32.mrb[3].mxu1  ;;  %v1878_v59 = vmax.f32 %v1560_v43, 0.0 }
 0x27d   : > { %v1093_v55 = vadd.f32 %v1092_v52, %v5552_v61  ;;  %v1566_v57 = vadd.f32 %v1565_v53, %v5799_v37  ;;  %v1094_v58 = vpop.f32.mrb[114].mxu0  ;;  %1827 = vmatprep.mubr.bf16.mxu1 %v1312_v45  ;;  %v1879_v1 = vmax.f32 %v1562_v46, 0.0 }
 0x27e   : > { %v1880_v62 = vmax.f32 %v1564_v51, 0.0  ;;  %v1095_v63 = vadd.f32 %v1094_v58, %v5549_v60  ;;  %v1096_v0 = vpop.f32.mrb[115].mxu0  ;;  %1828 = vmatmul.mubr.bf16.gmra.mrb[108].mxu1 %v1311_v42  ;;  %v1241_v4 = vmax.f32 %v1091_v50, 0.0 }
 0x27f   : > { %v1881_v2 = vmax.f32 %v1566_v57, 0.0  ;;  %v1097_v3 = vadd.f32 %v1096_v0, %v5552_v61  ;;  %v1242_v7 = vmax.f32 %v1093_v55, 0.0 }
 0x280   : > { %v5809_v5 = vpack.c.bf16 %v1880_v62, %v1878_v59  ;;  %v1243_v6 = vmax.f32 %v1095_v63, 0.0 }
 0x281   : > { %v5811_v8 = vpack.c.bf16 %v1881_v2, %v1879_v1  ;;  %v1244_v9 = vmax.f32 %v1097_v3, 0.0  ;;  %v1569_v10 = vpop.f32.mrb[4].mxu1 }
 0x282   : > { %v1313_v11 = vpack.c.bf16 %v1243_v6, %v1241_v4  ;;  %v1570_v12 = vadd.f32 %v1569_v10, %v5795_v35  ;;  %v1571_v13 = vpop.f32.mrb[5].mxu1 }
 0x283   : > { %v1314_v14 = vpack.c.bf16 %v1244_v9, %v1242_v7  ;;  %v1572_v15 = vadd.f32 %v1571_v13, %v5799_v37  ;;  %v1100_v16 = vpop.f32.mrb[116].mxu0  ;;  %v1573_v17 = vpop.f32.mrb[6].mxu1  ;;  %2439 = vmatprep.mubr.bf16.mxu0 %v5811_v8 }
 0x284   : > { %v1101_v18 = vadd.f32 %v1100_v16, %v5549_v60  ;;  %v1574_v19 = vadd.f32 %v1573_v17, %v5795_v35  ;;  %v1102_v20 = vpop.f32.mrb[117].mxu0  ;;  %v1575_v21 = vpop.f32.mrb[7].mxu1  ;;  %2440 = vmatmul.mubr.bf16.vlgmr.msra.gmra.mrb[128].mxu0 %v5809_v5  ;;  %v1882_v26 = vmax.f32 %v1570_v12, 0.0 }
 0x285   : > { %v1103_v22 = vadd.f32 %v1102_v20, %v5552_v61  ;;  %v1576_v24 = vadd.f32 %v1575_v21, %v5799_v37  ;;  %v1104_v25 = vpop.f32.mrb[118].mxu0  ;;  %1837 = vmatprep.mubr.bf16.mxu1 %v1314_v14  ;;  %v1883_v30 = vmax.f32 %v1572_v15, 0.0 }
 0x286   : > { %v1884_v27 = vmax.f32 %v1574_v19, 0.0  ;;  %v1105_v28 = vadd.f32 %v1104_v25, %v5549_v60  ;;  %v1106_v29 = vpop.f32.mrb[119].mxu0  ;;  %1838 = vmatmul.mubr.bf16.gmra.mrb[112].mxu1 %v1313_v11  ;;  %v1245_v33 = vmax.f32 %v1101_v18, 0.0 }
 0x287   : > { %v1885_v31 = vmax.f32 %v1576_v24, 0.0  ;;  %v1107_v32 = vadd.f32 %v1106_v29, %v5552_v61  ;;  %v1246_v38 = vmax.f32 %v1103_v22, 0.0 }
 0x288   : > { %v5823_v34 = vpack.c.bf16 %v1884_v27, %v1882_v26  ;;  %v1247_v36 = vmax.f32 %v1105_v28, 0.0 }
 0x289   : > { %v5825_v39 = vpack.c.bf16 %v1885_v31, %v1883_v30  ;;  %v1248_v40 = vmax.f32 %v1107_v32, 0.0  ;;  %v1579_v41 = vpop.f32.mrb[8].mxu1 }
 0x28a   : > { %v1315_v23 = vpack.c.bf16 %v1247_v36, %v1245_v33  ;;  %v1580_v42 = vadd.f32 %v1579_v41, %v5795_v35  ;;  %v1581_v43 = vpop.f32.mrb[9].mxu1 }
 0x28b   : > { %v1316_v44 = vpack.c.bf16 %v1248_v40, %v1246_v38  ;;  %v1582_v45 = vadd.f32 %v1581_v43, %v5799_v37  ;;  %v1110_v46 = vpop.f32.mrb[120].mxu0  ;;  %v1583_v47 = vpop.f32.mrb[10].mxu1  ;;  %2449 = vmatprep.mubr.bf16.mxu0 %v5825_v39 }
 0x28c   : > { %v1111_v49 = vadd.f32 %v1110_v46, %v5549_v60  ;;  %v1584_v50 = vadd.f32 %v1583_v47, %v5795_v35  ;;  %v1112_v51 = vpop.f32.mrb[121].mxu0  ;;  %v1585_v52 = vpop.f32.mrb[11].mxu1  ;;  %2450 = vmatmul.mubr.bf16.gmra.mrb[132].mxu0 %v5823_v34  ;;  %v1886_v58 = vmax.f32 %v1580_v42, 0.0 }
 0x28d   : > { %v1113_v53 = vadd.f32 %v1112_v51, %v5552_v61  ;;  %v1586_v55 = vadd.f32 %v1585_v52, %v5799_v37  ;;  %v1114_v57 = vpop.f32.mrb[122].mxu0  ;;  %1847 = vmatprep.mubr.bf16.mxu1 %v1316_v44  ;;  %v1887_v0 = vmax.f32 %v1582_v45, 0.0 }
 0x28e   : > { %v1888_v59 = vmax.f32 %v1584_v50, 0.0  ;;  %v1115_v62 = vadd.f32 %v1114_v57, %v5549_v60  ;;  %v1116_v63 = vpop.f32.mrb[123].mxu0  ;;  %1848 = vmatmul.mubr.bf16.gmra.mrb[116].mxu1 %v1315_v23  ;;  %v1249_v3 = vmax.f32 %v1111_v49, 0.0 }
 0x28f   : > { %v1889_v1 = vmax.f32 %v1586_v55, 0.0  ;;  %v1117_v2 = vadd.f32 %v1116_v63, %v5552_v61  ;;  %v1250_v7 = vmax.f32 %v1113_v53, 0.0 }
 0x290   : > { %v5837_v4 = vpack.c.bf16 %v1888_v59, %v1886_v58  ;;  %v1251_v6 = vmax.f32 %v1115_v62, 0.0 }
 0x291   : > { %v5839_v9 = vpack.c.bf16 %v1889_v1, %v1887_v0  ;;  %v1252_v10 = vmax.f32 %v1117_v2, 0.0  ;;  %v1589_v11 = vpop.f32.mrb[12].mxu1 }
 0x292   : > { %v1317_v12 = vpack.c.bf16 %v1251_v6, %v1249_v3  ;;  %v1590_v13 = vadd.f32 %v1589_v11, %v5795_v35  ;;  %v1591_v14 = vpop.f32.mrb[13].mxu1 }
 0x293   : > { %v1318_v15 = vpack.c.bf16 %v1252_v10, %v1250_v7  ;;  %v1592_v16 = vadd.f32 %v1591_v14, %v5799_v37  ;;  %v1120_v17 = vpop.f32.mrb[124].mxu0  ;;  %v1593_v18 = vpop.f32.mrb[14].mxu1  ;;  %2459 = vmatprep.mubr.bf16.mxu0 %v5839_v9 }
 0x294   : > { %v1121_v19 = vadd.f32 %v1120_v17, %v5549_v60  ;;  %v1594_v20 = vadd.f32 %v1593_v18, %v5795_v35  ;;  %v1122_v21 = vpop.f32.mrb[125].mxu0  ;;  %v1595_v22 = vpop.f32.mrb[15].mxu1  ;;  %2460 = vmatmul.mubr.bf16.gmra.mrb[136].mxu0 %v5837_v4  ;;  %v1890_v27 = vmax.f32 %v1590_v13, 0.0 }
 0x295   : > { %v1123_v24 = vadd.f32 %v1122_v21, %v5552_v61  ;;  %v1596_v25 = vadd.f32 %v1595_v22, %v5799_v37  ;;  %v1124_v26 = vpop.f32.mrb[126].mxu0  ;;  %1857 = vmatprep.mubr.bf16.mxu1 %v1318_v15  ;;  %v1891_v31 = vmax.f32 %v1592_v16, 0.0 }
 0x296   : > { %v1892_v28 = vmax.f32 %v1594_v20, 0.0  ;;  %v1125_v29 = vadd.f32 %v1124_v26, %v5549_v60  ;;  %v1126_v30 = vpop.f32.mrb[127].mxu0  ;;  %1858 = vmatmul.mubr.bf16.gmra.mrb[120].mxu1 %v1317_v12  ;;  %v1253_v36 = vmax.f32 %v1121_v19, 0.0 }
 0x297   : > { %v1893_v32 = vmax.f32 %v1596_v25, 0.0  ;;  %v1127_v33 = vadd.f32 %v1126_v30, %v5552_v61  ;;  %v1254_v41 = vmax.f32 %v1123_v24, 0.0 }
 0x298   : > { %v5851_v38 = vpack.c.bf16 %v1892_v28, %v1890_v27  ;;  %v1255_v40 = vmax.f32 %v1125_v29, 0.0 }
 0x299   : > { %v5853_v23 = vpack.c.bf16 %v1893_v32, %v1891_v31  ;;  %v1256_v42 = vmax.f32 %v1127_v33, 0.0  ;;  %v1599_v43 = vpop.f32.mrb[16].mxu1 }
 0x29a   : > { %v1319_v44 = vpack.c.bf16 %v1255_v40, %v1253_v36  ;;  %v1600_v45 = vadd.f32 %v1599_v43, %v5795_v35  ;;  %v1601_v46 = vpop.f32.mrb[17].mxu1 }
 0x29b   : > { %v1320_v60 = vpack.c.bf16 %v1256_v42, %v1254_v41  ;;  %v1602_v47 = vadd.f32 %v1601_v46, %v5799_v37  ;;  %v1603_v49 = vpop.f32.mrb[18].mxu1  ;;  %2469 = vmatprep.mubr.bf16.mxu0 %v5853_v23 }
 0x29c   : > { %v1604_v61 = vadd.f32 %v1603_v49, %v5795_v35  ;;  %v1605_v50 = vpop.f32.mrb[19].mxu1  ;;  %2470 = vmatmul.mubr.bf16.gmra.mrb[140].mxu0 %v5851_v38  ;;  %v1894_v52 = vmax.f32 %v1600_v45, 0.0 }
 0x29d   : > { %v1606_v51 = vadd.f32 %v1605_v50, %v5799_v37  ;;  %1867 = vmatprep.mubr.bf16.mxu1 %v1320_v60  ;;  %v1895_v55 = vmax.f32 %v1602_v47, 0.0 }
 0x29e   : > { %v1896_v53 = vmax.f32 %v1604_v61, 0.0  ;;  %1868 = vmatmul.mubr.bf16.gmra.mrb[124].mxu1 %v1319_v44 }
 0x29f   : > { %v1897_v57 = vmax.f32 %v1606_v51, 0.0  ;;  %2792 = vmatprep.mubr.bf16.mxu1 %v5811_v8 }
 0x2a0   : > { %v5862_v58 = vpack.c.bf16 %v1896_v53, %v1894_v52 }
 0x2a1   : > { %v5864_v59 = vpack.c.bf16 %v1897_v57, %v1895_v55  ;;  %v1609_v62 = vpop.f32.mrb[20].mxu1 }
 0x2a2   : > { %v1610_v63 = vadd.f32 %v1609_v62, %v5795_v35  ;;  %v1611_v0 = vpop.f32.mrb[21].mxu1 }
 0x2a3   : > { %v1612_v1 = vadd.f32 %v1611_v0, %v5799_v37  ;;  %v1613_v2 = vpop.f32.mrb[22].mxu1  ;;  %2479 = vmatprep.mubr.bf16.mxu0 %v5864_v59 }
 0x2a4   : > { %v1614_v3 = vadd.f32 %v1613_v2, %v5795_v35  ;;  %v1615_v6 = vpop.f32.mrb[23].mxu1  ;;  %2480 = vmatmul.mubr.bf16.gmra.mrb[144].mxu0 %v5862_v58  ;;  %v1898_v7 = vmax.f32 %v1610_v63, 0.0 }
 0x2a5   : > { %v1616_v8 = vadd.f32 %v1615_v6, %v5799_v37  ;;  %v1899_v11 = vmax.f32 %v1612_v1, 0.0 }
 0x2a6   : > { %v1900_v10 = vmax.f32 %v1614_v3, 0.0  ;;  %2793 = vmatmul.mubr.bf16.vlgmr.msra.gmra.mrb[128].mxu1 %v5809_v5 }
 0x2a7   : > { %v1901_v12 = vmax.f32 %v1616_v8, 0.0  ;;  %2800 = vmatprep.mubr.bf16.mxu1 %v5825_v39 }
 0x2a8   : > { %v5874_v13 = vpack.c.bf16 %v1900_v10, %v1898_v7 }
 0x2a9   : > { %v5876_v14 = vpack.c.bf16 %v1901_v12, %v1899_v11  ;;  %v1619_v15 = vpop.f32.mrb[24].mxu1 }
 0x2aa   : > { %v1620_v16 = vadd.f32 %v1619_v15, %v5795_v35  ;;  %v1621_v17 = vpop.f32.mrb[25].mxu1 }
 0x2ab   : > { %v1622_v18 = vadd.f32 %v1621_v17, %v5799_v37  ;;  %v1623_v19 = vpop.f32.mrb[26].mxu1  ;;  %2489 = vmatprep.mubr.bf16.mxu0 %v5876_v14 }
 0x2ac   : > { %v1624_v20 = vadd.f32 %v1623_v19, %v5795_v35  ;;  %v1625_v5 = vpop.f32.mrb[27].mxu1  ;;  %2490 = vmatmul.mubr.bf16.gmra.mrb[148].mxu0 %v5874_v13  ;;  %v1902_v21 = vmax.f32 %v1620_v16, 0.0 }
 0x2ad   : > { %v1626_v39 = vadd.f32 %v1625_v5, %v5799_v37  ;;  %v1903_v24 = vmax.f32 %v1622_v18, 0.0 }
 0x2ae   : > { %v1904_v22 = vmax.f32 %v1624_v20, 0.0  ;;  %2801 = vmatmul.mubr.bf16.gmra.mrb[132].mxu1 %v5823_v34 }
 0x2af   : > { %v1905_v25 = vmax.f32 %v1626_v39, 0.0  ;;  %2808 = vmatprep.mubr.bf16.mxu1 %v5839_v9 }
 0x2b0   : > { %v5886_v26 = vpack.c.bf16 %v1904_v22, %v1902_v21 }
 0x2b1   : > { %v5888_v27 = vpack.c.bf16 %v1905_v25, %v1903_v24  ;;  %v1629_v28 = vpop.f32.mrb[28].mxu1 }
 0x2b2   : > { %v1630_v29 = vadd.f32 %v1629_v28, %v5795_v35  ;;  %v1631_v30 = vpop.f32.mrb[29].mxu1 }
 0x2b3   : > { %v1632_v31 = vadd.f32 %v1631_v30, %v5799_v37  ;;  %v1633_v32 = vpop.f32.mrb[30].mxu1  ;;  %2499 = vmatprep.mubr.bf16.mxu0 %v5888_v27 }
 0x2b4   : > { %v1634_v33 = vadd.f32 %v1633_v32, %v5795_v35  ;;  %v1635_v34 = vpop.f32.mrb[31].mxu1  ;;  %2500 = vmatmul.mubr.bf16.gmra.mrb[152].mxu0 %v5886_v26  ;;  %v1906_v36 = vmax.f32 %v1630_v29, 0.0 }
 0x2b5   : > { %v1636_v9 = vadd.f32 %v1635_v34, %v5799_v37  ;;  %v1907_v41 = vmax.f32 %v1632_v31, 0.0 }
 0x2b6   : > { %v1908_v40 = vmax.f32 %v1634_v33, 0.0  ;;  %2809 = vmatmul.mubr.bf16.gmra.mrb[136].mxu1 %v5837_v4 }
 0x2b7   : > { %v1909_v42 = vmax.f32 %v1636_v9, 0.0  ;;  %2816 = vmatprep.mubr.bf16.mxu1 %v5853_v23 }
 0x2b8   : > { %v5898_v43 = vpack.c.bf16 %v1908_v40, %v1906_v36 }
 0x2b9   : > { %v5900_v44 = vpack.c.bf16 %v1909_v42, %v1907_v41  ;;  %v1639_v45 = vpop.f32.mrb[32].mxu1 }
 0x2ba   : > { %v1640_v46 = vadd.f32 %v1639_v45, %v5795_v35  ;;  %v1641_v60 = vpop.f32.mrb[33].mxu1 }
 0x2bb   : > { %v1642_v47 = vadd.f32 %v1641_v60, %v5799_v37  ;;  %v1643_v49 = vpop.f32.mrb[34].mxu1  ;;  %2509 = vmatprep.mubr.bf16.mxu0 %v5900_v44 }
 0x2bc   : > { %v1644_v61 = vadd.f32 %v1643_v49, %v5795_v35  ;;  %v1645_v4 = vpop.f32.mrb[35].mxu1  ;;  %2510 = vmatmul.mubr.bf16.gmra.mrb[156].mxu0 %v5898_v43  ;;  %v1910_v50 = vmax.f32 %v1640_v46, 0.0 }
 0x2bd   : > { %v1646_v23 = vadd.f32 %v1645_v4, %v5799_v37  ;;  %v1911_v52 = vmax.f32 %v1642_v47, 0.0 }
 0x2be   : > { %v1912_v51 = vmax.f32 %v1644_v61, 0.0  ;;  %2817 = vmatmul.mubr.bf16.gmra.mrb[140].mxu1 %v5851_v38 }
 0x2bf   : > { %v1913_v53 = vmax.f32 %v1646_v23, 0.0  ;;  %2824 = vmatprep.mubr.bf16.mxu1 %v5864_v59 }
 0x2c0   : > { %v5910_v55 = vpack.c.bf16 %v1912_v51, %v1910_v50 }
 0x2c1   : > { %v5912_v57 = vpack.c.bf16 %v1913_v53, %v1911_v52  ;;  %v1649_v62 = vpop.f32.mrb[36].mxu1 }
 0x2c2   : > { %v1650_v63 = vadd.f32 %v1649_v62, %v5795_v35  ;;  %v1651_v0 = vpop.f32.mrb[37].mxu1 }
 0x2c3   : > { %v1652_v1 = vadd.f32 %v1651_v0, %v5799_v37  ;;  %v1653_v2 = vpop.f32.mrb[38].mxu1  ;;  %2519 = vmatprep.mubr.bf16.mxu0 %v5912_v57 }
 0x2c4   : > { %v1654_v3 = vadd.f32 %v1653_v2, %v5795_v35  ;;  %v1655_v38 = vpop.f32.mrb[39].mxu1  ;;  %2520 = vmatmul.mubr.bf16.gmra.mrb[160].mxu0 %v5910_v55  ;;  %v1914_v6 = vmax.f32 %v1650_v63, 0.0 }
 0x2c5   : > { %v1656_v59 = vadd.f32 %v1655_v38, %v5799_v37  ;;  %v1915_v7 = vmax.f32 %v1652_v1, 0.0 }
 0x2c6   : > { %v1916_v8 = vmax.f32 %v1654_v3, 0.0  ;;  %2825 = vmatmul.mubr.bf16.gmra.mrb[144].mxu1 %v5862_v58 }
 0x2c7   : > { %v1917_v10 = vmax.f32 %v1656_v59, 0.0  ;;  %2832 = vmatprep.mubr.bf16.mxu1 %v5876_v14 }
 0x2c8   : > { %v5922_v11 = vpack.c.bf16 %v1916_v8, %v1914_v6 }
 0x2c9   : > { %v5924_v12 = vpack.c.bf16 %v1917_v10, %v1915_v7  ;;  %v1659_v15 = vpop.f32.mrb[40].mxu1 }
 0x2ca   : > { %v1660_v16 = vadd.f32 %v1659_v15, %v5795_v35  ;;  %v1661_v17 = vpop.f32.mrb[41].mxu1 }
 0x2cb   : > { %v1662_v18 = vadd.f32 %v1661_v17, %v5799_v37  ;;  %v1663_v19 = vpop.f32.mrb[42].mxu1  ;;  %2529 = vmatprep.mubr.bf16.mxu0 %v5924_v12 }
 0x2cc   : > { %v1664_v20 = vadd.f32 %v1663_v19, %v5795_v35  ;;  %v1665_v58 = vpop.f32.mrb[43].mxu1  ;;  %2530 = vmatmul.mubr.bf16.gmra.mrb[164].mxu0 %v5922_v11  ;;  %v1918_v5 = vmax.f32 %v1660_v16, 0.0 }
 0x2cd   : > { %v1666_v14 = vadd.f32 %v1665_v58, %v5799_v37  ;;  %v1919_v21 = vmax.f32 %v1662_v18, 0.0 }
 0x2ce   : > { %v1920_v39 = vmax.f32 %v1664_v20, 0.0  ;;  %2833 = vmatmul.mubr.bf16.gmra.mrb[148].mxu1 %v5874_v13 }
 0x2cf   : > { %v1921_v22 = vmax.f32 %v1666_v14, 0.0  ;;  %2840 = vmatprep.mubr.bf16.mxu1 %v5888_v27 }
 0x2d0   : > { %v5934_v24 = vpack.c.bf16 %v1920_v39, %v1918_v5 }
 0x2d1   : > { %v5936_v25 = vpack.c.bf16 %v1921_v22, %v1919_v21  ;;  %v1669_v28 = vpop.f32.mrb[44].mxu1 }
 0x2d2   : > { %v1670_v29 = vadd.f32 %v1669_v28, %v5795_v35  ;;  %v1671_v30 = vpop.f32.mrb[45].mxu1 }
 0x2d3   : > { %v1672_v31 = vadd.f32 %v1671_v30, %v5799_v37  ;;  %v1673_v32 = vpop.f32.mrb[46].mxu1  ;;  %2539 = vmatprep.mubr.bf16.mxu0 %v5936_v25 }
 0x2d4   : > { %v1674_v33 = vadd.f32 %v1673_v32, %v5795_v35  ;;  %v1675_v13 = vpop.f32.mrb[47].mxu1  ;;  %2540 = vmatmul.mubr.bf16.gmra.mrb[168].mxu0 %v5934_v24  ;;  %v1922_v34 = vmax.f32 %v1670_v29, 0.0 }
 0x2d5   : > { %v1676_v27 = vadd.f32 %v1675_v13, %v5799_v37  ;;  %v1923_v36 = vmax.f32 %v1672_v31, 0.0 }
 0x2d6   : > { %v1924_v9 = vmax.f32 %v1674_v33, 0.0  ;;  %2841 = vmatmul.mubr.bf16.gmra.mrb[152].mxu1 %v5886_v26 }
 0x2d7   : > { %v1925_v40 = vmax.f32 %v1676_v27, 0.0  ;;  %2848 = vmatprep.mubr.bf16.mxu1 %v5900_v44 }
 0x2d8   : > { %v5946_v41 = vpack.c.bf16 %v1924_v9, %v1922_v34 }
 0x2d9   : > { %v5948_v42 = vpack.c.bf16 %v1925_v40, %v1923_v36  ;;  %v1679_v45 = vpop.f32.mrb[48].mxu1 }
 0x2da   : > { %v1680_v46 = vadd.f32 %v1679_v45, %v5795_v35  ;;  %v1681_v60 = vpop.f32.mrb[49].mxu1 }
 0x2db   : > { %v1682_v47 = vadd.f32 %v1681_v60, %v5799_v37  ;;  %v1683_v49 = vpop.f32.mrb[50].mxu1  ;;  %2549 = vmatprep.mubr.bf16.mxu0 %v5948_v42 }
 0x2dc   : > { %v1684_v61 = vadd.f32 %v1683_v49, %v5795_v35  ;;  %v1685_v26 = vpop.f32.mrb[51].mxu1  ;;  %2550 = vmatmul.mubr.bf16.gmra.mrb[172].mxu0 %v5946_v41  ;;  %v1926_v4 = vmax.f32 %v1680_v46, 0.0 }
 0x2dd   : > { %v1686_v44 = vadd.f32 %v1685_v26, %v5799_v37  ;;  %v1927_v50 = vmax.f32 %v1682_v47, 0.0 }
 0x2de   : > { %v1928_v23 = vmax.f32 %v1684_v61, 0.0  ;;  %2849 = vmatmul.mubr.bf16.gmra.mrb[156].mxu1 %v5898_v43 }
 0x2df   : > { %v1929_v51 = vmax.f32 %v1686_v44, 0.0  ;;  %2856 = vmatprep.mubr.bf16.mxu1 %v5912_v57 }
 0x2e0   : > { %v5958_v52 = vpack.c.bf16 %v1928_v23, %v1926_v4 }
 0x2e1   : > { %v5960_v53 = vpack.c.bf16 %v1929_v51, %v1927_v50  ;;  %v1689_v62 = vpop.f32.mrb[52].mxu1 }
 0x2e2   : > { %v1690_v63 = vadd.f32 %v1689_v62, %v5795_v35  ;;  %v1691_v0 = vpop.f32.mrb[53].mxu1 }
 0x2e3   : > { %v1692_v1 = vadd.f32 %v1691_v0, %v5799_v37  ;;  %v1693_v2 = vpop.f32.mrb[54].mxu1  ;;  %2559 = vmatprep.mubr.bf16.mxu0 %v5960_v53 }
 0x2e4   : > { %v1694_v3 = vadd.f32 %v1693_v2, %v5795_v35  ;;  %v1695_v43 = vpop.f32.mrb[55].mxu1  ;;  %2560 = vmatmul.mubr.bf16.gmra.mrb[176].mxu0 %v5958_v52  ;;  %v1930_v38 = vmax.f32 %v1690_v63, 0.0 }
 0x2e5   : > { %v1696_v57 = vadd.f32 %v1695_v43, %v5799_v37  ;;  %v1931_v6 = vmax.f32 %v1692_v1, 0.0 }
 0x2e6   : > { %v1932_v59 = vmax.f32 %v1694_v3, 0.0  ;;  %2857 = vmatmul.mubr.bf16.gmra.mrb[160].mxu1 %v5910_v55 }
 0x2e7   : > { %v1933_v8 = vmax.f32 %v1696_v57, 0.0  ;;  %2864 = vmatprep.mubr.bf16.mxu1 %v5924_v12 }
 0x2e8   : > { %v5970_v7 = vpack.c.bf16 %v1932_v59, %v1930_v38 }
 0x2e9   : > { %v5972_v10 = vpack.c.bf16 %v1933_v8, %v1931_v6  ;;  %v1699_v15 = vpop.f32.mrb[56].mxu1 }
 0x2ea   : > { %v1700_v16 = vadd.f32 %v1699_v15, %v5795_v35  ;;  %v1701_v17 = vpop.f32.mrb[57].mxu1 }
 0x2eb   : > { %v1702_v18 = vadd.f32 %v1701_v17, %v5799_v37  ;;  %v1703_v19 = vpop.f32.mrb[58].mxu1  ;;  %2569 = vmatprep.mubr.bf16.mxu0 %v5972_v10 }
 0x2ec   : > { %v1704_v20 = vadd.f32 %v1703_v19, %v5795_v35  ;;  %v1705_v55 = vpop.f32.mrb[59].mxu1  ;;  %2570 = vmatmul.mubr.bf16.gmra.mrb[180].mxu0 %v5970_v7  ;;  %v1934_v58 = vmax.f32 %v1700_v16, 0.0 }
 0x2ed   : > { %v1706_v12 = vadd.f32 %v1705_v55, %v5799_v37  ;;  %v1935_v5 = vmax.f32 %v1702_v18, 0.0 }
 0x2ee   : > { %v1936_v14 = vmax.f32 %v1704_v20, 0.0  ;;  %2865 = vmatmul.mubr.bf16.gmra.mrb[164].mxu1 %v5922_v11 }
 0x2ef   : > { %v1937_v39 = vmax.f32 %v1706_v12, 0.0  ;;  %2872 = vmatprep.mubr.bf16.mxu1 %v5936_v25 }
 0x2f0   : > { %v5982_v21 = vpack.c.bf16 %v1936_v14, %v1934_v58 }
 0x2f1   : > { %v5984_v22 = vpack.c.bf16 %v1937_v39, %v1935_v5  ;;  %v1709_v28 = vpop.f32.mrb[60].mxu1 }
 0x2f2   : > { %v1710_v29 = vadd.f32 %v1709_v28, %v5795_v35  ;;  %v1711_v30 = vpop.f32.mrb[61].mxu1 }
 0x2f3   : > { %v1712_v31 = vadd.f32 %v1711_v30, %v5799_v37  ;;  %v1713_v32 = vpop.f32.mrb[62].mxu1  ;;  %2579 = vmatprep.mubr.bf16.mxu0 %v5984_v22 }
 0x2f4   : > { %v1714_v33 = vadd.f32 %v1713_v32, %v5795_v35  ;;  %v1715_v11 = vpop.f32.mrb[63].mxu1  ;;  %2580 = vmatmul.mubr.bf16.gmra.mrb[184].mxu0 %v5982_v21  ;;  %v1938_v13 = vmax.f32 %v1710_v29, 0.0 }
 0x2f5   : > { %v1716_v25 = vadd.f32 %v1715_v11, %v5799_v37  ;;  %v1939_v34 = vmax.f32 %v1712_v31, 0.0 }
 0x2f6   : > { %v1940_v27 = vmax.f32 %v1714_v33, 0.0  ;;  %2873 = vmatmul.mubr.bf16.gmra.mrb[168].mxu1 %v5934_v24 }
 0x2f7   : > { %v1941_v9 = vmax.f32 %v1716_v25, 0.0  ;;  %2880 = vmatprep.mubr.bf16.mxu1 %v5948_v42 }
 0x2f8   : > { %v5994_v36 = vpack.c.bf16 %v1940_v27, %v1938_v13 }
 0x2f9   : > { %v5996_v40 = vpack.c.bf16 %v1941_v9, %v1939_v34  ;;  %v1719_v45 = vpop.f32.mrb[64].mxu1 }
 0x2fa   : > { %v1720_v46 = vadd.f32 %v1719_v45, %v5795_v35  ;;  %v1721_v60 = vpop.f32.mrb[65].mxu1 }
 0x2fb   : > { %v1722_v47 = vadd.f32 %v1721_v60, %v5799_v37  ;;  %v1723_v49 = vpop.f32.mrb[66].mxu1  ;;  %2589 = vmatprep.mubr.bf16.mxu0 %v5996_v40 }
 0x2fc   : > { %v1724_v61 = vadd.f32 %v1723_v49, %v5795_v35  ;;  %v1725_v24 = vpop.f32.mrb[67].mxu1  ;;  %2590 = vmatmul.mubr.bf16.gmra.mrb[188].mxu0 %v5994_v36  ;;  %v1942_v26 = vmax.f32 %v1720_v46, 0.0 }
 0x2fd   : > { %v1726_v42 = vadd.f32 %v1725_v24, %v5799_v37  ;;  %v1943_v4 = vmax.f32 %v1722_v47, 0.0 }
 0x2fe   : > { %v1944_v44 = vmax.f32 %v1724_v61, 0.0  ;;  %2881 = vmatmul.mubr.bf16.gmra.mrb[172].mxu1 %v5946_v41 }
 0x2ff   : > { %v1945_v23 = vmax.f32 %v1726_v42, 0.0  ;;  %2888 = vmatprep.mubr.bf16.mxu1 %v5960_v53 }
 0x300   : > { %v6006_v50 = vpack.c.bf16 %v1944_v44, %v1942_v26 }
 0x301   : > { %v6008_v51 = vpack.c.bf16 %v1945_v23, %v1943_v4  ;;  %v1729_v62 = vpop.f32.mrb[68].mxu1 }
 0x302   : > { %v1730_v63 = vadd.f32 %v1729_v62, %v5795_v35  ;;  %v1731_v0 = vpop.f32.mrb[69].mxu1 }
 0x303   : > { %v1732_v1 = vadd.f32 %v1731_v0, %v5799_v37  ;;  %v1733_v2 = vpop.f32.mrb[70].mxu1  ;;  %2599 = vmatprep.mubr.bf16.mxu0 %v6008_v51 }
 0x304   : > { %v1734_v3 = vadd.f32 %v1733_v2, %v5795_v35  ;;  %v1735_v41 = vpop.f32.mrb[71].mxu1  ;;  %2600 = vmatmul.mubr.bf16.gmra.mrb[192].mxu0 %v6006_v50  ;;  %v1946_v43 = vmax.f32 %v1730_v63, 0.0 }
 0x305   : > { %v1736_v53 = vadd.f32 %v1735_v41, %v5799_v37  ;;  %v1947_v38 = vmax.f32 %v1732_v1, 0.0 }
 0x306   : > { %v1948_v57 = vmax.f32 %v1734_v3, 0.0  ;;  %2889 = vmatmul.mubr.bf16.gmra.mrb[176].mxu1 %v5958_v52 }
 0x307   : > { %v1949_v59 = vmax.f32 %v1736_v53, 0.0  ;;  %2896 = vmatprep.mubr.bf16.mxu1 %v5972_v10 }
 0x308   : > { %v6018_v6 = vpack.c.bf16 %v1948_v57, %v1946_v43 }
 0x309   : > { %v6020_v8 = vpack.c.bf16 %v1949_v59, %v1947_v38  ;;  %v1739_v15 = vpop.f32.mrb[72].mxu1 }
 0x30a   : > { %v1740_v16 = vadd.f32 %v1739_v15, %v5795_v35  ;;  %v1741_v17 = vpop.f32.mrb[73].mxu1 }
 0x30b   : > { %v1742_v18 = vadd.f32 %v1741_v17, %v5799_v37  ;;  %v1743_v19 = vpop.f32.mrb[74].mxu1  ;;  %2609 = vmatprep.mubr.bf16.mxu0 %v6020_v8 }
 0x30c   : > { %v1744_v20 = vadd.f32 %v1743_v19, %v5795_v35  ;;  %v1745_v52 = vpop.f32.mrb[75].mxu1  ;;  %2610 = vmatmul.mubr.bf16.gmra.mrb[196].mxu0 %v6018_v6  ;;  %v1950_v55 = vmax.f32 %v1740_v16, 0.0 }
 0x30d   : > { %v1746_v10 = vadd.f32 %v1745_v52, %v5799_v37  ;;  %v1951_v58 = vmax.f32 %v1742_v18, 0.0 }
 0x30e   : > { %v1952_v12 = vmax.f32 %v1744_v20, 0.0  ;;  %2897 = vmatmul.mubr.bf16.gmra.mrb[180].mxu1 %v5970_v7 }
 0x30f   : > { %v1953_v14 = vmax.f32 %v1746_v10, 0.0  ;;  %2904 = vmatprep.mubr.bf16.mxu1 %v5984_v22 }
 0x310   : > { %v6030_v5 = vpack.c.bf16 %v1952_v12, %v1950_v55 }
 0x311   : > { %v6032_v39 = vpack.c.bf16 %v1953_v14, %v1951_v58  ;;  %v1749_v28 = vpop.f32.mrb[76].mxu1 }
 0x312   : > { %v1750_v29 = vadd.f32 %v1749_v28, %v5795_v35  ;;  %v1751_v30 = vpop.f32.mrb[77].mxu1 }
 0x313   : > { %v1752_v31 = vadd.f32 %v1751_v30, %v5799_v37  ;;  %v1753_v32 = vpop.f32.mrb[78].mxu1  ;;  %2619 = vmatprep.mubr.bf16.mxu0 %v6032_v39 }
 0x314   : > { %v1754_v33 = vadd.f32 %v1753_v32, %v5795_v35  ;;  %v1755_v7 = vpop.f32.mrb[79].mxu1  ;;  %2620 = vmatmul.mubr.bf16.gmra.mrb[200].mxu0 %v6030_v5  ;;  %v1954_v11 = vmax.f32 %v1750_v29, 0.0 }
 0x315   : > { %v1756_v22 = vadd.f32 %v1755_v7, %v5799_v37  ;;  %v1955_v13 = vmax.f32 %v1752_v31, 0.0 }
 0x316   : > { %v1956_v25 = vmax.f32 %v1754_v33, 0.0  ;;  %2905 = vmatmul.mubr.bf16.gmra.mrb[184].mxu1 %v5982_v21 }
 0x317   : > { %v1957_v27 = vmax.f32 %v1756_v22, 0.0  ;;  %2912 = vmatprep.mubr.bf16.mxu1 %v5996_v40 }
 0x318   : > { %v6042_v34 = vpack.c.bf16 %v1956_v25, %v1954_v11 }
 0x319   : > { %v6044_v9 = vpack.c.bf16 %v1957_v27, %v1955_v13  ;;  %v1759_v45 = vpop.f32.mrb[80].mxu1 }
 0x31a   : > { %v1760_v46 = vadd.f32 %v1759_v45, %v5795_v35  ;;  %v1761_v60 = vpop.f32.mrb[81].mxu1 }
 0x31b   : > { %v1762_v47 = vadd.f32 %v1761_v60, %v5799_v37  ;;  %v1763_v49 = vpop.f32.mrb[82].mxu1  ;;  %2629 = vmatprep.mubr.bf16.mxu0 %v6044_v9 }
 0x31c   : > { %v1764_v61 = vadd.f32 %v1763_v49, %v5795_v35  ;;  %v1765_v21 = vpop.f32.mrb[83].mxu1  ;;  %2630 = vmatmul.mubr.bf16.gmra.mrb[204].mxu0 %v6042_v34  ;;  %v1958_v24 = vmax.f32 %v1760_v46, 0.0 }
 0x31d   : > { %v1766_v40 = vadd.f32 %v1765_v21, %v5799_v37  ;;  %v1959_v26 = vmax.f32 %v1762_v47, 0.0 }
 0x31e   : > { %v1960_v42 = vmax.f32 %v1764_v61, 0.0  ;;  %2913 = vmatmul.mubr.bf16.gmra.mrb[188].mxu1 %v5994_v36 }
 0x31f   : > { %v1961_v44 = vmax.f32 %v1766_v40, 0.0  ;;  %2920 = vmatprep.mubr.bf16.mxu1 %v6008_v51 }
 0x320   : > { %v6054_v4 = vpack.c.bf16 %v1960_v42, %v1958_v24 }
 0x321   : > { %v6056_v23 = vpack.c.bf16 %v1961_v44, %v1959_v26  ;;  %v1769_v62 = vpop.f32.mrb[84].mxu1 }
 0x322   : > { %v1770_v63 = vadd.f32 %v1769_v62, %v5795_v35  ;;  %v1771_v0 = vpop.f32.mrb[85].mxu1 }
 0x323   : > { %v1772_v1 = vadd.f32 %v1771_v0, %v5799_v37  ;;  %v1773_v2 = vpop.f32.mrb[86].mxu1  ;;  %2639 = vmatprep.mubr.bf16.mxu0 %v6056_v23 }
 0x324   : > { %v1774_v3 = vadd.f32 %v1773_v2, %v5795_v35  ;;  %v1775_v36 = vpop.f32.mrb[87].mxu1  ;;  %2640 = vmatmul.mubr.bf16.gmra.mrb[208].mxu0 %v6054_v4  ;;  %v1962_v41 = vmax.f32 %v1770_v63, 0.0 }
 0x325   : > { %v1776_v51 = vadd.f32 %v1775_v36, %v5799_v37  ;;  %v1963_v43 = vmax.f32 %v1772_v1, 0.0 }
 0x326   : > { %v1964_v53 = vmax.f32 %v1774_v3, 0.0  ;;  %2921 = vmatmul.mubr.bf16.gmra.mrb[192].mxu1 %v6006_v50 }
 0x327   : > { %v1965_v57 = vmax.f32 %v1776_v51, 0.0  ;;  %2928 = vmatprep.mubr.bf16.mxu1 %v6020_v8 }
 0x328   : > { %v6066_v38 = vpack.c.bf16 %v1964_v53, %v1962_v41 }
 0x329   : > { %v6068_v59 = vpack.c.bf16 %v1965_v57, %v1963_v43  ;;  %v1779_v15 = vpop.f32.mrb[88].mxu1 }
 0x32a   : > { %v1780_v16 = vadd.f32 %v1779_v15, %v5795_v35  ;;  %v1781_v17 = vpop.f32.mrb[89].mxu1 }
 0x32b   : > { %v1782_v18 = vadd.f32 %v1781_v17, %v5799_v37  ;;  %v1783_v19 = vpop.f32.mrb[90].mxu1  ;;  %2649 = vmatprep.mubr.bf16.mxu0 %v6068_v59 }
 0x32c   : > { %v1784_v20 = vadd.f32 %v1783_v19, %v5795_v35  ;;  %v1785_v50 = vpop.f32.mrb[91].mxu1  ;;  %2650 = vmatmul.mubr.bf16.gmra.mrb[212].mxu0 %v6066_v38  ;;  %v1966_v52 = vmax.f32 %v1780_v16, 0.0 }
 0x32d   : > { %v1786_v8 = vadd.f32 %v1785_v50, %v5799_v37  ;;  %v1967_v55 = vmax.f32 %v1782_v18, 0.0 }
 0x32e   : > { %v1968_v10 = vmax.f32 %v1784_v20, 0.0  ;;  %2929 = vmatmul.mubr.bf16.gmra.mrb[196].mxu1 %v6018_v6 }
 0x32f   : > { %v1969_v12 = vmax.f32 %v1786_v8, 0.0  ;;  %2936 = vmatprep.mubr.bf16.mxu1 %v6032_v39 }
 0x330   : > { %v6078_v58 = vpack.c.bf16 %v1968_v10, %v1966_v52 }
 0x331   : > { %v6080_v14 = vpack.c.bf16 %v1969_v12, %v1967_v55  ;;  %v1789_v28 = vpop.f32.mrb[92].mxu1 }
 0x332   : > { %v1790_v29 = vadd.f32 %v1789_v28, %v5795_v35  ;;  %v1791_v30 = vpop.f32.mrb[93].mxu1 }
 0x333   : > { %v1792_v31 = vadd.f32 %v1791_v30, %v5799_v37  ;;  %v1793_v32 = vpop.f32.mrb[94].mxu1  ;;  %2659 = vmatprep.mubr.bf16.mxu0 %v6080_v14 }
 0x334   : > { %v1794_v33 = vadd.f32 %v1793_v32, %v5795_v35  ;;  %v1795_v6 = vpop.f32.mrb[95].mxu1  ;;  %2660 = vmatmul.mubr.bf16.gmra.mrb[216].mxu0 %v6078_v58  ;;  %v1970_v7 = vmax.f32 %v1790_v29, 0.0  ;;  %v6131_v29 = vld [vmem:[#allocation8] sm:$0x7] }
 0x335   : > { %v1796_v39 = vadd.f32 %v1795_v6, %v5799_v37  ;;  %v1971_v11 = vmax.f32 %v1792_v31, 0.0 }
 0x336   : > { %v1972_v22 = vmax.f32 %v1794_v33, 0.0  ;;  %2937 = vmatmul.mubr.bf16.gmra.mrb[200].mxu1 %v6030_v5 }
 0x337   : > { %v1973_v25 = vmax.f32 %v1796_v39, 0.0  ;;  %2944 = vmatprep.mubr.bf16.mxu1 %v6044_v9 }
 0x338   : > { %v6090_v13 = vpack.c.bf16 %v1972_v22, %v1970_v7 }
 0x339   : > { %v6092_v27 = vpack.c.bf16 %v1973_v25, %v1971_v11  ;;  %v1799_v45 = vpop.f32.mrb[96].mxu1 }
 0x33a   : > { %v1800_v46 = vadd.f32 %v1799_v45, %v5795_v35  ;;  %v1801_v60 = vpop.f32.mrb[97].mxu1 }
 0x33b   : > { %v1802_v47 = vadd.f32 %v1801_v60, %v5799_v37  ;;  %v1803_v49 = vpop.f32.mrb[98].mxu1  ;;  %2669 = vmatprep.mubr.bf16.mxu0 %v6092_v27 }
 0x33c   : > { %v1804_v61 = vadd.f32 %v1803_v49, %v5795_v35  ;;  %v1805_v5 = vpop.f32.mrb[99].mxu1  ;;  %2670 = vmatmul.mubr.bf16.gmra.mrb[220].mxu0 %v6090_v13  ;;  %v1974_v21 = vmax.f32 %v1800_v46, 0.0 }
 0x33d   : > { %v1806_v9 = vadd.f32 %v1805_v5, %v5799_v37  ;;  %v1975_v24 = vmax.f32 %v1802_v47, 0.0 }
 0x33e   : > { %v1976_v40 = vmax.f32 %v1804_v61, 0.0  ;;  %2945 = vmatmul.mubr.bf16.gmra.mrb[204].mxu1 %v6042_v34 }
 0x33f   : > { %v1977_v42 = vmax.f32 %v1806_v9, 0.0  ;;  %2952 = vmatprep.mubr.bf16.mxu1 %v6056_v23 }
 0x340   : > { %v6102_v26 = vpack.c.bf16 %v1976_v40, %v1974_v21 }
 0x341   : > { %v6104_v44 = vpack.c.bf16 %v1977_v42, %v1975_v24  ;;  %v1809_v62 = vpop.f32.mrb[100].mxu1 }
 0x342   : > { %v1810_v63 = vadd.f32 %v1809_v62, %v5795_v35  ;;  %v1811_v0 = vpop.f32.mrb[101].mxu1 }
 0x343   : > { %v1812_v1 = vadd.f32 %v1811_v0, %v5799_v37  ;;  %v1813_v2 = vpop.f32.mrb[102].mxu1  ;;  %2679 = vmatprep.mubr.bf16.mxu0 %v6104_v44 }
 0x344   : > { %v1814_v34 = vadd.f32 %v1813_v2, %v5795_v35  ;;  %v1815_v3 = vpop.f32.mrb[103].mxu1  ;;  %2680 = vmatmul.mubr.bf16.gmra.mrb[224].mxu0 %v6102_v26  ;;  %v1978_v36 = vmax.f32 %v1810_v63, 0.0 }
 0x345   : > { %v1816_v23 = vadd.f32 %v1815_v3, %v5799_v37  ;;  %v1979_v41 = vmax.f32 %v1812_v1, 0.0 }
 0x346   : > { %v1980_v51 = vmax.f32 %v1814_v34, 0.0  ;;  %2953 = vmatmul.mubr.bf16.gmra.mrb[208].mxu1 %v6054_v4 }
 0x347   : > { %v1981_v53 = vmax.f32 %v1816_v23, 0.0  ;;  %2960 = vmatprep.mubr.bf16.mxu1 %v6068_v59 }
 0x348   : > { %v6114_v43 = vpack.c.bf16 %v1980_v51, %v1978_v36 }
 0x349   : > { %v6116_v57 = vpack.c.bf16 %v1981_v53, %v1979_v41  ;;  %v1819_v15 = vpop.f32.mrb[104].mxu1 }
 0x34a   : > { %v1820_v16 = vadd.f32 %v1819_v15, %v5795_v35  ;;  %v1821_v17 = vpop.f32.mrb[105].mxu1 }
 0x34b   : > { %v1822_v18 = vadd.f32 %v1821_v17, %v5799_v37  ;;  %v1823_v19 = vpop.f32.mrb[106].mxu1  ;;  %2689 = vmatprep.mubr.bf16.mxu0 %v6116_v57 }
 0x34c   : > { %v1824_v4 = vadd.f32 %v1823_v19, %v5795_v35  ;;  %v1825_v20 = vpop.f32.mrb[107].mxu1  ;;  %2690 = vmatmul.mubr.bf16.gmra.mrb[228].mxu0 %v6114_v43  ;;  %v1982_v50 = vmax.f32 %v1820_v16, 0.0 }
 0x34d   : > { %v1826_v59 = vadd.f32 %v1825_v20, %v5799_v37  ;;  %v1983_v52 = vmax.f32 %v1822_v18, 0.0 }
 0x34e   : > { %v1984_v8 = vmax.f32 %v1824_v4, 0.0  ;;  %2961 = vmatmul.mubr.bf16.gmra.mrb[212].mxu1 %v6066_v38 }
 0x34f   : > { %v1985_v10 = vmax.f32 %v1826_v59, 0.0  ;;  %2968 = vmatprep.mubr.bf16.mxu1 %v6080_v14  ;;  %v6140_v14 = vrot.slane %v6131_v29, %v5537_v54 }
 0x350   : > { %v6127_v55 = vpack.c.bf16 %v1984_v8, %v1982_v50 }
 0x351   : > { %v6129_v12 = vpack.c.bf16 %v1985_v10, %v1983_v52  ;;  %v1829_v28 = vpop.f32.mrb[108].mxu1 }
 0x352   : > { %v1830_v30 = vadd.f32 %v1829_v28, %v5795_v35  ;;  %v1831_v31 = vpop.f32.mrb[109].mxu1 }
 0x353   : > { %v1832_v32 = vadd.f32 %v1831_v31, %v5799_v37  ;;  %v1833_v33 = vpop.f32.mrb[110].mxu1  ;;  %2699 = vmatprep.mubr.bf16.mxu0 %v6129_v12 }
 0x354   : > { %v1834_v38 = vadd.f32 %v1833_v33, %v5795_v35  ;;  %v1835_v6 = vpop.f32.mrb[111].mxu1  ;;  %2700 = vmatmul.mubr.bf16.gmra.mrb[232].mxu0 %v6127_v55  ;;  %v1986_v7 = vmax.f32 %v1830_v30, 0.0 }
 0x355   : > { %v1836_v39 = vadd.f32 %v1835_v6, %v5799_v37  ;;  %v1987_v11 = vmax.f32 %v1832_v32, 0.0 }
 0x356   : > { %v1988_v22 = vmax.f32 %v1834_v38, 0.0  ;;  %2969 = vmatmul.mubr.bf16.gmra.mrb[216].mxu1 %v6078_v58 }
 0x357   : > { %v1989_v25 = vmax.f32 %v1836_v39, 0.0  ;;  %v2441_v45 = vpop.f32.mrb[128].mxu0  ;;  %2976 = vmatprep.mubr.bf16.mxu1 %v6092_v27 }
 0x358   : > { %v6150_v54 = vpack.c.bf16 %v1988_v22, %v1986_v7  ;;  %v2442_v46 = vadd.f32 %v2441_v45, %v6140_v14  ;;  %v6153_v60 = vpop.f32.mrb[129].mxu0 }
 0x359   : > { %v6155_v47 = vpack.c.bf16 %v1989_v25, %v1987_v11  ;;  %v1839_v58 = vpop.f32.mrb[112].mxu1  ;;  %v2445_v49 = vpop.f32.mrb[130].mxu0 }
 0x35a   : > { %3049 = vst [vmem:[%s6147_s14] sm:$0xff] %v2442_v46  ;;  %v1840_v61 = vadd.f32 %v1839_v58, %v5795_v35  ;;  %v2446_v5 = vadd.f32 %v2445_v49, %v6140_v14  ;;  %v1841_v9 = vpop.f32.mrb[113].mxu1  ;;  %v6160_v21 = vpop.f32.mrb[131].mxu0 }
 0x35b   : > { %v1842_v27 = vadd.f32 %v1841_v9, %v5799_v37  ;;  %v1843_v40 = vpop.f32.mrb[114].mxu1  ;;  %2709 = vmatprep.mubr.bf16.mxu0 %v6155_v47 }
 0x35c   : > { %3050 = vst [vmem:[%s6147_s14 + $0x8] sm:$0xff] %v2446_v5  ;;  %v1844_v24 = vadd.f32 %v1843_v40, %v5795_v35  ;;  %v1845_v42 = vpop.f32.mrb[115].mxu1  ;;  %2710 = vmatmul.mubr.bf16.gmra.mrb[236].mxu0 %v6150_v54  ;;  %v1990_v63 = vmax.f32 %v1840_v61, 0.0 }
 0x35d   : > { %v1846_v62 = vadd.f32 %v1845_v42, %v5799_v37  ;;  %v1991_v1 = vmax.f32 %v1842_v27, 0.0 }
 0x35e   : > { %v1992_v0 = vmax.f32 %v1844_v24, 0.0  ;;  %2977 = vmatmul.mubr.bf16.gmra.mrb[220].mxu1 %v6090_v13 }
 0x35f   : > { %v1993_v2 = vmax.f32 %v1846_v62, 0.0  ;;  %v2451_v34 = vpop.f32.mrb[132].mxu0  ;;  %2984 = vmatprep.mubr.bf16.mxu1 %v6104_v44 }
 0x360   : > { %v6170_v3 = vpack.c.bf16 %v1992_v0, %v1990_v63  ;;  %v2452_v23 = vadd.f32 %v2451_v34, %v6140_v14  ;;  %v6173_v36 = vpop.f32.mrb[133].mxu0  ;;  %v6219_v63 = vrot.slane %v6131_v29, %v5540_v56 }
 0x361   : > { %v6175_v51 = vpack.c.bf16 %v1993_v2, %v1991_v1  ;;  %v1849_v41 = vpop.f32.mrb[116].mxu1  ;;  %v2455_v53 = vpop.f32.mrb[134].mxu0  ;;  %v2146_v2 = vsub.s32 2, %v5530_v48 }
 0x362   : > { %3051 = vst [vmem:[%s6147_s14 + $0x10] sm:$0xff] %v2452_v23  ;;  %v1850_v15 = vadd.f32 %v1849_v41, %v5795_v35  ;;  %v2456_v13 = vadd.f32 %v2455_v53, %v6140_v14  ;;  %v1851_v16 = vpop.f32.mrb[117].mxu1  ;;  %v6180_v17 = vpop.f32.mrb[135].mxu0 }
 0x363   : > { %v1852_v44 = vadd.f32 %v1851_v16, %v5799_v37  ;;  %v1853_v18 = vpop.f32.mrb[118].mxu1  ;;  %2719 = vmatprep.mubr.bf16.mxu0 %v6175_v51  ;;  %v6237_v48 = vrot.slane %v6131_v29, %v2146_v2 }
 0x364   : > { %3052 = vst [vmem:[%s6147_s14 + $0x18] sm:$0xff] %v2456_v13  ;;  %v1854_v19 = vadd.f32 %v1853_v18, %v5795_v35  ;;  %v1855_v4 = vpop.f32.mrb[119].mxu1  ;;  %2720 = vmatmul.mubr.bf16.gmra.mrb[240].mxu0 %v6170_v3  ;;  %v1994_v59 = vmax.f32 %v1850_v15, 0.0  ;;  %v2444_v15 = vadd.f32 %v6153_v60, %v6219_v63 }
 0x365   : > { %v1856_v20 = vadd.f32 %v1855_v4, %v5799_v37  ;;  %v1995_v8 = vmax.f32 %v1852_v44, 0.0  ;;  %v2448_v4 = vadd.f32 %v6160_v21, %v6219_v63 }
 0x366   : > { %v1996_v50 = vmax.f32 %v1854_v19, 0.0  ;;  %2985 = vmatmul.mubr.bf16.gmra.mrb[224].mxu1 %v6102_v26 }
 0x367   : > { %v1997_v52 = vmax.f32 %v1856_v20, 0.0  ;;  %v2461_v10 = vpop.f32.mrb[136].mxu0  ;;  %2992 = vmatprep.mubr.bf16.mxu1 %v6116_v57 }
 0x368   : > { %v6190_v28 = vpack.c.bf16 %v1996_v50, %v1994_v59  ;;  %v2462_v30 = vadd.f32 %v2461_v10, %v6140_v14  ;;  %v6193_v31 = vpop.f32.mrb[137].mxu0  ;;  %v4606_v59 = vld [vmem:[%s5175_s20] sm:$0xff] }
 0x369   : > { %v6195_v32 = vpack.c.bf16 %v1997_v52, %v1995_v8  ;;  %v1859_v33 = vpop.f32.mrb[120].mxu1  ;;  %v2465_v38 = vpop.f32.mrb[138].mxu0  ;;  %v6250_v50 = vadd.f32 %v4606_v59, %v2444_v15  ;;  %v4612_v15 = vld [vmem:[%s5175_s20 + $0x30] sm:$0xff] }
 0x36a   : > { %3053 = vst [vmem:[%s6147_s14 + $0x20] sm:$0xff] %v2462_v30  ;;  %v1860_v6 = vadd.f32 %v1859_v33, %v5795_v35  ;;  %v2466_v26 = vadd.f32 %v2465_v38, %v6140_v14  ;;  %v1861_v39 = vpop.f32.mrb[121].mxu1  ;;  %v6200_v7 = vpop.f32.mrb[139].mxu0  ;;  %v4607_v30 = vld [vmem:[%s5175_s20 + $0x8] sm:$0xff] }
 0x36b   : > { %v1862_v57 = vadd.f32 %v1861_v39, %v5799_v37  ;;  %v1863_v22 = vpop.f32.mrb[122].mxu1  ;;  %2729 = vmatprep.mubr.bf16.mxu0 %v6195_v32 }
 0x36c   : > { %3054 = vst [vmem:[%s6147_s14 + $0x28] sm:$0xff] %v2466_v26  ;;  %v1864_v11 = vadd.f32 %v1863_v22, %v5795_v35  ;;  %v1865_v25 = vpop.f32.mrb[123].mxu1  ;;  %2730 = vmatmul.mubr.bf16.gmra.mrb[244].mxu0 %v6190_v28  ;;  %v1998_v46 = vmax.f32 %v1860_v6, 0.0  ;;  %v4608_v26 = vld [vmem:[%s5175_s20 + $0x10] sm:$0xff]  ;;  %v4609_v22 = vld [vmem:[%s5175_s20 + $0x18] sm:$0xff] }
 0x36d   : > { %v1866_v45 = vadd.f32 %v1865_v25, %v5799_v37  ;;  %v1999_v49 = vmax.f32 %v1862_v57, 0.0  ;;  %v6265_v39 = vadd.f32 %v4608_v26, %v2448_v4  ;;  %v2454_v57 = vadd.f32 %v6173_v36, %v6219_v63  ;;  %v4615_v26 = vld [vmem:[%s5175_s20 + $0x50] sm:$0xff] }
 0x36e   : > { %v2000_v58 = vmax.f32 %v1864_v11, 0.0  ;;  %2993 = vmatmul.mubr.bf16.gmra.mrb[228].mxu1 %v6114_v43  ;;  %v3241_v25 = vmul.f32 %v6250_v50, %v6250_v50  ;;  %v2468_v4 = vadd.f32 %v6200_v7, %v6219_v63 }
 0x36f   : > { %v2001_v61 = vmax.f32 %v1866_v45, 0.0  ;;  %v2471_v5 = vpop.f32.mrb[140].mxu0  ;;  %3000 = vmatprep.mubr.bf16.mxu1 %v6129_v12  ;;  %v3243_v2 = vmul.f32 %v6265_v39, %v6265_v39 }
 0x370   : > { %v6210_v9 = vpack.c.bf16 %v2000_v58, %v1998_v46  ;;  %v2472_v27 = vadd.f32 %v2471_v5, %v6140_v14  ;;  %v6213_v40 = vpop.f32.mrb[141].mxu0 }
 0x371   : > { %v6215_v24 = vpack.c.bf16 %v2001_v61, %v1999_v49  ;;  %v1869_v42 = vpop.f32.mrb[124].mxu1  ;;  %v2475_v62 = vpop.f32.mrb[142].mxu0 }
 0x372   : > { %3055 = vst [vmem:[%s6147_s14 + $0x30] sm:$0xff] %v2472_v27  ;;  %v1870_v43 = vadd.f32 %v1869_v42, %v5795_v35  ;;  %v2476_v12 = vadd.f32 %v2475_v62, %v6140_v14  ;;  %v1871_v0 = vpop.f32.mrb[125].mxu1  ;;  %v6224_v1 = vpop.f32.mrb[143].mxu0  ;;  %v4610_v42 = vld [vmem:[%s5175_s20 + $0x20] sm:$0xff] }
 0x373   : > { %v1872_v34 = vadd.f32 %v1871_v0, %v5799_v37  ;;  %v1873_v23 = vpop.f32.mrb[126].mxu1  ;;  %2739 = vmatprep.mubr.bf16.mxu0 %v6215_v24  ;;  %v6286_v62 = vadd.f32 %v4610_v42, %v2454_v57  ;;  %v6332_v57 = vadd.f32 %v4615_v26, %v2468_v4 }
 0x374   : > { %3056 = vst [vmem:[%s6147_s14 + $0x38] sm:$0xff] %v2476_v12  ;;  %v1874_v41 = vadd.f32 %v1873_v23, %v5795_v35  ;;  %v1875_v56 = vpop.f32.mrb[127].mxu1  ;;  %2740 = vmatmul.mubr.bf16.gmra.mrb[248].mxu0 %v6210_v9  ;;  %v2002_v13 = vmax.f32 %v1870_v43, 0.0 }
 0x375   : > { %v1876_v53 = vadd.f32 %v1875_v56, %v5799_v37  ;;  %v2003_v44 = vmax.f32 %v1872_v34, 0.0  ;;  %v4611_v34 = vld [vmem:[%s5175_s20 + $0x28] sm:$0xff] }
 0x376   : > { %v2004_v16 = vmax.f32 %v1874_v41, 0.0  ;;  %3001 = vmatmul.mubr.bf16.gmra.mrb[232].mxu1 %v6127_v55 }
 0x377   : > { %v2005_v18 = vmax.f32 %v1876_v53, 0.0  ;;  %v2481_v35 = vpop.f32.mrb[144].mxu0  ;;  %3008 = vmatprep.mubr.bf16.mxu1 %v6155_v47 }
 0x378   : > { %v6240_v19 = vpack.c.bf16 %v2004_v16, %v2002_v13  ;;  %v2482_v37 = vadd.f32 %v2481_v35, %v6140_v14  ;;  %v6243_v60 = vpop.f32.mrb[145].mxu0  ;;  %v2464_v16 = vadd.f32 %v6193_v31, %v6219_v63  ;;  %v3245_v35 = vmul.f32 %v6286_v62, %v6286_v62 }
 0x379   : > { %v6247_v55 = vpack.c.bf16 %v2005_v18, %v2003_v44  ;;  %v2485_v29 = vpop.f32.mrb[146].mxu0  ;;  %v2794_v20 = vpop.f32.mrb[128].mxu1  ;;  %v4613_v44 = vld [vmem:[%s5175_s20 + $0x38] sm:$0xff] }
 0x37a   : > { %3057 = vst [vmem:[%s6147_s14 + $0x40] sm:$0xff] %v2482_v37  ;;  %v2486_v47 = vadd.f32 %v2485_v29, %v6140_v14  ;;  %v2795_v8 = vadd.f32 %v2794_v20, %v6237_v48  ;;  %v6255_v52 = vpop.f32.mrb[147].mxu0  ;;  %v2796_v10 = vpop.f32.mrb[129].mxu1 }
 0x37b   : > { %2749 = vmatprep.mubr.bf16.mxu0 %v6247_v55  ;;  %v2797_v21 = vpop.f32.mrb[130].mxu1 }
 0x37c   : > { %3058 = vst [vmem:[%s6147_s14 + $0x48] sm:$0xff] %v2486_v47  ;;  %v6260_v33 = vadd.f32 %v4607_v30, %v2795_v8  ;;  %v2798_v38 = vadd.f32 %v2797_v21, %v6237_v48  ;;  %2750 = vmatmul.mubr.bf16.gmra.mrb[252].mxu0 %v6240_v19  ;;  %v2799_v6 = vpop.f32.mrb[131].mxu1  ;;  %v4614_v47 = vld [vmem:[%s5175_s20 + $0x40] sm:$0xff] }
 0x37d   : > { %v6322_v8 = vadd.f32 %v4614_v47, %v2464_v16  ;;  %v2484_v47 = vadd.f32 %v6243_v60, %v6219_v63 }
 0x37e   : > { %v6270_v11 = vadd.f32 %v4609_v22, %v2798_v38  ;;  %3009 = vmatmul.mubr.bf16.gmra.mrb[236].mxu1 %v6150_v54  ;;  %v3242_v45 = vmul.f32 %v6260_v33, %v6260_v33  ;;  %v2458_v54 = vadd.f32 %v6180_v17, %v6219_v63 }
 0x37f   : > { %v2491_v46 = vpop.f32.mrb[148].mxu0  ;;  %3016 = vmatprep.mubr.bf16.mxu1 %v6175_v51 }
 0x380   : > { %v2492_v58 = vadd.f32 %v2491_v46, %v6140_v14  ;;  %v6279_v49 = vpop.f32.mrb[149].mxu0  ;;  %v3369_v36 = vadd.f32 %v3242_v45, %v3241_v25  ;;  %v3244_v61 = vmul.f32 %v6270_v11, %v6270_v11  ;;  %v6301_v13 = vadd.f32 %v4612_v15, %v2458_v54  ;;  %v4616_v25 = vld [vmem:[%s5175_s20 + $0x48] sm:$0xff] }
 0x381   : > { %v2495_v5 = vpop.f32.mrb[150].mxu0  ;;  %v2802_v27 = vpop.f32.mrb[132].mxu1  ;;  %v2474_v54 = vadd.f32 %v6213_v40, %v6219_v63  ;;  %v2478_v40 = vadd.f32 %v6224_v1, %v6219_v63 }
 0x382   : > { %3059 = vst [vmem:[%s6147_s14 + $0x50] sm:$0xff] %v2492_v58  ;;  %v2496_v51 = vadd.f32 %v2495_v5, %v6140_v14  ;;  %v2803_v43 = vadd.f32 %v2802_v27, %v6237_v48  ;;  %v6291_v12 = vpop.f32.mrb[151].mxu0  ;;  %v2804_v0 = vpop.f32.mrb[133].mxu1  ;;  %3370 = vadd.xlane.f32.xlu0 %v3369_v36  ;;  %v3372_v53 = vadd.f32 %v3244_v61, %v3243_v2  ;;  %v4617_v5 = vld [vmem:[%s5175_s20 + $0x58] sm:$0xff] }
 0x383   : > { %v2805_v17 = vpop.f32.mrb[134].mxu1  ;;  %v3247_v6 = vmul.f32 %v6301_v13, %v6301_v13  ;;  %v3249_v61 = vmul.f32 %v6322_v8, %v6322_v8 }
 0x384   : > { %3060 = vst [vmem:[%s6147_s14 + $0x58] sm:$0xff] %v2496_v51  ;;  %v6297_v23 = vadd.f32 %v4611_v34, %v2803_v43  ;;  %v2806_v41 = vadd.f32 %v2805_v17, %v6237_v48  ;;  %v2807_v56 = vpop.f32.mrb[135].mxu1  ;;  %v3251_v43 = vmul.f32 %v6332_v57, %v6332_v57 }
 0x386   : > { %v6306_v18 = vadd.f32 %v4613_v44, %v2806_v41  ;;  %3017 = vmatmul.mubr.bf16.gmra.mrb[240].mxu1 %v6170_v3  ;;  %3373 = vadd.xlane.f32.xlu0 %v3372_v53  ;;  %v3246_v37 = vmul.f32 %v6297_v23, %v6297_v23 }
 0x387   : > { %v2501_v29 = vpop.f32.mrb[152].mxu0  ;;  %3024 = vmatprep.mubr.bf16.mxu1 %v6195_v32 }
 0x388   : > { %v2502_v31 = vadd.f32 %v2501_v29, %v6140_v14  ;;  %v6317_v20 = vpop.f32.mrb[153].mxu0  ;;  %v3375_v59 = vadd.f32 %v3246_v37, %v3245_v35  ;;  %v3248_v3 = vmul.f32 %v6306_v18, %v6306_v18  ;;  %v4619_v37 = vld [vmem:[%s5175_s20 + $0x70] sm:$0xff]  ;;  %v4620_v29 = vld [vmem:[%s5175_s20 + $0x68] sm:$0xff] }
 0x389   : > { %v2505_v10 = vpop.f32.mrb[154].mxu0  ;;  %v2810_v21 = vpop.f32.mrb[136].mxu1  ;;  %v6368_v4 = vadd.f32 %v4619_v37, %v2478_v40  ;;  %v2498_v37 = vadd.f32 %v6291_v12, %v6219_v63 }
 0x38a   : > { %3061 = vst [vmem:[%s6147_s14 + $0x60] sm:$0xff] %v2502_v31  ;;  %v2506_v7 = vadd.f32 %v2505_v10, %v6140_v14  ;;  %v2811_v32 = vadd.f32 %v2810_v21, %v6237_v48  ;;  %v6327_v30 = vpop.f32.mrb[155].mxu0  ;;  %v2812_v38 = vpop.f32.mrb[137].mxu1  ;;  %3376 = vadd.xlane.f32.xlu1 %v3375_v59  ;;  %v3378_v36 = vadd.f32 %v3248_v3, %v3247_v6  ;;  %v4621_v10 = vld [vmem:[%s5175_s20 + $0x78] sm:$0xff] }
 0x38b   : > { %v2813_v22 = vpop.f32.mrb[138].mxu1  ;;  %v2488_v38 = vadd.f32 %v6255_v52, %v6219_v63  ;;  %v4622_v52 = vld [vmem:[%s5175_s20 + $0x80] sm:$0xff] }
 0x38c   : > { %3062 = vst [vmem:[%s6147_s14 + $0x68] sm:$0xff] %v2506_v7  ;;  %v6336_v45 = vadd.f32 %v4616_v25, %v2811_v32  ;;  %v2814_v46 = vadd.f32 %v2813_v22, %v6237_v48  ;;  %v2815_v58 = vpop.f32.mrb[139].mxu1 }
 0x38e   : > { %v6344_v27 = vadd.f32 %v4617_v5, %v2814_v46  ;;  %3025 = vmatmul.mubr.bf16.gmra.mrb[244].mxu1 %v6190_v28  ;;  %3379 = vadd.xlane.f32.xlu1 %v3378_v36  ;;  %v3250_v42 = vmul.f32 %v6336_v45, %v6336_v45  ;;  %v6396_v36 = vadd.f32 %v4622_v52, %v2484_v47 }
 0x38f   : > { %v2511_v51 = vpop.f32.mrb[156].mxu0  ;;  %3032 = vmatprep.mubr.bf16.mxu1 %v6215_v24  ;;  %v4618_v24 = vld [vmem:[%s5175_s20 + $0x60] sm:$0xff] }
 0x390   : > { %v2512_v0 = vadd.f32 %v2511_v51, %v6140_v14  ;;  %v6355_v2 = vpop.f32.mrb[157].mxu0  ;;  %v3381_v17 = vadd.f32 %v3250_v42, %v3249_v61  ;;  %v3252_v28 = vmul.f32 %v6344_v27, %v6344_v27  ;;  %v6360_v56 = vadd.f32 %v4618_v24, %v2474_v54  ;;  %v4623_v51 = vld [vmem:[%s5175_s20 + $0x90] sm:$0xff]  ;;  %v4625_v24 = vld [vmem:[%s5175_s20 + $0x98] sm:$0xff] }
 0x391   : > { %v2515_v34 = vpop.f32.mrb[158].mxu0  ;;  %v2818_v41 = vpop.f32.mrb[140].mxu1 }
 0x392   : > { %3063 = vst [vmem:[%s6147_s14 + $0x70] sm:$0xff] %v2512_v0  ;;  %v2516_v53 = vadd.f32 %v2515_v34, %v6140_v14  ;;  %v2819_v1 = vadd.f32 %v2818_v41, %v6237_v48  ;;  %v6365_v15 = vpop.f32.mrb[159].mxu0  ;;  %v2820_v16 = vpop.f32.mrb[141].mxu1  ;;  %3382 = vadd.xlane.f32.xlu0 %v3381_v17  ;;  %v3384_v44 = vadd.f32 %v3252_v28, %v3251_v43  ;;  %v4624_v0 = vld [vmem:[%s5175_s20 + $0x88] sm:$0xff] }
 0x393   : > { %v2821_v35 = vpop.f32.mrb[142].mxu1  ;;  %v3253_v7 = vmul.f32 %v6360_v56, %v6360_v56  ;;  %v6404_v43 = vadd.f32 %v4623_v51, %v2488_v38  ;;  %v2494_v41 = vadd.f32 %v6279_v49, %v6219_v63 }
 0x394   : > { %3064 = vst [vmem:[%s6147_s14 + $0x78] sm:$0xff] %v2516_v53  ;;  %v6372_v31 = vadd.f32 %v4620_v29, %v2819_v1  ;;  %v2822_v59 = vadd.f32 %v2821_v35, %v6237_v48  ;;  %v2823_v3 = vpop.f32.mrb[143].mxu1  ;;  %3385 = vadd.xlane.f32.xlu1 %v3384_v44  ;;  %v3257_v1 = vmul.f32 %v6396_v36, %v6396_v36 }
 0x395   : > { %v3259_v35 = vmul.f32 %v6404_v43, %v6404_v43 }
 0x396   : > { %v6378_v21 = vadd.f32 %v4621_v10, %v2822_v59  ;;  %3033 = vmatmul.mubr.bf16.gmra.mrb[248].mxu1 %v6210_v9  ;;  %v3254_v32 = vmul.f32 %v6372_v31, %v6372_v31  ;;  %v3255_v9 = vmul.f32 %v6368_v4, %v6368_v4  ;;  %v4626_v10 = vld [vmem:[%s5175_s20 + $0xa0] sm:$0xff] }
 0x397   : > { %v2521_v6 = vpop.f32.mrb[160].mxu0  ;;  %3040 = vmatprep.mubr.bf16.mxu1 %v6247_v55 }
 0x398   : > { %v2522_v60 = vadd.f32 %v2521_v6, %v6140_v14  ;;  %v6389_v26 = vpop.f32.mrb[161].mxu0  ;;  %v3387_v22 = vadd.f32 %v3254_v32, %v3253_v7  ;;  %v3256_v25 = vmul.f32 %v6378_v21, %v6378_v21  ;;  %v6431_v7 = vadd.f32 %v4626_v10, %v2494_v41 }
 0x399   : > { %v2525_v46 = vpop.f32.mrb[162].mxu0  ;;  %v2826_v58 = vpop.f32.mrb[144].mxu1 }
 0x39a   : > { %3065 = vst [vmem:[%s6147_s14 + $0x80] sm:$0xff] %v2522_v60  ;;  %v2526_v55 = vadd.f32 %v2525_v46, %v6140_v14  ;;  %v2827_v61 = vadd.f32 %v2826_v58, %v6237_v48  ;;  %v6401_v54 = vpop.f32.mrb[163].mxu0  ;;  %v2828_v5 = vpop.f32.mrb[145].mxu1  ;;  %3388 = vadd.xlane.f32.xlu0 %v3387_v22  ;;  %v3390_v42 = vadd.f32 %v3256_v25, %v3255_v9  ;;  %v4627_v9 = vld [vmem:[%s5175_s20 + $0xb0] sm:$0xff]  ;;  %v4628_v46 = vld [vmem:[%s5175_s20 + $0xa8] sm:$0xff] }
 0x39b   : > { %v2829_v40 = vpop.f32.mrb[146].mxu1  ;;  %v6439_v25 = vadd.f32 %v4627_v9, %v2498_v37  ;;  %v4629_v5 = vld [vmem:[%s5175_s20 + $0xb8] sm:$0xff]  ;;  %v3261_v51 = vmul.f32 %v6431_v7, %v6431_v7  ;;  %v2514_v9 = vadd.f32 %v6355_v2, %v6219_v63 }
 0x39c   : > { %3066 = vst [vmem:[%s6147_s14 + $0x88] sm:$0xff] %v2526_v55  ;;  %v6408_v17 = vadd.f32 %v4624_v0, %v2827_v61  ;;  %v2830_v28 = vadd.f32 %v2829_v40, %v6237_v48  ;;  %v2831_v34 = vpop.f32.mrb[147].mxu1  ;;  %3391 = vadd.xlane.f32.xlu1 %v3390_v42  ;;  %v2504_v61 = vadd.f32 %v6317_v20, %v6219_v63 }
 0x39d   : > { %v2508_v0 = vadd.f32 %v6327_v30, %v6219_v63 }
 0x39e   : > { %v6414_v53 = vadd.f32 %v4625_v24, %v2830_v28  ;;  %3041 = vmatmul.mubr.bf16.gmra.mrb[252].mxu1 %v6240_v19  ;;  %v3258_v16 = vmul.f32 %v6408_v17, %v6408_v17  ;;  %v3263_v24 = vmul.f32 %v6439_v25, %v6439_v25 }
 0x39f   : > { %v2531_v44 = vpop.f32.mrb[164].mxu0 }
 0x3a0   : > { %v2532_v49 = vadd.f32 %v2531_v44, %v6140_v14  ;;  %v6426_v29 = vpop.f32.mrb[165].mxu0  ;;  %v3393_v59 = vadd.f32 %v3258_v16, %v3257_v1  ;;  %v3260_v19 = vmul.f32 %v6414_v53, %v6414_v53 }
 0x3a1   : > { %v2535_v3 = vpop.f32.mrb[166].mxu0  ;;  %v2834_v47 = vpop.f32.mrb[148].mxu1 }
 0x3a2   : > { %3067 = vst [vmem:[%s6147_s14 + $0x90] sm:$0xff] %v2532_v49  ;;  %v2536_v32 = vadd.f32 %v2535_v3, %v6140_v14  ;;  %v2835_v12 = vadd.f32 %v2834_v47, %v6237_v48  ;;  %v6436_v38 = vpop.f32.mrb[167].mxu0  ;;  %v2836_v6 = vpop.f32.mrb[149].mxu1  ;;  %3394 = vadd.xlane.f32.xlu0 %v3393_v59  ;;  %v3396_v60 = vadd.f32 %v3260_v19, %v3259_v35  ;;  %v4630_v35 = vld [vmem:[%s5175_s20 + $0xc0] sm:$0xff]  ;;  %v4631_v47 = vld [vmem:[%s5175_s20 + $0xd0] sm:$0xff] }
 0x3a3   : > { %v2837_v22 = vpop.f32.mrb[150].mxu1  ;;  %v6465_v37 = vadd.f32 %v4630_v35, %v2504_v61  ;;  %v6473_v10 = vadd.f32 %v4631_v47, %v2508_v0 }
 0x3a4   : > { %3068 = vst [vmem:[%s6147_s14 + $0x98] sm:$0xff] %v2536_v32  ;;  %v6443_v58 = vadd.f32 %v4628_v46, %v2835_v12  ;;  %v2838_v52 = vadd.f32 %v2837_v22, %v6237_v48  ;;  %v2839_v55 = vpop.f32.mrb[151].mxu1  ;;  %3397 = vadd.xlane.f32.xlu1 %v3396_v60  ;;  %v4632_v12 = vld [vmem:[%s5175_s20 + $0xc8] sm:$0xff]  ;;  %v4633_v46 = vld [vmem:[%s5175_s20 + $0xd8] sm:$0xff] }
 0x3a5   : > { %v3265_v55 = vmul.f32 %v6465_v37, %v6465_v37 }
 0x3a6   : > { %v6449_v42 = vadd.f32 %v4629_v5, %v2838_v52  ;;  %v3262_v40 = vmul.f32 %v6443_v58, %v6443_v58 }
 0x3a7   : > { %v2541_v28 = vpop.f32.mrb[168].mxu0 }
 0x3a8   : > { %v2542_v34 = vadd.f32 %v2541_v28, %v6140_v14  ;;  %v6458_v41 = vpop.f32.mrb[169].mxu0  ;;  %v3399_v20 = vadd.f32 %v3262_v40, %v3261_v51  ;;  %v3264_v1 = vmul.f32 %v6449_v42, %v6449_v42  ;;  %v3267_v51 = vmul.f32 %v6473_v10, %v6473_v10 }
 0x3a9   : > { %v2545_v16 = vpop.f32.mrb[170].mxu0  ;;  %v2842_v44 = vpop.f32.mrb[152].mxu1  ;;  %v2518_v40 = vadd.f32 %v6365_v15, %v6219_v63 }
 0x3aa   : > { %3069 = vst [vmem:[%s6147_s14 + $0xa0] sm:$0xff] %v2542_v34  ;;  %v2546_v30 = vadd.f32 %v2545_v16, %v6140_v14  ;;  %v2843_v49 = vadd.f32 %v2842_v44, %v6237_v48  ;;  %v6470_v59 = vpop.f32.mrb[171].mxu0  ;;  %v2844_v19 = vpop.f32.mrb[153].mxu1  ;;  %3400 = vadd.xlane.f32.xlu0 %v3399_v20  ;;  %v3402_v3 = vadd.f32 %v3264_v1, %v3263_v24  ;;  %v4634_v1 = vld [vmem:[%s5175_s20 + $0xe0] sm:$0xff] }
 0x3ab   : > { %v2845_v32 = vpop.f32.mrb[154].mxu1  ;;  %v6499_v16 = vadd.f32 %v4634_v1, %v2514_v9  ;;  %v2524_v9 = vadd.f32 %v6389_v26, %v6219_v63 }
 0x3ac   : > { %3070 = vst [vmem:[%s6147_s14 + $0xa8] sm:$0xff] %v2546_v30  ;;  %v6477_v6 = vadd.f32 %v4632_v12, %v2843_v49  ;;  %v2846_v60 = vadd.f32 %v2845_v32, %v6237_v48  ;;  %v2847_v22 = vpop.f32.mrb[155].mxu1  ;;  %3403 = vadd.xlane.f32.xlu1 %v3402_v3  ;;  %v4635_v3 = vld [vmem:[%s5175_s20 + $0xf0] sm:$0xff]  ;;  %v4636_v32 = vld [vmem:[%s5175_s20 + $0xe8] sm:$0xff] }
 0x3ad   : > { %v6507_v47 = vadd.f32 %v4635_v3, %v2518_v40 }
 0x3ae   : > { %v6483_v52 = vadd.f32 %v4633_v46, %v2846_v60  ;;  %v3266_v61 = vmul.f32 %v6477_v6, %v6477_v6  ;;  %v4637_v46 = vld [vmem:[%s5175_s20 + $0xf8] sm:$0xff] }
 0x3af   : > { %v2551_v5 = vpop.f32.mrb[172].mxu0 }
 0x3b0   : > { %v2552_v0 = vadd.f32 %v2551_v5, %v6140_v14  ;;  %v6494_v2 = vpop.f32.mrb[173].mxu0  ;;  %v3405_v28 = vadd.f32 %v3266_v61, %v3265_v55  ;;  %v3268_v34 = vmul.f32 %v6483_v52, %v6483_v52  ;;  %v3269_v61 = vmul.f32 %v6499_v16, %v6499_v16 }
 0x3b1   : > { %v2555_v20 = vpop.f32.mrb[174].mxu0  ;;  %v2850_v24 = vpop.f32.mrb[156].mxu1 }
 0x3b2   : > { %3071 = vst [vmem:[%s6147_s14 + $0xb0] sm:$0xff] %v2552_v0  ;;  %v2556_v44 = vadd.f32 %v2555_v20, %v6140_v14  ;;  %v2851_v15 = vadd.f32 %v2850_v24, %v6237_v48  ;;  %v6504_v35 = vpop.f32.mrb[175].mxu0  ;;  %v2852_v30 = vpop.f32.mrb[157].mxu1  ;;  %3406 = vadd.xlane.f32.xlu0 %v3405_v28  ;;  %v3408_v49 = vadd.f32 %v3268_v34, %v3267_v51 }
 0x3b3   : > { %v2853_v19 = vpop.f32.mrb[158].mxu1  ;;  %v2528_v51 = vadd.f32 %v6401_v54, %v6219_v63  ;;  %v3271_v34 = vmul.f32 %v6507_v47, %v6507_v47 }
 0x3b4   : > { %3072 = vst [vmem:[%s6147_s14 + $0xb8] sm:$0xff] %v2556_v44  ;;  %v6511_v12 = vadd.f32 %v4636_v32, %v2851_v15  ;;  %v2854_v60 = vadd.f32 %v2853_v19, %v6237_v48  ;;  %v2855_v22 = vpop.f32.mrb[159].mxu1  ;;  %3409 = vadd.xlane.f32.xlu1 %v3408_v49  ;;  %v4638_v44 = vld [vmem:[%s5175_s20 + $0x100] sm:$0xff]  ;;  %v4639_v32 = vld [vmem:[%s5175_s20 + $0x110] sm:$0xff] }
 0x3b5   : > { %v6533_v15 = vadd.f32 %v4638_v44, %v2524_v9 }
 0x3b6   : > { %v6517_v55 = vadd.f32 %v4637_v46, %v2854_v60  ;;  %v3270_v5 = vmul.f32 %v6511_v12, %v6511_v12  ;;  %v6541_v60 = vadd.f32 %v4639_v32, %v2528_v51  ;;  %v4640_v46 = vld [vmem:[%s5175_s20 + $0x108] sm:$0xff]  ;;  %v4642_v32 = vld [vmem:[%s5175_s20 + $0x120] sm:$0xff] }
 0x3b7   : > { %v2561_v40 = vpop.f32.mrb[176].mxu0  ;;  %v3273_v51 = vmul.f32 %v6533_v15, %v6533_v15 }
 0x3b8   : > { %v2562_v0 = vadd.f32 %v2561_v40, %v6140_v14  ;;  %v6526_v28 = vpop.f32.mrb[177].mxu0  ;;  %v3411_v26 = vadd.f32 %v3270_v5, %v3269_v61  ;;  %v3272_v20 = vmul.f32 %v6517_v55, %v6517_v55  ;;  %7693 = vst [vmem:[#allocation15_spill] sm:$0xff] %v6541_v60  ;;  %v2534_v40 = vadd.f32 %v6426_v29, %v6219_v63 }
 0x3b9   : > { %v2565_v24 = vpop.f32.mrb[178].mxu0  ;;  %v2858_v1 = vpop.f32.mrb[160].mxu1 }
 0x3ba   : > { %3073 = vst [vmem:[%s6147_s14 + $0xc0] sm:$0xff] %v2562_v0  ;;  %v2566_v54 = vadd.f32 %v2565_v24, %v6140_v14  ;;  %v2859_v30 = vadd.f32 %v2858_v1, %v6237_v48  ;;  %v6538_v49 = vpop.f32.mrb[179].mxu0  ;;  %v2860_v19 = vpop.f32.mrb[161].mxu1  ;;  %3412 = vadd.xlane.f32.xlu0 %v3411_v26  ;;  %v3414_v3 = vadd.f32 %v3272_v20, %v3271_v34  ;;  %v4641_v0 = vld [vmem:[%s5175_s20 + $0x118] sm:$0xff] }
 0x3bb   : > { %v2861_v22 = vpop.f32.mrb[162].mxu1  ;;  %v3275_v24 = vmul.f32 %v6541_v60, %v6541_v60  ;;  %v2538_v1 = vadd.f32 %v6436_v38, %v6219_v63 }
 0x3bc   : > { %3074 = vst [vmem:[%s6147_s14 + $0xc8] sm:$0xff] %v2566_v54  ;;  %v6545_v61 = vadd.f32 %v4640_v46, %v2859_v30  ;;  %v2862_v9 = vadd.f32 %v2861_v22, %v6237_v48  ;;  %v2863_v5 = vpop.f32.mrb[163].mxu1  ;;  %3415 = vadd.xlane.f32.xlu1 %v3414_v3  ;;  %v6567_v22 = vadd.f32 %v4642_v32, %v2534_v40 }
 0x3be   : > { %v6551_v26 = vadd.f32 %v4641_v0, %v2862_v9  ;;  %v3274_v34 = vmul.f32 %v6545_v61, %v6545_v61  ;;  %7695 = vst [vmem:[#allocation17_spill] sm:$0xff] %v6567_v22 }
 0x3bf   : > { %v2571_v20 = vpop.f32.mrb[180].mxu0 }
 0x3c0   : > { %7694 = vst [vmem:[#allocation16_spill] sm:$0xff] %v6551_v26  ;;  %v2572_v44 = vadd.f32 %v2571_v20, %v6140_v14  ;;  %v6562_v29 = vpop.f32.mrb[181].mxu0  ;;  %v3417_v54 = vadd.f32 %v3274_v34, %v3273_v51  ;;  %v3276_v30 = vmul.f32 %v6551_v26, %v6551_v26  ;;  %v4643_v34 = vld [vmem:[%s5175_s20 + $0x130] sm:$0xff]  ;;  %v4644_v26 = vld [vmem:[%s5175_s20 + $0x128] sm:$0xff] }
 0x3c1   : > { %v2575_v19 = vpop.f32.mrb[182].mxu0  ;;  %v2866_v3 = vpop.f32.mrb[164].mxu1  ;;  %v6575_v20 = vadd.f32 %v4643_v34, %v2538_v1  ;;  %v4646_v34 = vld [vmem:[%s5175_s20 + $0x140] sm:$0xff] }
 0x3c2   : > { %3075 = vst [vmem:[%s6147_s14 + $0xd0] sm:$0xff] %v2572_v44  ;;  %v2576_v46 = vadd.f32 %v2575_v19, %v6140_v14  ;;  %v2867_v38 = vadd.f32 %v2866_v3, %v6237_v48  ;;  %v6572_v9 = vpop.f32.mrb[183].mxu0  ;;  %v2868_v5 = vpop.f32.mrb[165].mxu1  ;;  %3418 = vadd.xlane.f32.xlu0 %v3417_v54  ;;  %v3420_v0 = vadd.f32 %v3276_v30, %v3275_v24  ;;  %v4645_v3 = vld [vmem:[%s5175_s20 + $0x138] sm:$0xff] }
 0x3c3   : > { %v2869_v51 = vpop.f32.mrb[166].mxu1  ;;  %7696 = vst [vmem:[#allocation18_spill] sm:$0xff] %v6575_v20  ;;  %v2544_v19 = vadd.f32 %v6458_v41, %v6219_v63  ;;  %v3277_v24 = vmul.f32 %v6567_v22, %v6567_v22 }
 0x3c4   : > { %3076 = vst [vmem:[%s6147_s14 + $0xd8] sm:$0xff] %v2576_v46  ;;  %v6579_v60 = vadd.f32 %v4644_v26, %v2867_v38  ;;  %v2870_v40 = vadd.f32 %v2869_v51, %v6237_v48  ;;  %v2871_v44 = vpop.f32.mrb[167].mxu1  ;;  %3421 = vadd.xlane.f32.xlu1 %v3420_v0  ;;  %v2548_v26 = vadd.f32 %v6470_v59, %v6219_v63 }
 0x3c5   : > { %v3279_v38 = vmul.f32 %v6575_v20, %v6575_v20 }
 0x3c6   : > { %7697 = vst [vmem:[#allocation19_spill] sm:$0xff] %v6579_v60  ;;  %v6585_v54 = vadd.f32 %v4645_v3, %v2870_v40  ;;  %v3278_v1 = vmul.f32 %v6579_v60, %v6579_v60  ;;  %v6601_v40 = vadd.f32 %v4646_v34, %v2544_v19  ;;  %v4648_v60 = vld [vmem:[%s5175_s20 + $0x148] sm:$0xff] }
 0x3c7   : > { %v2581_v30 = vpop.f32.mrb[184].mxu0 }
 0x3c8   : > { %7698 = vst [vmem:[#allocation20_spill] sm:$0xff] %v6585_v54  ;;  %v2582_v32 = vadd.f32 %v2581_v30, %v6140_v14  ;;  %v6594_v46 = vpop.f32.mrb[185].mxu0  ;;  %v3423_v41 = vadd.f32 %v3278_v1, %v3277_v24  ;;  %v3280_v5 = vmul.f32 %v6585_v54, %v6585_v54  ;;  %7699 = vst [vmem:[#allocation21_spill] sm:$0xff] %v6601_v40  ;;  %v4647_v30 = vld [vmem:[%s5175_s20 + $0x150] sm:$0xff] }
 0x3c9   : > { %v2585_v0 = vpop.f32.mrb[186].mxu0  ;;  %v2874_v51 = vpop.f32.mrb[168].mxu1  ;;  %v6609_v20 = vadd.f32 %v4647_v30, %v2548_v26  ;;  %v3281_v26 = vmul.f32 %v6601_v40, %v6601_v40  ;;  %v4650_v30 = vld [vmem:[%s5175_s20 + $0x160] sm:$0xff] }
 0x3ca   : > { %3077 = vst [vmem:[%s6147_s14 + $0xe0] sm:$0xff] %v2582_v32  ;;  %v2586_v59 = vadd.f32 %v2585_v0, %v6140_v14  ;;  %v2875_v44 = vadd.f32 %v2874_v51, %v6237_v48  ;;  %v6606_v3 = vpop.f32.mrb[187].mxu0  ;;  %v2876_v24 = vpop.f32.mrb[169].mxu1  ;;  %3424 = vadd.xlane.f32.xlu0 %v3423_v41  ;;  %v3426_v1 = vadd.f32 %v3280_v5, %v3279_v38  ;;  %v4649_v51 = vld [vmem:[%s5175_s20 + $0x158] sm:$0xff] }
 0x3cb   : > { %7700 = vst [vmem:[#allocation22_spill] sm:$0xff] %v6609_v20  ;;  %v2877_v54 = vpop.f32.mrb[170].mxu1  ;;  %v2554_v0 = vadd.f32 %v6494_v2, %v6219_v63  ;;  %v2558_v5 = vadd.f32 %v6504_v35, %v6219_v63 }
 0x3cc   : > { %3078 = vst [vmem:[%s6147_s14 + $0xe8] sm:$0xff] %v2586_v59  ;;  %v6613_v22 = vadd.f32 %v4648_v60, %v2875_v44  ;;  %v2878_v19 = vadd.f32 %v2877_v54, %v6237_v48  ;;  %v2879_v32 = vpop.f32.mrb[171].mxu1  ;;  %3427 = vadd.xlane.f32.xlu1 %v3426_v1  ;;  %v3283_v54 = vmul.f32 %v6609_v20, %v6609_v20  ;;  %v4651_v20 = vld [vmem:[%s5175_s20 + $0x170] sm:$0xff] }
 0x3ce   : > { %7701 = vst [vmem:[#allocation23_spill] sm:$0xff] %v6613_v22  ;;  %v6619_v41 = vadd.f32 %v4649_v51, %v2878_v19  ;;  %v3282_v38 = vmul.f32 %v6613_v22, %v6613_v22  ;;  %v6635_v19 = vadd.f32 %v4650_v30, %v2554_v0  ;;  %v4652_v22 = vld [vmem:[%s5175_s20 + $0x168] sm:$0xff] }
 0x3cf   : > { %v2591_v60 = vpop.f32.mrb[188].mxu0 }
 0x3d0   : > { %7702 = vst [vmem:[#allocation24_spill] sm:$0xff] %v6619_v41  ;;  %v2592_v34 = vadd.f32 %v2591_v60, %v6140_v14  ;;  %v6630_v2 = vpop.f32.mrb[189].mxu0  ;;  %v3429_v59 = vadd.f32 %v3282_v38, %v3281_v26  ;;  %v3284_v44 = vmul.f32 %v6619_v41, %v6619_v41  ;;  %7703 = vst [vmem:[#allocation25_spill] sm:$0xff] %v6635_v19 }
 0x3d1   : > { %v2595_v24 = vpop.f32.mrb[190].mxu0  ;;  %v2882_v1 = vpop.f32.mrb[172].mxu1  ;;  %v6643_v41 = vadd.f32 %v4651_v20, %v2558_v5  ;;  %v3285_v20 = vmul.f32 %v6635_v19, %v6635_v19 }
 0x3d2   : > { %3079 = vst [vmem:[%s6147_s14 + $0xf0] sm:$0xff] %v2592_v34  ;;  %v2596_v32 = vadd.f32 %v2595_v24, %v6140_v14  ;;  %v2883_v35 = vadd.f32 %v2882_v1, %v6237_v48  ;;  %v6640_v51 = vpop.f32.mrb[191].mxu0  ;;  %v2884_v60 = vpop.f32.mrb[173].mxu1  ;;  %3430 = vadd.xlane.f32.xlu0 %v3429_v59  ;;  %v3432_v26 = vadd.f32 %v3284_v44, %v3283_v54  ;;  %v4653_v1 = vld [vmem:[%s5175_s20 + $0x178] sm:$0xff] }
 0x3d3   : > { %v2885_v38 = vpop.f32.mrb[174].mxu1  ;;  %7704 = vst [vmem:[#allocation26_spill] sm:$0xff] %v6643_v41  ;;  %v2564_v24 = vadd.f32 %v6526_v28, %v6219_v63 }
 0x3d4   : > { %3080 = vst [vmem:[%s6147_s14 + $0xf8] sm:$0xff] %v2596_v32  ;;  %v6647_v40 = vadd.f32 %v4652_v22, %v2883_v35  ;;  %v2886_v0 = vadd.f32 %v2885_v38, %v6237_v48  ;;  %v2887_v34 = vpop.f32.mrb[175].mxu1  ;;  %3433 = vadd.xlane.f32.xlu1 %v3432_v26  ;;  %v2568_v22 = vadd.f32 %v6538_v49, %v6219_v63  ;;  %v4654_v38 = vld [vmem:[%s5175_s20 + $0x180] sm:$0xff] }
 0x3d5   : > { %v3287_v32 = vmul.f32 %v6643_v41, %v6643_v41 }
 0x3d6   : > { %7705 = vst [vmem:[#allocation27_spill] sm:$0xff] %v6647_v40  ;;  %v6653_v59 = vadd.f32 %v4653_v1, %v2886_v0  ;;  %v3286_v54 = vmul.f32 %v6647_v40, %v6647_v40  ;;  %v6669_v0 = vadd.f32 %v4654_v38, %v2564_v24  ;;  %v4656_v40 = vld [vmem:[%s5175_s20 + $0x188] sm:$0xff] }
 0x3d7   : > { %v2601_v5 = vpop.f32.mrb[192].mxu0 }
 0x3d8   : > { %7706 = vst [vmem:[#allocation28_spill] sm:$0xff] %v6653_v59  ;;  %v2602_v44 = vadd.f32 %v2601_v5, %v6140_v14  ;;  %v6662_v30 = vpop.f32.mrb[193].mxu0  ;;  %v3435_v28 = vadd.f32 %v3286_v54, %v3285_v20  ;;  %v3288_v35 = vmul.f32 %v6653_v59, %v6653_v59  ;;  %7707 = vst [vmem:[#allocation29_spill] sm:$0xff] %v6669_v0  ;;  %v4655_v5 = vld [vmem:[%s5175_s20 + $0x190] sm:$0xff] }
 0x3d9   : > { %v2605_v60 = vpop.f32.mrb[194].mxu0  ;;  %v2890_v26 = vpop.f32.mrb[176].mxu1  ;;  %v6677_v41 = vadd.f32 %v4655_v5, %v2568_v22  ;;  %v3289_v22 = vmul.f32 %v6669_v0, %v6669_v0  ;;  %v4658_v5 = vld [vmem:[%s5175_s20 + $0x1a0] sm:$0xff] }
 0x3da   : > { %3081 = vst [vmem:[%s6147_s14 + $0x100] sm:$0xff] %v2602_v44  ;;  %v2606_v49 = vadd.f32 %v2605_v60, %v6140_v14  ;;  %v2891_v34 = vadd.f32 %v2890_v26, %v6237_v48  ;;  %v6674_v1 = vpop.f32.mrb[195].mxu0  ;;  %v2892_v20 = vpop.f32.mrb[177].mxu1  ;;  %3436 = vadd.xlane.f32.xlu0 %v3435_v28  ;;  %v3438_v54 = vadd.f32 %v3288_v35, %v3287_v32  ;;  %v4657_v26 = vld [vmem:[%s5175_s20 + $0x198] sm:$0xff] }
 0x3db   : > { %7708 = vst [vmem:[#allocation30_spill] sm:$0xff] %v6677_v41  ;;  %v2893_v59 = vpop.f32.mrb[178].mxu1  ;;  %v2574_v60 = vadd.f32 %v6562_v29, %v6219_v63  ;;  %v2578_v35 = vadd.f32 %v6572_v9, %v6219_v63 }
 0x3dc   : > { %3082 = vst [vmem:[%s6147_s14 + $0x108] sm:$0xff] %v2606_v49  ;;  %v6681_v19 = vadd.f32 %v4656_v40, %v2891_v34  ;;  %v2894_v24 = vadd.f32 %v2893_v59, %v6237_v48  ;;  %v2895_v44 = vpop.f32.mrb[179].mxu1  ;;  %3439 = vadd.xlane.f32.xlu1 %v3438_v54  ;;  %v3291_v59 = vmul.f32 %v6677_v41, %v6677_v41  ;;  %v4659_v41 = vld [vmem:[%s5175_s20 + $0x1b0] sm:$0xff] }
 0x3de   : > { %7709 = vst [vmem:[#allocation31_spill] sm:$0xff] %v6681_v19  ;;  %v6687_v28 = vadd.f32 %v4657_v26, %v2894_v24  ;;  %v3290_v32 = vmul.f32 %v6681_v19, %v6681_v19  ;;  %v6703_v24 = vadd.f32 %v4658_v5, %v2574_v60  ;;  %v4660_v19 = vld [vmem:[%s5175_s20 + $0x1a8] sm:$0xff] }
 0x3df   : > { %v2611_v40 = vpop.f32.mrb[196].mxu0 }
 0x3e0   : > { %7710 = vst [vmem:[#allocation32_spill] sm:$0xff] %v6687_v28  ;;  %v2612_v38 = vadd.f32 %v2611_v40, %v6140_v14  ;;  %v6698_v29 = vpop.f32.mrb[197].mxu0  ;;  %v3441_v49 = vadd.f32 %v3290_v32, %v3289_v22  ;;  %v3292_v34 = vmul.f32 %v6687_v28, %v6687_v28  ;;  %7711 = vst [vmem:[#allocation33_spill] sm:$0xff] %v6703_v24 }
 0x3e1   : > { %v2615_v20 = vpop.f32.mrb[198].mxu0  ;;  %v2898_v54 = vpop.f32.mrb[180].mxu1  ;;  %v6711_v28 = vadd.f32 %v4659_v41, %v2578_v35  ;;  %v3293_v41 = vmul.f32 %v6703_v24, %v6703_v24 }
 0x3e2   : > { %3083 = vst [vmem:[%s6147_s14 + $0x110] sm:$0xff] %v2612_v38  ;;  %v2616_v44 = vadd.f32 %v2615_v20, %v6140_v14  ;;  %v2899_v9 = vadd.f32 %v2898_v54, %v6237_v48  ;;  %v6708_v26 = vpop.f32.mrb[199].mxu0  ;;  %v2900_v40 = vpop.f32.mrb[181].mxu1  ;;  %3442 = vadd.xlane.f32.xlu0 %v3441_v49  ;;  %v3444_v22 = vadd.f32 %v3292_v34, %v3291_v59  ;;  %v4661_v54 = vld [vmem:[%s5175_s20 + $0x1b8] sm:$0xff] }
 0x3e3   : > { %v2901_v32 = vpop.f32.mrb[182].mxu1  ;;  %7712 = vst [vmem:[#allocation34_spill] sm:$0xff] %v6711_v28  ;;  %v2584_v20 = vadd.f32 %v6594_v46, %v6219_v63 }
 0x3e4   : > { %3084 = vst [vmem:[%s6147_s14 + $0x118] sm:$0xff] %v2616_v44  ;;  %v6715_v0 = vadd.f32 %v4660_v19, %v2899_v9  ;;  %v2902_v60 = vadd.f32 %v2901_v32, %v6237_v48  ;;  %v2903_v38 = vpop.f32.mrb[183].mxu1  ;;  %3445 = vadd.xlane.f32.xlu1 %v3444_v22  ;;  %v2588_v19 = vadd.f32 %v6606_v3, %v6219_v63  ;;  %v4662_v32 = vld [vmem:[%s5175_s20 + $0x1c0] sm:$0xff] }
 0x3e5   : > { %v3295_v44 = vmul.f32 %v6711_v28, %v6711_v28 }
 0x3e6   : > { %7713 = vst [vmem:[#allocation35_spill] sm:$0xff] %v6715_v0  ;;  %v6721_v49 = vadd.f32 %v4661_v54, %v2902_v60  ;;  %v3294_v59 = vmul.f32 %v6715_v0, %v6715_v0  ;;  %v6737_v60 = vadd.f32 %v4662_v32, %v2584_v20  ;;  %v4664_v0 = vld [vmem:[%s5175_s20 + $0x1c8] sm:$0xff] }
 0x3e7   : > { %v2621_v35 = vpop.f32.mrb[200].mxu0 }
 0x3e8   : > { %7714 = vst [vmem:[#allocation36_spill] sm:$0xff] %v6721_v49  ;;  %v2622_v34 = vadd.f32 %v2621_v35, %v6140_v14  ;;  %v6730_v5 = vpop.f32.mrb[201].mxu0  ;;  %v3447_v46 = vadd.f32 %v3294_v59, %v3293_v41  ;;  %v3296_v9 = vmul.f32 %v6721_v49, %v6721_v49  ;;  %7715 = vst [vmem:[#allocation37_spill] sm:$0xff] %v6737_v60  ;;  %v4663_v35 = vld [vmem:[%s5175_s20 + $0x1d0] sm:$0xff] }
 0x3e9   : > { %v2625_v40 = vpop.f32.mrb[202].mxu0  ;;  %v2906_v22 = vpop.f32.mrb[184].mxu1  ;;  %v6745_v28 = vadd.f32 %v4663_v35, %v2588_v19  ;;  %v3297_v19 = vmul.f32 %v6737_v60, %v6737_v60  ;;  %v4666_v35 = vld [vmem:[%s5175_s20 + $0x1e0] sm:$0xff] }
 0x3ea   : > { %3085 = vst [vmem:[%s6147_s14 + $0x120] sm:$0xff] %v2622_v34  ;;  %v2626_v3 = vadd.f32 %v2625_v40, %v6140_v14  ;;  %v2907_v38 = vadd.f32 %v2906_v22, %v6237_v48  ;;  %v6742_v54 = vpop.f32.mrb[203].mxu0  ;;  %v2908_v41 = vpop.f32.mrb[185].mxu1  ;;  %3448 = vadd.xlane.f32.xlu0 %v3447_v46  ;;  %v3450_v59 = vadd.f32 %v3296_v9, %v3295_v44  ;;  %v4665_v22 = vld [vmem:[%s5175_s20 + $0x1d8] sm:$0xff] }
 0x3eb   : > { %7716 = vst [vmem:[#allocation38_spill] sm:$0xff] %v6745_v28  ;;  %v2909_v49 = vpop.f32.mrb[186].mxu1  ;;  %v2594_v40 = vadd.f32 %v6630_v2, %v6219_v63  ;;  %v2598_v9 = vadd.f32 %v6640_v51, %v6219_v63 }
 0x3ec   : > { %3086 = vst [vmem:[%s6147_s14 + $0x128] sm:$0xff] %v2626_v3  ;;  %v6749_v24 = vadd.f32 %v4664_v0, %v2907_v38  ;;  %v2910_v20 = vadd.f32 %v2909_v49, %v6237_v48  ;;  %v2911_v34 = vpop.f32.mrb[187].mxu1  ;;  %3451 = vadd.xlane.f32.xlu1 %v3450_v59  ;;  %v3299_v49 = vmul.f32 %v6745_v28, %v6745_v28  ;;  %v4667_v28 = vld [vmem:[%s5175_s20 + $0x1f0] sm:$0xff] }
 0x3ee   : > { %7717 = vst [vmem:[#allocation39_spill] sm:$0xff] %v6749_v24  ;;  %v6755_v46 = vadd.f32 %v4665_v22, %v2910_v20  ;;  %v3298_v44 = vmul.f32 %v6749_v24, %v6749_v24  ;;  %v6771_v20 = vadd.f32 %v4666_v35, %v2594_v40  ;;  %v4668_v24 = vld [vmem:[%s5175_s20 + $0x1e8] sm:$0xff] }
 0x3ef   : > { %v2631_v0 = vpop.f32.mrb[204].mxu0 }
 0x3f0   : > { %7718 = vst [vmem:[#allocation40_spill] sm:$0xff] %v6755_v46  ;;  %v2632_v32 = vadd.f32 %v2631_v0, %v6140_v14  ;;  %v6766_v2 = vpop.f32.mrb[205].mxu0  ;;  %v3453_v3 = vadd.f32 %v3298_v44, %v3297_v19  ;;  %v3300_v38 = vmul.f32 %v6755_v46, %v6755_v46  ;;  %7719 = vst [vmem:[#allocation41_spill] sm:$0xff] %v6771_v20 }
 0x3f1   : > { %v2635_v41 = vpop.f32.mrb[206].mxu0  ;;  %v2914_v59 = vpop.f32.mrb[188].mxu1  ;;  %v6779_v46 = vadd.f32 %v4667_v28, %v2598_v9  ;;  %v3301_v28 = vmul.f32 %v6771_v20, %v6771_v20 }
 0x3f2   : > { %3087 = vst [vmem:[%s6147_s14 + $0x130] sm:$0xff] %v2632_v32  ;;  %v2636_v34 = vadd.f32 %v2635_v41, %v6140_v14  ;;  %v2915_v51 = vadd.f32 %v2914_v59, %v6237_v48  ;;  %v6776_v22 = vpop.f32.mrb[207].mxu0  ;;  %v2916_v0 = vpop.f32.mrb[189].mxu1  ;;  %3454 = vadd.xlane.f32.xlu0 %v3453_v3  ;;  %v3456_v19 = vadd.f32 %v3300_v38, %v3299_v49  ;;  %v4669_v59 = vld [vmem:[%s5175_s20 + $0x1f8] sm:$0xff] }
 0x3f3   : > { %v2917_v44 = vpop.f32.mrb[190].mxu1  ;;  %7720 = vst [vmem:[#allocation42_spill] sm:$0xff] %v6779_v46  ;;  %v2604_v41 = vadd.f32 %v6662_v30, %v6219_v63 }
 0x3f4   : > { %3088 = vst [vmem:[%s6147_s14 + $0x138] sm:$0xff] %v2636_v34  ;;  %v6783_v60 = vadd.f32 %v4668_v24, %v2915_v51  ;;  %v2918_v40 = vadd.f32 %v2917_v44, %v6237_v48  ;;  %v2919_v32 = vpop.f32.mrb[191].mxu1  ;;  %3457 = vadd.xlane.f32.xlu1 %v3456_v19  ;;  %v2608_v24 = vadd.f32 %v6674_v1, %v6219_v63  ;;  %v4670_v44 = vld [vmem:[%s5175_s20 + $0x200] sm:$0xff] }
 0x3f5   : > { %v3303_v34 = vmul.f32 %v6779_v46, %v6779_v46 }
 0x3f6   : > { %7721 = vst [vmem:[#allocation43_spill] sm:$0xff] %v6783_v60  ;;  %v6789_v3 = vadd.f32 %v4669_v59, %v2918_v40  ;;  %v3302_v49 = vmul.f32 %v6783_v60, %v6783_v60  ;;  %v6805_v40 = vadd.f32 %v4670_v44, %v2604_v41  ;;  %v4672_v60 = vld [vmem:[%s5175_s20 + $0x208] sm:$0xff] }
 0x3f7   : > { %v2641_v9 = vpop.f32.mrb[208].mxu0 }
 0x3f8   : > { %7722 = vst [vmem:[#allocation44_spill] sm:$0xff] %v6789_v3  ;;  %v2642_v38 = vadd.f32 %v2641_v9, %v6140_v14  ;;  %v6798_v35 = vpop.f32.mrb[209].mxu0  ;;  %v3459_v30 = vadd.f32 %v3302_v49, %v3301_v28  ;;  %v3304_v51 = vmul.f32 %v6789_v3, %v6789_v3  ;;  %7723 = vst [vmem:[#allocation45_spill] sm:$0xff] %v6805_v40  ;;  %v4671_v9 = vld [vmem:[%s5175_s20 + $0x210] sm:$0xff] }
 0x3f9   : > { %v2645_v0 = vpop.f32.mrb[210].mxu0  ;;  %v2922_v19 = vpop.f32.mrb[192].mxu1  ;;  %v6813_v46 = vadd.f32 %v4671_v9, %v2608_v24  ;;  %v3305_v24 = vmul.f32 %v6805_v40, %v6805_v40  ;;  %v4674_v9 = vld [vmem:[%s5175_s20 + $0x220] sm:$0xff] }
 0x3fa   : > { %3089 = vst [vmem:[%s6147_s14 + $0x140] sm:$0xff] %v2642_v38  ;;  %v2646_v1 = vadd.f32 %v2645_v0, %v6140_v14  ;;  %v2923_v32 = vadd.f32 %v2922_v19, %v6237_v48  ;;  %v6810_v59 = vpop.f32.mrb[211].mxu0  ;;  %v2924_v28 = vpop.f32.mrb[193].mxu1  ;;  %3460 = vadd.xlane.f32.xlu0 %v3459_v30  ;;  %v3462_v49 = vadd.f32 %v3304_v51, %v3303_v34  ;;  %v4673_v19 = vld [vmem:[%s5175_s20 + $0x218] sm:$0xff] }
 0x3fb   : > { %7724 = vst [vmem:[#allocation46_spill] sm:$0xff] %v6813_v46  ;;  %v2925_v3 = vpop.f32.mrb[194].mxu1  ;;  %v2614_v0 = vadd.f32 %v6698_v29, %v6219_v63  ;;  %v2618_v51 = vadd.f32 %v6708_v26, %v6219_v63 }
 0x3fc   : > { %3090 = vst [vmem:[%s6147_s14 + $0x148] sm:$0xff] %v2646_v1  ;;  %v6817_v20 = vadd.f32 %v4672_v60, %v2923_v32  ;;  %v2926_v41 = vadd.f32 %v2925_v3, %v6237_v48  ;;  %v2927_v38 = vpop.f32.mrb[195].mxu1  ;;  %3463 = vadd.xlane.f32.xlu1 %v3462_v49  ;;  %v3307_v3 = vmul.f32 %v6813_v46, %v6813_v46  ;;  %v4675_v46 = vld [vmem:[%s5175_s20 + $0x230] sm:$0xff] }
 0x3fe   : > { %7725 = vst [vmem:[#allocation47_spill] sm:$0xff] %v6817_v20  ;;  %v6823_v30 = vadd.f32 %v4673_v19, %v2926_v41  ;;  %v3306_v34 = vmul.f32 %v6817_v20, %v6817_v20  ;;  %v6839_v41 = vadd.f32 %v4674_v9, %v2614_v0  ;;  %v4676_v20 = vld [vmem:[%s5175_s20 + $0x228] sm:$0xff] }
 0x3ff   : > { %v2651_v60 = vpop.f32.mrb[212].mxu0 }
 0x400   : > { %7726 = vst [vmem:[#allocation48_spill] sm:$0xff] %v6823_v30  ;;  %v2652_v44 = vadd.f32 %v2651_v60, %v6140_v14  ;;  %v6834_v29 = vpop.f32.mrb[213].mxu0  ;;  %v3465_v1 = vadd.f32 %v3306_v34, %v3305_v24  ;;  %v3308_v32 = vmul.f32 %v6823_v30, %v6823_v30  ;;  %7727 = vst [vmem:[#allocation49_spill] sm:$0xff] %v6839_v41 }
 0x401   : > { %v2655_v28 = vpop.f32.mrb[214].mxu0  ;;  %v2930_v49 = vpop.f32.mrb[196].mxu1  ;;  %v6847_v30 = vadd.f32 %v4675_v46, %v2618_v51  ;;  %v3309_v46 = vmul.f32 %v6839_v41, %v6839_v41 }
 0x402   : > { %3091 = vst [vmem:[%s6147_s14 + $0x150] sm:$0xff] %v2652_v44  ;;  %v2656_v38 = vadd.f32 %v2655_v28, %v6140_v14  ;;  %v2931_v26 = vadd.f32 %v2930_v49, %v6237_v48  ;;  %v6844_v19 = vpop.f32.mrb[215].mxu0  ;;  %v2932_v60 = vpop.f32.mrb[197].mxu1  ;;  %3466 = vadd.xlane.f32.xlu0 %v3465_v1  ;;  %v3468_v24 = vadd.f32 %v3308_v32, %v3307_v3  ;;  %v4677_v49 = vld [vmem:[%s5175_s20 + $0x238] sm:$0xff] }
 0x403   : > { %v2933_v34 = vpop.f32.mrb[198].mxu1  ;;  %7728 = vst [vmem:[#allocation50_spill] sm:$0xff] %v6847_v30  ;;  %v2624_v28 = vadd.f32 %v6730_v5, %v6219_v63 }
 0x404   : > { %3092 = vst [vmem:[%s6147_s14 + $0x158] sm:$0xff] %v2656_v38  ;;  %v6851_v40 = vadd.f32 %v4676_v20, %v2931_v26  ;;  %v2934_v0 = vadd.f32 %v2933_v34, %v6237_v48  ;;  %v2935_v44 = vpop.f32.mrb[199].mxu1  ;;  %3469 = vadd.xlane.f32.xlu1 %v3468_v24  ;;  %v2628_v20 = vadd.f32 %v6742_v54, %v6219_v63  ;;  %v4678_v34 = vld [vmem:[%s5175_s20 + $0x240] sm:$0xff] }
 0x405   : > { %v3311_v38 = vmul.f32 %v6847_v30, %v6847_v30 }
 0x406   : > { %7729 = vst [vmem:[#allocation51_spill] sm:$0xff] %v6851_v40  ;;  %v6857_v1 = vadd.f32 %v4677_v49, %v2934_v0  ;;  %v3310_v3 = vmul.f32 %v6851_v40, %v6851_v40  ;;  %v6873_v0 = vadd.f32 %v4678_v34, %v2624_v28  ;;  %v4680_v40 = vld [vmem:[%s5175_s20 + $0x248] sm:$0xff] }
 0x407   : > { %v2661_v51 = vpop.f32.mrb[216].mxu0 }
 0x408   : > { %7730 = vst [vmem:[#allocation52_spill] sm:$0xff] %v6857_v1  ;;  %v2662_v32 = vadd.f32 %v2661_v51, %v6140_v14  ;;  %v6866_v9 = vpop.f32.mrb[217].mxu0  ;;  %v3471_v5 = vadd.f32 %v3310_v3, %v3309_v46  ;;  %v3312_v26 = vmul.f32 %v6857_v1, %v6857_v1  ;;  %7731 = vst [vmem:[#allocation53_spill] sm:$0xff] %v6873_v0  ;;  %v4679_v51 = vld [vmem:[%s5175_s20 + $0x250] sm:$0xff] }
 0x409   : > { %v2665_v60 = vpop.f32.mrb[218].mxu0  ;;  %v2938_v24 = vpop.f32.mrb[200].mxu1  ;;  %v6881_v30 = vadd.f32 %v4679_v51, %v2628_v20  ;;  %v3313_v20 = vmul.f32 %v6873_v0, %v6873_v0  ;;  %v4682_v51 = vld [vmem:[%s5175_s20 + $0x260] sm:$0xff] }
 0x40a   : > { %3093 = vst [vmem:[%s6147_s14 + $0x160] sm:$0xff] %v2662_v32  ;;  %v2666_v54 = vadd.f32 %v2665_v60, %v6140_v14  ;;  %v2939_v44 = vadd.f32 %v2938_v24, %v6237_v48  ;;  %v6878_v49 = vpop.f32.mrb[219].mxu0  ;;  %v2940_v46 = vpop.f32.mrb[201].mxu1  ;;  %3472 = vadd.xlane.f32.xlu0 %v3471_v5  ;;  %v3474_v3 = vadd.f32 %v3312_v26, %v3311_v38  ;;  %v4681_v24 = vld [vmem:[%s5175_s20 + $0x258] sm:$0xff] }
 0x40b   : > { %7732 = vst [vmem:[#allocation54_spill] sm:$0xff] %v6881_v30  ;;  %v2941_v1 = vpop.f32.mrb[202].mxu1  ;;  %v2634_v60 = vadd.f32 %v6766_v2, %v6219_v63  ;;  %v3315_v26 = vmul.f32 %v6881_v30, %v6881_v30 }
 0x40c   : > { %3094 = vst [vmem:[%s6147_s14 + $0x168] sm:$0xff] %v2666_v54  ;;  %v6885_v41 = vadd.f32 %v4680_v40, %v2939_v44  ;;  %v2942_v28 = vadd.f32 %v2941_v1, %v6237_v48  ;;  %v2943_v32 = vpop.f32.mrb[203].mxu1  ;;  %3475 = vadd.xlane.f32.xlu1 %v3474_v3  ;;  %v2638_v40 = vadd.f32 %v6776_v22, %v6219_v63 }
 0x40e   : > { %7733 = vst [vmem:[#allocation55_spill] sm:$0xff] %v6885_v41  ;;  %v6891_v34 = vadd.f32 %v4681_v24, %v2942_v28  ;;  %v3314_v5 = vmul.f32 %v6885_v41, %v6885_v41  ;;  %v6907_v28 = vadd.f32 %v4682_v51, %v2634_v60  ;;  %v4684_v41 = vld [vmem:[%s5175_s20 + $0x268] sm:$0xff] }
 0x40f   : > { %v2671_v1 = vpop.f32.mrb[220].mxu0  ;;  %v3371_v38 = vpop.xlane.xlu0 %3370 }
 0x410   : > { %7734 = vst [vmem:[#allocation56_spill] sm:$0xff] %v6891_v34  ;;  %v2672_v2 = vadd.f32 %v2671_v1, %v6140_v14  ;;  %v3561_v54 = vadd.f32 1e-12, %v3371_v38  ;;  %v6902_v44 = vpop.f32.mrb[221].mxu0  ;;  %v3477_v46 = vadd.f32 %v3314_v5, %v3313_v20  ;;  %v3316_v3 = vmul.f32 %v6891_v34, %v6891_v34  ;;  %7735 = vst [vmem:[#allocation57_spill] sm:$0xff] %v6907_v28  ;;  %v4683_v34 = vld [vmem:[%s5175_s20 + $0x270] sm:$0xff] }
 0x411   : > { %v2675_v22 = vpop.f32.mrb[222].mxu0  ;;  %v2946_v32 = vpop.f32.mrb[204].mxu1  ;;  %v6915_v30 = vadd.f32 %v4683_v34, %v2638_v40  ;;  %v3317_v34 = vmul.f32 %v6907_v28, %v6907_v28  ;;  %v2648_v40 = vadd.f32 %v6810_v59, %v6219_v63 }
 0x412   : > { %3095 = vst [vmem:[%s6147_s14 + $0x170] sm:$0xff] %v2672_v2  ;;  %4478 = vrsqrt.f32 %v3561_v54  ;;  %v2676_v24 = vadd.f32 %v2675_v22, %v6140_v14  ;;  %v2947_v1 = vadd.f32 %v2946_v32, %v6237_v48  ;;  %v6912_v38 = vpop.f32.mrb[223].mxu0  ;;  %v2948_v20 = vpop.f32.mrb[205].mxu1  ;;  %3478 = vadd.xlane.f32.xlu0 %v3477_v46  ;;  %v3480_v5 = vadd.f32 %v3316_v3, %v3315_v26  ;;  %v4685_v46 = vld [vmem:[%s5175_s20 + $0x278] sm:$0xff] }
 0x413   : > { %7736 = vst [vmem:[#allocation58_spill] sm:$0xff] %v6915_v30  ;;  %v2949_v60 = vpop.f32.mrb[206].mxu1  ;;  %v3374_v51 = vpop.xlane.xlu0 %3373  ;;  %v2644_v32 = vadd.f32 %v6798_v35, %v6219_v63 }
 0x414   : > { %3096 = vst [vmem:[%s6147_s14 + $0x178] sm:$0xff] %v2676_v24  ;;  %v6919_v0 = vadd.f32 %v4684_v41, %v2947_v1  ;;  %v2950_v2 = vadd.f32 %v2949_v60, %v6237_v48  ;;  %v3562_v54 = vadd.f32 1e-12, %v3374_v51  ;;  %v2951_v22 = vpop.f32.mrb[207].mxu1  ;;  %3481 = vadd.xlane.f32.xlu1 %v3480_v5  ;;  %v3319_v1 = vmul.f32 %v6915_v30, %v6915_v30 }
 0x416   : > { %7737 = vst [vmem:[#allocation59_spill] sm:$0xff] %v6919_v0  ;;  %v6925_v26 = vadd.f32 %v4685_v46, %v2950_v2  ;;  %4480 = vrsqrt.f32 %v3562_v54  ;;  %v3318_v41 = vmul.f32 %v6919_v0, %v6919_v0  ;;  %v4686_v2 = vld [vmem:[%s5175_s20 + $0x280] sm:$0xff] }
 0x417   : > { %v2681_v3 = vpop.f32.mrb[224].mxu0  ;;  %v3377_v24 = vpop.xlane.xlu1 %3376  ;;  %v6941_v54 = vadd.f32 %v4686_v2, %v2644_v32 }
 0x418   : > { %7738 = vst [vmem:[#allocation60_spill] sm:$0xff] %v6925_v26  ;;  %v2682_v35 = vadd.f32 %v2681_v3, %v6140_v14  ;;  %v3563_v20 = vadd.f32 1e-12, %v3377_v24  ;;  %v6936_v5 = vpop.f32.mrb[225].mxu0  ;;  %v3483_v60 = vadd.f32 %v3318_v41, %v3317_v34  ;;  %v3320_v51 = vmul.f32 %v6925_v26, %v6925_v26  ;;  %v4687_v41 = vld [vmem:[%s5175_s20 + $0x290] sm:$0xff] }
 0x419   : > { %v2685_v59 = vpop.f32.mrb[226].mxu0  ;;  %v2954_v22 = vpop.f32.mrb[208].mxu1  ;;  %v6949_v26 = vadd.f32 %v4687_v41, %v2648_v40 }
 0x41a   : > { %3097 = vst [vmem:[%s6147_s14 + $0x180] sm:$0xff] %v2682_v35  ;;  %4482 = vrsqrt.f32 %v3563_v20  ;;  %v2686_v46 = vadd.f32 %v2685_v59, %v6140_v14  ;;  %v2955_v3 = vadd.f32 %v2954_v22, %v6237_v48  ;;  %v6946_v24 = vpop.f32.mrb[227].mxu0  ;;  %v2956_v30 = vpop.f32.mrb[209].mxu1  ;;  %3484 = vadd.xlane.f32.xlu0 %v3483_v60  ;;  %v3486_v34 = vadd.f32 %v3320_v51, %v3319_v1  ;;  %v4688_v35 = vld [vmem:[%s5175_s20 + $0x288] sm:$0xff]  ;;  %v4689_v60 = vld [vmem:[%s5175_s20 + $0x298] sm:$0xff] }
 0x41b   : > { %v2957_v32 = vpop.f32.mrb[210].mxu1  ;;  %v3380_v2 = vpop.xlane.xlu1 %3379  ;;  %v2654_v30 = vadd.f32 %v6834_v29, %v6219_v63  ;;  %v3323_v29 = vmul.f32 %v6949_v26, %v6949_v26 }
 0x41c   : > { %v4479_v0 = vpop.eup %4478  ;;  %3098 = vst [vmem:[%s6147_s14 + $0x188] sm:$0xff] %v2686_v46  ;;  %v6953_v20 = vadd.f32 %v4688_v35, %v2955_v3  ;;  %v2958_v59 = vadd.f32 %v2957_v32, %v6237_v48  ;;  %v3564_v22 = vadd.f32 1e-12, %v3380_v2  ;;  %v2959_v28 = vpop.f32.mrb[211].mxu1  ;;  %3487 = vadd.xlane.f32.xlu1 %v3486_v34  ;;  %v3321_v46 = vmul.f32 %v6941_v54, %v6941_v54  ;;  %v4690_v35 = vld [vmem:[%s5175_s20 + $0x2a0] sm:$0xff] }
 0x41d   : > { %v3689_v1 = vmul.f32 %v4479_v0, %v6250_v50  ;;  %v3690_v40 = vmul.f32 %v4479_v0, %v6260_v33 }
 0x41e   : > { %v6961_v51 = vadd.f32 %v4689_v60, %v2958_v59  ;;  %4484 = vrsqrt.f32 %v3564_v22  ;;  %v3322_v3 = vmul.f32 %v6953_v20, %v6953_v20  ;;  %v6981_v59 = vadd.f32 %v4690_v35, %v2654_v30 }
 0x41f   : > { %3817 = vst [vmem:[%s6969_s10] sm:$0xff] %v3689_v1  ;;  %3818 = vst [vmem:[%s6969_s10 + $0x8] sm:$0xff] %v3690_v40  ;;  %v2691_v50 = vpop.f32.mrb[228].mxu0  ;;  %v3383_v33 = vpop.xlane.xlu0 %3382  ;;  %v2658_v22 = vadd.f32 %v6844_v19, %v6219_v63 }
 0x420   : > { %v4481_v0 = vpop.eup %4480  ;;  %v2692_v28 = vadd.f32 %v2691_v50, %v6140_v14  ;;  %v3565_v34 = vadd.f32 1e-12, %v3383_v33  ;;  %v6976_v41 = vpop.f32.mrb[229].mxu0  ;;  %v3489_v32 = vadd.f32 %v3322_v3, %v3321_v46  ;;  %v3324_v2 = vmul.f32 %v6961_v51, %v6961_v51 }
 0x421   : > { %v3691_v1 = vmul.f32 %v4481_v0, %v6265_v39  ;;  %v3692_v40 = vmul.f32 %v4481_v0, %v6270_v11  ;;  %v2695_v60 = vpop.f32.mrb[230].mxu0  ;;  %v2962_v50 = vpop.f32.mrb[212].mxu1 }
 0x422   : > { %3099 = vst [vmem:[%s6147_s14 + $0x190] sm:$0xff] %v2692_v28  ;;  %4486 = vrsqrt.f32 %v3565_v34  ;;  %v2696_v46 = vadd.f32 %v2695_v60, %v6140_v14  ;;  %v2963_v3 = vadd.f32 %v2962_v50, %v6237_v48  ;;  %v3386_v30 = vpop.xlane.xlu1 %3385  ;;  %v6990_v33 = vpop.f32.mrb[231].mxu0  ;;  %3490 = vadd.xlane.f32.xlu0 %v3489_v32  ;;  %v3492_v19 = vadd.f32 %v3324_v2, %v3323_v29  ;;  %v4691_v28 = vld [vmem:[%s5175_s20 + $0x2a8] sm:$0xff]  ;;  %v4692_v60 = vld [vmem:[%s5175_s20 + $0x2b0] sm:$0xff] }
 0x423   : > { %3819 = vst [vmem:[%s6969_s10 + $0x10] sm:$0xff] %v3691_v1  ;;  %3820 = vst [vmem:[%s6969_s10 + $0x18] sm:$0xff] %v3692_v40  ;;  %v3566_v39 = vadd.f32 1e-12, %v3386_v30  ;;  %v2964_v11 = vpop.f32.mrb[213].mxu1  ;;  %v6999_v50 = vadd.f32 %v4692_v60, %v2658_v22  ;;  %v3325_v40 = vmul.f32 %v6981_v59, %v6981_v59 }
 0x424   : > { %v4483_v0 = vpop.eup %4482  ;;  %3100 = vst [vmem:[%s6147_s14 + $0x198] sm:$0xff] %v2696_v46  ;;  %v6996_v34 = vadd.f32 %v4691_v28, %v2963_v3  ;;  %v2965_v35 = vpop.f32.mrb[214].mxu1  ;;  %3493 = vadd.xlane.f32.xlu1 %v3492_v19  ;;  %v2664_v3 = vadd.f32 %v6866_v9, %v6219_v63 }
 0x425   : > { %7739 = vst [vmem:[#allocation61_spill] sm:$0xff] %v6999_v50  ;;  %v3693_v32 = vmul.f32 %v4483_v0, %v6286_v62  ;;  %v3694_v29 = vmul.f32 %v4483_v0, %v6297_v23  ;;  %4488 = vrsqrt.f32 %v3566_v39  ;;  %v2967_v2 = vpop.f32.mrb[215].mxu1  ;;  %v2966_v1 = vadd.f32 %v2965_v35, %v6237_v48  ;;  %v4693_v23 = vld [vmem:[%s5175_s20 + $0x2b8] sm:$0xff] }
 0x426   : > { %v3326_v46 = vmul.f32 %v6996_v34, %v6996_v34  ;;  %v2668_v35 = vadd.f32 %v6878_v49, %v6219_v63  ;;  %v3327_v2 = vmul.f32 %v6999_v50, %v6999_v50 }
 0x427   : > { %3821 = vst [vmem:[%s6969_s10 + $0x20] sm:$0xff] %v3693_v32  ;;  %3822 = vst [vmem:[%s6969_s10 + $0x28] sm:$0xff] %v3694_v29  ;;  %v2701_v22 = vpop.f32.mrb[232].mxu0  ;;  %v3389_v62 = vpop.xlane.xlu0 %3388  ;;  %v7013_v19 = vadd.f32 %v4693_v23, %v2966_v1 }
 0x428   : > { %v4485_v30 = vpop.eup %4484  ;;  %v2702_v39 = vadd.f32 %v2701_v22, %v6140_v14  ;;  %v3567_v11 = vadd.f32 1e-12, %v3389_v62  ;;  %v7016_v0 = vpop.f32.mrb[233].mxu0  ;;  %v3495_v28 = vadd.f32 %v3326_v46, %v3325_v40 }
 0x429   : > { %7740 = vst [vmem:[#allocation62_spill] sm:$0xff] %v7013_v19  ;;  %v3695_v9 = vmul.f32 %v4485_v30, %v6301_v13  ;;  %v3696_v60 = vmul.f32 %v4485_v30, %v6306_v18  ;;  %v2705_v32 = vpop.f32.mrb[234].mxu0  ;;  %v2970_v29 = vpop.f32.mrb[216].mxu1  ;;  %v3328_v13 = vmul.f32 %v7013_v19, %v7013_v19  ;;  %v4694_v18 = vld [vmem:[%s5175_s20 + $0x2c0] sm:$0xff] }
 0x42a   : > { %3101 = vst [vmem:[%s6147_s14 + $0x1a0] sm:$0xff] %v2702_v39  ;;  %4490 = vrsqrt.f32 %v3567_v11  ;;  %v2706_v1 = vadd.f32 %v2705_v32, %v6140_v14  ;;  %v2971_v40 = vadd.f32 %v2970_v29, %v6237_v48  ;;  %v3392_v49 = vpop.xlane.xlu1 %3391  ;;  %v7027_v46 = vpop.f32.mrb[235].mxu0  ;;  %3496 = vadd.xlane.f32.xlu0 %v3495_v28  ;;  %v7032_v22 = vadd.f32 %v4694_v18, %v2664_v3  ;;  %v4695_v39 = vld [vmem:[%s5175_s20 + $0x2c8] sm:$0xff]  ;;  %v4696_v28 = vld [vmem:[%s5175_s20 + $0x2d0] sm:$0xff]  ;;  %v4697_v18 = vld [vmem:[%s5175_s20 + $0x2d8] sm:$0xff] }
 0x42b   : > { %3823 = vst [vmem:[%s6969_s10 + $0x30] sm:$0xff] %v3695_v9  ;;  %3824 = vst [vmem:[%s6969_s10 + $0x38] sm:$0xff] %v3696_v60  ;;  %v3568_v62 = vadd.f32 1e-12, %v3392_v49  ;;  %v2972_v30 = vpop.f32.mrb[217].mxu1  ;;  %v3498_v29 = vadd.f32 %v3328_v13, %v3327_v2  ;;  %v7041_v50 = vadd.f32 %v4696_v28, %v2668_v35  ;;  %v2674_v2 = vadd.f32 %v6902_v44, %v6219_v63 }
 0x42c   : > { %v4487_v23 = vpop.eup %4486  ;;  %3102 = vst [vmem:[%s6147_s14 + $0x1a8] sm:$0xff] %v2706_v1  ;;  %v7038_v11 = vadd.f32 %v4695_v39, %v2971_v40  ;;  %v2973_v32 = vpop.f32.mrb[218].mxu1 }
 0x42d   : > { %v3697_v19 = vmul.f32 %v4487_v23, %v6322_v8  ;;  %v3698_v3 = vmul.f32 %v4487_v23, %v6336_v45  ;;  %4492 = vrsqrt.f32 %v3568_v62  ;;  %v2975_v9 = vpop.f32.mrb[219].mxu1  ;;  %v2974_v60 = vadd.f32 %v2973_v32, %v6237_v48  ;;  %3499 = vadd.xlane.f32.xlu1 %v3498_v29 }
 0x42e   : > { %v3330_v1 = vmul.f32 %v7038_v11, %v7038_v11  ;;  %v3329_v45 = vmul.f32 %v7032_v22, %v7032_v22  ;;  %v3331_v29 = vmul.f32 %v7041_v50, %v7041_v50 }
 0x42f   : > { %v4489_v40 = vpop.eup %4488  ;;  %3825 = vst [vmem:[%s6969_s10 + $0x40] sm:$0xff] %v3697_v19  ;;  %3826 = vst [vmem:[%s6969_s10 + $0x48] sm:$0xff] %v3698_v3  ;;  %v2711_v35 = vpop.f32.mrb[236].mxu0  ;;  %v7057_v62 = vadd.f32 %v4697_v18, %v2974_v60 }
 0x430   : > { %v3395_v8 = vpop.xlane.xlu0 %3394  ;;  %v3699_v49 = vmul.f32 %v4489_v40, %v6332_v57  ;;  %v3700_v13 = vmul.f32 %v4489_v40, %v6344_v27  ;;  %v2712_v30 = vadd.f32 %v2711_v35, %v6140_v14  ;;  %v7060_v44 = vpop.f32.mrb[237].mxu0  ;;  %v3501_v32 = vadd.f32 %v3330_v1, %v3329_v45  ;;  %v4698_v1 = vld [vmem:[%s5175_s20 + $0x2e0] sm:$0xff]  ;;  %v4699_v45 = vld [vmem:[%s5175_s20 + $0x2e8] sm:$0xff] }
 0x431   : > { %v3569_v19 = vadd.f32 1e-12, %v3395_v8  ;;  %v2715_v23 = vpop.f32.mrb[238].mxu0  ;;  %v2978_v39 = vpop.f32.mrb[220].mxu1  ;;  %v2678_v57 = vadd.f32 %v6912_v38, %v6219_v63  ;;  %v3332_v60 = vmul.f32 %v7057_v62, %v7057_v62  ;;  %v7076_v40 = vadd.f32 %v4698_v1, %v2674_v2  ;;  %v4701_v1 = vld [vmem:[%s5175_s20 + $0x2f8] sm:$0xff] }
 0x432   : > { %3827 = vst [vmem:[%s6969_s10 + $0x50] sm:$0xff] %v3699_v49  ;;  %3828 = vst [vmem:[%s6969_s10 + $0x58] sm:$0xff] %v3700_v13  ;;  %v2716_v27 = vadd.f32 %v2715_v23, %v6140_v14  ;;  %v2979_v28 = vadd.f32 %v2978_v39, %v6237_v48  ;;  %v3398_v3 = vpop.xlane.xlu1 %3397  ;;  %v7071_v9 = vpop.f32.mrb[239].mxu0  ;;  %3502 = vadd.xlane.f32.xlu0 %v3501_v32 }
 0x433   : > { %3103 = vst [vmem:[%s6147_s14 + $0x1b0] sm:$0xff] %v2712_v30  ;;  %4494 = vrsqrt.f32 %v3569_v19  ;;  %v3570_v38 = vadd.f32 1e-12, %v3398_v3  ;;  %v2980_v35 = vpop.f32.mrb[221].mxu1  ;;  %v3504_v18 = vadd.f32 %v3332_v60, %v3331_v29  ;;  %v4700_v19 = vld [vmem:[%s5175_s20 + $0x2f0] sm:$0xff]  ;;  %v2684_v29 = vadd.f32 %v6936_v5, %v6219_v63 }
 0x434   : > { %v4491_v8 = vpop.eup %4490  ;;  %3104 = vst [vmem:[%s6147_s14 + $0x1b8] sm:$0xff] %v2716_v27  ;;  %v7080_v49 = vadd.f32 %v4699_v45, %v2979_v28  ;;  %v2981_v13 = vpop.f32.mrb[222].mxu1  ;;  %v7085_v39 = vadd.f32 %v4700_v19, %v2678_v57  ;;  %v3333_v57 = vmul.f32 %v7076_v40, %v7076_v40 }
 0x435   : > { %v3701_v30 = vmul.f32 %v4491_v8, %v6360_v56  ;;  %v3702_v23 = vmul.f32 %v4491_v8, %v6372_v31  ;;  %4496 = vrsqrt.f32 %v3570_v38  ;;  %v2983_v2 = vpop.f32.mrb[223].mxu1  ;;  %v2982_v32 = vadd.f32 %v2981_v13, %v6237_v48  ;;  %3505 = vadd.xlane.f32.xlu1 %v3504_v18 }
 0x436   : > { %v3334_v27 = vmul.f32 %v7080_v49, %v7080_v49  ;;  %v2688_v8 = vadd.f32 %v6946_v24, %v6219_v63  ;;  %v3335_v24 = vmul.f32 %v7085_v39, %v7085_v39 }
 0x437   : > { %v4493_v28 = vpop.eup %4492  ;;  %3829 = vst [vmem:[%s6969_s10 + $0x60] sm:$0xff] %v3701_v30  ;;  %3830 = vst [vmem:[%s6969_s10 + $0x68] sm:$0xff] %v3702_v23  ;;  %v2721_v56 = vpop.f32.mrb[240].mxu0  ;;  %v7099_v38 = vadd.f32 %v4701_v1, %v2982_v32  ;;  %v4702_v32 = vld [vmem:[%s5175_s20 + $0x300] sm:$0xff] }
 0x438   : > { %v3401_v31 = vpop.xlane.xlu0 %3400  ;;  %v3703_v3 = vmul.f32 %v4493_v28, %v6368_v4  ;;  %v3704_v60 = vmul.f32 %v4493_v28, %v6378_v21  ;;  %v2722_v35 = vadd.f32 %v2721_v56, %v6140_v14  ;;  %v7102_v5 = vpop.f32.mrb[241].mxu0  ;;  %v3507_v30 = vadd.f32 %v3334_v27, %v3333_v57 }
 0x439   : > { %v3571_v45 = vadd.f32 1e-12, %v3401_v31  ;;  %v2725_v13 = vpop.f32.mrb[242].mxu0  ;;  %v2986_v18 = vpop.f32.mrb[224].mxu1  ;;  %v3336_v19 = vmul.f32 %v7099_v38, %v7099_v38  ;;  %v7118_v27 = vadd.f32 %v4702_v32, %v2684_v29  ;;  %v4703_v31 = vld [vmem:[%s5175_s20 + $0x308] sm:$0xff] }
 0x43a   : > { %3831 = vst [vmem:[%s6969_s10 + $0x70] sm:$0xff] %v3703_v3  ;;  %3832 = vst [vmem:[%s6969_s10 + $0x78] sm:$0xff] %v3704_v60  ;;  %v2726_v4 = vadd.f32 %v2725_v13, %v6140_v14  ;;  %v2987_v21 = vadd.f32 %v2986_v18, %v6237_v48  ;;  %v3404_v23 = vpop.xlane.xlu1 %3403  ;;  %v7111_v2 = vpop.f32.mrb[243].mxu0  ;;  %3508 = vadd.xlane.f32.xlu0 %v3507_v30 }
 0x43b   : > { %3105 = vst [vmem:[%s6147_s14 + $0x1c0] sm:$0xff] %v2722_v35  ;;  %4498 = vrsqrt.f32 %v3571_v45  ;;  %v3572_v28 = vadd.f32 1e-12, %v3404_v23  ;;  %v2988_v56 = vpop.f32.mrb[225].mxu1  ;;  %v3510_v60 = vadd.f32 %v3336_v19, %v3335_v24  ;;  %v4704_v35 = vld [vmem:[%s5175_s20 + $0x310] sm:$0xff]  ;;  %v2694_v23 = vadd.f32 %v6976_v41, %v6219_v63  ;;  %v4705_v24 = vld [vmem:[%s5175_s20 + $0x318] sm:$0xff] }
 0x43c   : > { %3106 = vst [vmem:[%s6147_s14 + $0x1c8] sm:$0xff] %v2726_v4  ;;  %v7122_v57 = vadd.f32 %v4703_v31, %v2987_v21  ;;  %v2989_v3 = vpop.f32.mrb[226].mxu1  ;;  %v7125_v13 = vadd.f32 %v4704_v35, %v2688_v8 }
 0x43d   : > { %v4495_v1 = vpop.eup %4494  ;;  %4500 = vrsqrt.f32 %v3572_v28  ;;  %v2990_v29 = vadd.f32 %v2989_v3, %v6237_v48  ;;  %v2991_v45 = vpop.f32.mrb[227].mxu1  ;;  %3511 = vadd.xlane.f32.xlu1 %v3510_v60  ;;  %v2698_v3 = vadd.f32 %v6990_v33, %v6219_v63 }
 0x43e   : > { %v3705_v18 = vmul.f32 %v4495_v1, %v6396_v36  ;;  %v3706_v30 = vmul.f32 %v4495_v1, %v6408_v17  ;;  %v3338_v4 = vmul.f32 %v7122_v57, %v7122_v57  ;;  %v3337_v36 = vmul.f32 %v7118_v27, %v7118_v27 }
 0x43f   : > { %v4497_v21 = vpop.eup %4496  ;;  %v7135_v8 = vadd.f32 %v4705_v24, %v2990_v29  ;;  %v2731_v19 = vpop.f32.mrb[244].mxu0  ;;  %v3339_v29 = vmul.f32 %v7125_v13, %v7125_v13 }
 0x440   : > { %v3407_v32 = vpop.xlane.xlu0 %3406  ;;  %3833 = vst [vmem:[%s6969_s10 + $0x80] sm:$0xff] %v3705_v18  ;;  %3834 = vst [vmem:[%s6969_s10 + $0x88] sm:$0xff] %v3706_v30  ;;  %v3707_v17 = vmul.f32 %v4497_v21, %v6404_v43  ;;  %v3708_v28 = vmul.f32 %v4497_v21, %v6414_v53  ;;  %v2732_v56 = vadd.f32 %v2731_v19, %v6140_v14  ;;  %v7144_v31 = vpop.f32.mrb[245].mxu0  ;;  %v4706_v30 = vld [vmem:[%s5175_s20 + $0x320] sm:$0xff] }
 0x441   : > { %v3573_v41 = vadd.f32 1e-12, %v3407_v32  ;;  %v2735_v60 = vpop.f32.mrb[246].mxu0  ;;  %v2994_v1 = vpop.f32.mrb[228].mxu1  ;;  %v3513_v35 = vadd.f32 %v3338_v4, %v3337_v36  ;;  %v3340_v43 = vmul.f32 %v7135_v8, %v7135_v8  ;;  %v7160_v4 = vadd.f32 %v4706_v30, %v2694_v23  ;;  %v4707_v32 = vld [vmem:[%s5175_s20 + $0x328] sm:$0xff] }
 0x442   : > { %3835 = vst [vmem:[%s6969_s10 + $0x90] sm:$0xff] %v3707_v17  ;;  %3836 = vst [vmem:[%s6969_s10 + $0x98] sm:$0xff] %v3708_v28  ;;  %v2736_v53 = vadd.f32 %v2735_v60, %v6140_v14  ;;  %v2995_v33 = vadd.f32 %v2994_v1, %v6237_v48  ;;  %v3410_v45 = vpop.xlane.xlu1 %3409  ;;  %v7157_v18 = vpop.f32.mrb[247].mxu0 }
 0x443   : > { %3107 = vst [vmem:[%s6147_s14 + $0x1d0] sm:$0xff] %v2732_v56  ;;  %4502 = vrsqrt.f32 %v3573_v41  ;;  %v3574_v21 = vadd.f32 1e-12, %v3410_v45  ;;  %v2996_v24 = vpop.f32.mrb[229].mxu1  ;;  %3514 = vadd.xlane.f32.xlu0 %v3513_v35  ;;  %v3516_v19 = vadd.f32 %v3340_v43, %v3339_v29  ;;  %v4708_v56 = vld [vmem:[%s5175_s20 + $0x330] sm:$0xff] }
 0x444   : > { %3108 = vst [vmem:[%s6147_s14 + $0x1d8] sm:$0xff] %v2736_v53  ;;  %v7164_v36 = vadd.f32 %v4707_v32, %v2995_v33  ;;  %v2997_v17 = vpop.f32.mrb[230].mxu1  ;;  %v7167_v41 = vadd.f32 %v4708_v56, %v2698_v3  ;;  %v2704_v53 = vadd.f32 %v7016_v0, %v6219_v63  ;;  %v4709_v33 = vld [vmem:[%s5175_s20 + $0x338] sm:$0xff] }
 0x445   : > { %v4499_v28 = vpop.eup %4498  ;;  %4504 = vrsqrt.f32 %v3574_v21  ;;  %v2998_v23 = vadd.f32 %v2997_v17, %v6237_v48  ;;  %v2999_v60 = vpop.f32.mrb[231].mxu1  ;;  %3517 = vadd.xlane.f32.xlu1 %v3516_v19  ;;  %v3341_v21 = vmul.f32 %v7160_v4, %v7160_v4 }
 0x446   : > { %v3709_v1 = vmul.f32 %v4499_v28, %v6431_v7  ;;  %v3710_v35 = vmul.f32 %v4499_v28, %v6443_v58  ;;  %v3342_v29 = vmul.f32 %v7164_v36, %v7164_v36  ;;  %v3343_v56 = vmul.f32 %v7167_v41, %v7167_v41 }
 0x447   : > { %v4501_v43 = vpop.eup %4500  ;;  %v7177_v3 = vadd.f32 %v4709_v33, %v2998_v23  ;;  %v2741_v45 = vpop.f32.mrb[248].mxu0 }
 0x448   : > { %v3413_v30 = vpop.xlane.xlu0 %3412  ;;  %3837 = vst [vmem:[%s6969_s10 + $0xa0] sm:$0xff] %v3709_v1  ;;  %3838 = vst [vmem:[%s6969_s10 + $0xa8] sm:$0xff] %v3710_v35  ;;  %v3711_v7 = vmul.f32 %v4501_v43, %v6439_v25  ;;  %v3712_v58 = vmul.f32 %v4501_v43, %v6449_v42  ;;  %v2742_v24 = vadd.f32 %v2741_v45, %v6140_v14  ;;  %v7186_v19 = vpop.f32.mrb[249].mxu0 }
 0x449   : > { %v3575_v0 = vadd.f32 1e-12, %v3413_v30  ;;  %v2745_v32 = vpop.f32.mrb[250].mxu0  ;;  %v3002_v17 = vpop.f32.mrb[232].mxu1  ;;  %v3519_v28 = vadd.f32 %v3342_v29, %v3341_v21  ;;  %v3344_v23 = vmul.f32 %v7177_v3, %v7177_v3  ;;  %v2708_v25 = vadd.f32 %v7027_v46, %v6219_v63  ;;  %v4710_v29 = vld [vmem:[%s5175_s20 + $0x340] sm:$0xff]  ;;  %v4711_v21 = vld [vmem:[%s5175_s20 + $0x348] sm:$0xff] }
 0x44a   : > { %3839 = vst [vmem:[%s6969_s10 + $0xb0] sm:$0xff] %v3711_v7  ;;  %3840 = vst [vmem:[%s6969_s10 + $0xb8] sm:$0xff] %v3712_v58  ;;  %v2746_v42 = vadd.f32 %v2745_v32, %v6140_v14  ;;  %v3003_v60 = vadd.f32 %v3002_v17, %v6237_v48  ;;  %v3416_v1 = vpop.xlane.xlu1 %3415  ;;  %v7199_v35 = vpop.f32.mrb[251].mxu0  ;;  %v7202_v43 = vadd.f32 %v4710_v29, %v2704_v53  ;;  %v4712_v53 = vld [vmem:[%s5175_s20 + $0x350] sm:$0xff] }
 0x44b   : > { %3109 = vst [vmem:[%s6147_s14 + $0x1e0] sm:$0xff] %v2742_v24  ;;  %4506 = vrsqrt.f32 %v3575_v0  ;;  %v3576_v33 = vadd.f32 1e-12, %v3416_v1  ;;  %v3004_v45 = vpop.f32.mrb[233].mxu1  ;;  %3520 = vadd.xlane.f32.xlu0 %v3519_v28  ;;  %v3522_v46 = vadd.f32 %v3344_v23, %v3343_v56  ;;  %v7211_v17 = vadd.f32 %v4712_v53, %v2708_v25 }
 0x44c   : > { %3110 = vst [vmem:[%s6147_s14 + $0x1e8] sm:$0xff] %v2746_v42  ;;  %v7206_v7 = vadd.f32 %v4711_v21, %v3003_v60  ;;  %v3005_v58 = vpop.f32.mrb[234].mxu1  ;;  %v2714_v42 = vadd.f32 %v7060_v44, %v6219_v63  ;;  %v3345_v60 = vmul.f32 %v7202_v43, %v7202_v43 }
 0x44d   : > { %v4503_v30 = vpop.eup %4502  ;;  %4508 = vrsqrt.f32 %v3576_v33  ;;  %v3007_v32 = vpop.f32.mrb[235].mxu1  ;;  %3523 = vadd.xlane.f32.xlu1 %v3522_v46  ;;  %v3006_v28 = vadd.f32 %v3005_v58, %v6237_v48  ;;  %v4713_v33 = vld [vmem:[%s5175_s20 + $0x358] sm:$0xff] }
 0x44e   : > { %v3713_v24 = vmul.f32 %v4503_v30, %v6465_v37  ;;  %v3714_v0 = vmul.f32 %v4503_v30, %v6477_v6  ;;  %v3346_v56 = vmul.f32 %v7206_v7, %v7206_v7  ;;  %v2718_v37 = vadd.f32 %v7071_v9, %v6219_v63 }
 0x44f   : > { %v4505_v23 = vpop.eup %4504  ;;  %v2751_v6 = vpop.f32.mrb[252].mxu0  ;;  %v7227_v45 = vadd.f32 %v4713_v33, %v3006_v28  ;;  %v3347_v32 = vmul.f32 %v7211_v17, %v7211_v17  ;;  %v4714_v28 = vld [vmem:[%s5175_s20 + $0x360] sm:$0xff] }
 0x450   : > { %3841 = vst [vmem:[%s6969_s10 + $0xc0] sm:$0xff] %v3713_v24  ;;  %3842 = vst [vmem:[%s6969_s10 + $0xc8] sm:$0xff] %v3714_v0  ;;  %v3419_v25 = vpop.xlane.xlu0 %3418  ;;  %v3715_v1 = vmul.f32 %v4505_v23, %v6473_v10  ;;  %v3716_v29 = vmul.f32 %v4505_v23, %v6483_v52  ;;  %v2752_v44 = vadd.f32 %v2751_v6, %v6140_v14  ;;  %v7230_v9 = vpop.f32.mrb[253].mxu0 }
 0x451   : > { %v3577_v46 = vadd.f32 1e-12, %v3419_v25  ;;  %v2755_v30 = vpop.f32.mrb[254].mxu0  ;;  %v3010_v21 = vpop.f32.mrb[236].mxu1  ;;  %v3525_v58 = vadd.f32 %v3346_v56, %v3345_v60  ;;  %v3348_v53 = vmul.f32 %v7227_v45, %v7227_v45  ;;  %v7244_v56 = vadd.f32 %v4714_v28, %v2714_v42  ;;  %v4715_v25 = vld [vmem:[%s5175_s20 + $0x370] sm:$0xff]  ;;  %v4718_v28 = vld [vmem:[%s5175_s20 + $0x380] sm:$0xff] }
 0x452   : > { %3843 = vst [vmem:[%s6969_s10 + $0xd0] sm:$0xff] %v3715_v1  ;;  %3844 = vst [vmem:[%s6969_s10 + $0xd8] sm:$0xff] %v3716_v29  ;;  %v2756_v10 = vadd.f32 %v2755_v30, %v6140_v14  ;;  %v3011_v52 = vadd.f32 %v3010_v21, %v6237_v48  ;;  %v3422_v24 = vpop.xlane.xlu1 %3421  ;;  %v7237_v0 = vpop.f32.mrb[255].mxu0  ;;  %v7247_v60 = vadd.f32 %v4715_v25, %v2718_v37  ;;  %v4716_v1 = vld [vmem:[%s5175_s20 + $0x368] sm:$0xff] }
 0x453   : > { %3111 = vst [vmem:[%s6147_s14 + $0x1f0] sm:$0xff] %v2752_v44  ;;  %4510 = vrsqrt.f32 %v3577_v46  ;;  %v3578_v23 = vadd.f32 1e-12, %v3422_v24  ;;  %v3012_v6 = vpop.f32.mrb[237].mxu1  ;;  %3526 = vadd.xlane.f32.xlu0 %v3525_v58  ;;  %v3528_v44 = vadd.f32 %v3348_v53, %v3347_v32  ;;  %v2724_v42 = vadd.f32 %v7102_v5, %v6219_v63  ;;  %v4717_v24 = vld [vmem:[%s5175_s20 + $0x378] sm:$0xff] }
 0x454   : > { %3112 = vst [vmem:[%s6147_s14 + $0x1f8] sm:$0xff] %v2756_v10  ;;  %v7251_v29 = vadd.f32 %v4716_v1, %v3011_v52  ;;  %v3013_v33 = vpop.f32.mrb[238].mxu1  ;;  %v2728_v6 = vadd.f32 %v7111_v2, %v6219_v63 }
 0x455   : > { %v4507_v14 = vpop.eup %4506  ;;  %4512 = vrsqrt.f32 %v3578_v23  ;;  %v3015_v21 = vpop.f32.mrb[239].mxu1  ;;  %v3014_v37 = vadd.f32 %v3013_v33, %v6237_v48  ;;  %3529 = vadd.xlane.f32.xlu1 %v3528_v44  ;;  %v7270_v23 = vadd.f32 %v4718_v28, %v2724_v42  ;;  %v3351_v33 = vmul.f32 %v7247_v60, %v7247_v60  ;;  %v4721_v28 = vld [vmem:[%s5175_s20 + $0x398] sm:$0xff] }
 0x456   : > { %v3717_v46 = vmul.f32 %v4507_v14, %v6499_v16  ;;  %v3718_v30 = vmul.f32 %v4507_v14, %v6511_v12  ;;  %v3350_v58 = vmul.f32 %v7251_v29, %v7251_v29  ;;  %v3349_v16 = vmul.f32 %v7244_v56, %v7244_v56 }
 0x457   : > { %v4509_v10 = vpop.eup %4508  ;;  %v3425_v52 = vpop.xlane.xlu0 %3424  ;;  %v7267_v32 = vadd.f32 %v4717_v24, %v3014_v37 }
 0x458   : > { %3845 = vst [vmem:[%s6969_s10 + $0xe0] sm:$0xff] %v3717_v46  ;;  %3846 = vst [vmem:[%s6969_s10 + $0xe8] sm:$0xff] %v3718_v30  ;;  %v3719_v12 = vmul.f32 %v4509_v10, %v6507_v47  ;;  %v3720_v5 = vmul.f32 %v4509_v10, %v6517_v55  ;;  %v3579_v53 = vadd.f32 1e-12, %v3425_v52  ;;  %v3531_v1 = vadd.f32 %v3350_v58, %v3349_v16  ;;  %v4719_v46 = vld [vmem:[%s5175_s20 + $0x388] sm:$0xff]  ;;  %v4720_v52 = vld [vmem:[%s5175_s20 + $0x390] sm:$0xff] }
 0x459   : > { %v3018_v14 = vpop.f32.mrb[240].mxu1  ;;  %v3428_v25 = vpop.xlane.xlu1 %3427  ;;  %v3352_v42 = vmul.f32 %v7267_v32, %v7267_v32  ;;  %v7286_v16 = vadd.f32 %v4720_v52, %v2728_v6 }
 0x45a   : > { %3847 = vst [vmem:[%s6969_s10 + $0xf0] sm:$0xff] %v3719_v12  ;;  %3848 = vst [vmem:[%s6969_s10 + $0xf8] sm:$0xff] %v3720_v5  ;;  %4514 = vrsqrt.f32 %v3579_v53  ;;  %v3019_v47 = vadd.f32 %v3018_v14, %v6237_v48  ;;  %v3580_v55 = vadd.f32 1e-12, %v3428_v25  ;;  %v3020_v44 = vpop.f32.mrb[241].mxu1  ;;  %3532 = vadd.xlane.f32.xlu0 %v3531_v1  ;;  %v2734_v12 = vadd.f32 %v7144_v31, %v6219_v63 }
 0x45b   : > { %v3021_v2 = vpop.f32.mrb[242].mxu1  ;;  %v3534_v58 = vadd.f32 %v3352_v42, %v3351_v33  ;;  %v3353_v5 = vmul.f32 %v7270_v23, %v7270_v23  ;;  %v2738_v31 = vadd.f32 %v7157_v18, %v6219_v63  ;;  %v4722_v18 = vld [vmem:[%s5175_s20 + $0x3a0] sm:$0xff] }
 0x45c   : > { %v7282_v30 = vadd.f32 %v4719_v46, %v3019_v47  ;;  %4516 = vrsqrt.f32 %v3580_v55  ;;  %v3022_v21 = vadd.f32 %v3021_v2, %v6237_v48  ;;  %v3023_v37 = vpop.f32.mrb[243].mxu1  ;;  %v3355_v46 = vmul.f32 %v7286_v16, %v7286_v16 }
 0x45d   : > { %v4511_v10 = vpop.eup %4510  ;;  %3535 = vadd.xlane.f32.xlu1 %v3534_v58  ;;  %v7310_v37 = vadd.f32 %v4722_v18, %v2734_v12  ;;  %v7745_v18 = vld [vmem:[#allocation18_spill] sm:$0xff] }
 0x45e   : > { %v3721_v24 = vmul.f32 %v4511_v10, %v6533_v15  ;;  %v3722_v53 = vmul.f32 %v4511_v10, %v6545_v61  ;;  %v7295_v14 = vadd.f32 %v4721_v28, %v3022_v21  ;;  %v3354_v25 = vmul.f32 %v7282_v30, %v7282_v30  ;;  %v7741_v15 = vld [vmem:[#allocation15_spill] sm:$0xff]  ;;  %v7742_v61 = vld [vmem:[#allocation16_spill] sm:$0xff] }
 0x45f   : > { %v4513_v6 = vpop.eup %4512  ;;  %v3431_v1 = vpop.xlane.xlu0 %3430  ;;  %v4723_v28 = vld [vmem:[%s5175_s20 + $0x3b0] sm:$0xff] }
 0x460   : > { %3849 = vst [vmem:[%s6969_s10 + $0x100] sm:$0xff] %v3721_v24  ;;  %3850 = vst [vmem:[%s6969_s10 + $0x108] sm:$0xff] %v3722_v53  ;;  %v3723_v33 = vmul.f32 %v4513_v6, %v7741_v15  ;;  %v3724_v47 = vmul.f32 %v4513_v6, %v7742_v61  ;;  %v3581_v55 = vadd.f32 1e-12, %v3431_v1  ;;  %v3537_v44 = vadd.f32 %v3354_v25, %v3353_v5  ;;  %v4724_v6 = vld [vmem:[%s5175_s20 + $0x3a8] sm:$0xff]  ;;  %v7743_v61 = vld [vmem:[#allocation17_spill] sm:$0xff] }
 0x461   : > { %v3026_v42 = vpop.f32.mrb[244].mxu1  ;;  %v3434_v2 = vpop.xlane.xlu1 %3433  ;;  %v3356_v21 = vmul.f32 %v7295_v14, %v7295_v14  ;;  %v7316_v25 = vadd.f32 %v4723_v28, %v2738_v31 }
 0x462   : > { %3851 = vst [vmem:[%s6969_s10 + $0x110] sm:$0xff] %v3723_v33  ;;  %3852 = vst [vmem:[%s6969_s10 + $0x118] sm:$0xff] %v3724_v47  ;;  %4518 = vrsqrt.f32 %v3581_v55  ;;  %v3027_v58 = vadd.f32 %v3026_v42, %v6237_v48  ;;  %v3582_v10 = vadd.f32 1e-12, %v3434_v2  ;;  %v3028_v52 = vpop.f32.mrb[245].mxu1  ;;  %3538 = vadd.xlane.f32.xlu0 %v3537_v44  ;;  %v2744_v33 = vadd.f32 %v7186_v19, %v6219_v63  ;;  %v7744_v55 = vld [vmem:[#allocation19_spill] sm:$0xff] }
 0x463   : > { %v3029_v5 = vpop.f32.mrb[246].mxu1  ;;  %v3540_v24 = vadd.f32 %v3356_v21, %v3355_v46  ;;  %v4725_v42 = vld [vmem:[%s5175_s20 + $0x3b8] sm:$0xff]  ;;  %v3357_v46 = vmul.f32 %v7310_v37, %v7310_v37  ;;  %v2748_v19 = vadd.f32 %v7199_v35, %v6219_v63  ;;  %v3359_v28 = vmul.f32 %v7316_v25, %v7316_v25 }
 0x464   : > { %v4515_v53 = vpop.eup %4514  ;;  %v7319_v12 = vadd.f32 %v4724_v6, %v3027_v58  ;;  %4520 = vrsqrt.f32 %v3582_v10  ;;  %v3030_v1 = vadd.f32 %v3029_v5, %v6237_v48  ;;  %v3031_v15 = vpop.f32.mrb[247].mxu1  ;;  %v7746_v10 = vld [vmem:[#allocation20_spill] sm:$0xff] }
 0x465   : > { %v3725_v47 = vmul.f32 %v4515_v53, %v7743_v61  ;;  %v3726_v44 = vmul.f32 %v4515_v53, %v7744_v55  ;;  %3541 = vadd.xlane.f32.xlu1 %v3540_v24 }
 0x466   : > { %v4517_v31 = vpop.eup %4516  ;;  %v7327_v2 = vadd.f32 %v4725_v42, %v3030_v1  ;;  %v3358_v21 = vmul.f32 %v7319_v12, %v7319_v12  ;;  %v4726_v1 = vld [vmem:[%s5175_s20 + $0x3c0] sm:$0xff]  ;;  %v4727_v42 = vld [vmem:[%s5175_s20 + $0x3d0] sm:$0xff] }
 0x467   : > { %3853 = vst [vmem:[%s6969_s10 + $0x120] sm:$0xff] %v3725_v47  ;;  %3854 = vst [vmem:[%s6969_s10 + $0x128] sm:$0xff] %v3726_v44  ;;  %v3727_v58 = vmul.f32 %v4517_v31, %v7745_v18  ;;  %v3728_v52 = vmul.f32 %v4517_v31, %v7746_v10  ;;  %v3437_v5 = vpop.xlane.xlu0 %3436  ;;  %v7344_v15 = vadd.f32 %v4726_v1, %v2744_v33  ;;  %v4728_v33 = vld [vmem:[%s5175_s20 + $0x3c8] sm:$0xff]  ;;  %v4729_v1 = vld [vmem:[%s5175_s20 + $0x3d8] sm:$0xff] }
 0x468   : > { %v3583_v24 = vadd.f32 1e-12, %v3437_v5  ;;  %v3543_v53 = vadd.f32 %v3358_v21, %v3357_v46  ;;  %v3360_v6 = vmul.f32 %v7327_v2, %v7327_v2  ;;  %v7350_v46 = vadd.f32 %v4727_v42, %v2748_v19 }
 0x469   : > { %3855 = vst [vmem:[%s6969_s10 + $0x130] sm:$0xff] %v3727_v58  ;;  %3856 = vst [vmem:[%s6969_s10 + $0x138] sm:$0xff] %v3728_v52  ;;  %v3034_v35 = vpop.f32.mrb[248].mxu1  ;;  %v3440_v61 = vpop.xlane.xlu1 %3439  ;;  %v2754_v5 = vadd.f32 %v7230_v9, %v6219_v63  ;;  %v7749_v9 = vld [vmem:[#allocation22_spill] sm:$0xff] }
 0x46a   : > { %4522 = vrsqrt.f32 %v3583_v24  ;;  %v3035_v47 = vadd.f32 %v3034_v35, %v6237_v48  ;;  %v3584_v55 = vadd.f32 1e-12, %v3440_v61  ;;  %v3036_v44 = vpop.f32.mrb[249].mxu1  ;;  %3544 = vadd.xlane.f32.xlu0 %v3543_v53  ;;  %v3546_v31 = vadd.f32 %v3360_v6, %v3359_v28  ;;  %v7747_v24 = vld [vmem:[#allocation21_spill] sm:$0xff]  ;;  %v7748_v28 = vld [vmem:[#allocation23_spill] sm:$0xff] }
 0x46b   : > { %v3037_v21 = vpop.f32.mrb[250].mxu1  ;;  %v3361_v61 = vmul.f32 %v7344_v15, %v7344_v15  ;;  %v7750_v44 = vld [vmem:[#allocation24_spill] sm:$0xff] }
 0x46c   : > { %v4519_v18 = vpop.eup %4518  ;;  %v7353_v58 = vadd.f32 %v4728_v33, %v3035_v47  ;;  %4524 = vrsqrt.f32 %v3584_v55  ;;  %v3038_v10 = vadd.f32 %v3037_v21, %v6237_v48  ;;  %v3039_v52 = vpop.f32.mrb[251].mxu1  ;;  %3547 = vadd.xlane.f32.xlu1 %v3546_v31  ;;  %v3363_v21 = vmul.f32 %v7350_v46, %v7350_v46 }
 0x46d   : > { %v3729_v53 = vmul.f32 %v4519_v18, %v7747_v24  ;;  %v3730_v19 = vmul.f32 %v4519_v18, %v7748_v28  ;;  %v2758_v18 = vadd.f32 %v7237_v0, %v6219_v63  ;;  %v4730_v24 = vld [vmem:[%s5175_s20 + $0x3e0] sm:$0xff] }
 0x46e   : > { %v4521_v6 = vpop.eup %4520  ;;  %v7361_v35 = vadd.f32 %v4729_v1, %v3038_v10  ;;  %v3362_v47 = vmul.f32 %v7353_v58, %v7353_v58 }
 0x46f   : > { %3857 = vst [vmem:[%s6969_s10 + $0x140] sm:$0xff] %v3729_v53  ;;  %3858 = vst [vmem:[%s6969_s10 + $0x148] sm:$0xff] %v3730_v19  ;;  %v3731_v55 = vmul.f32 %v4521_v6, %v7749_v9  ;;  %v3732_v31 = vmul.f32 %v4521_v6, %v7750_v44  ;;  %v3443_v42 = vpop.xlane.xlu0 %3442  ;;  %v7378_v53 = vadd.f32 %v4730_v24, %v2754_v5  ;;  %v4732_v5 = vld [vmem:[%s5175_s20 + $0x3e8] sm:$0xff] }
 0x470   : > { %v3585_v33 = vadd.f32 1e-12, %v3443_v42  ;;  %v3549_v10 = vadd.f32 %v3362_v47, %v3361_v61  ;;  %v3364_v52 = vmul.f32 %v7361_v35, %v7361_v35  ;;  %v4731_v47 = vld [vmem:[%s5175_s20 + $0x3f0] sm:$0xff] }
 0x471   : > { %3859 = vst [vmem:[%s6969_s10 + $0x150] sm:$0xff] %v3731_v55  ;;  %3860 = vst [vmem:[%s6969_s10 + $0x158] sm:$0xff] %v3732_v31  ;;  %v3042_v28 = vpop.f32.mrb[252].mxu1  ;;  %v3446_v19 = vpop.xlane.xlu1 %3445  ;;  %v7384_v44 = vadd.f32 %v4731_v47, %v2758_v18  ;;  %v3365_v18 = vmul.f32 %v7378_v53, %v7378_v53 }
 0x472   : > { %4526 = vrsqrt.f32 %v3585_v33  ;;  %v3043_v6 = vadd.f32 %v3042_v28, %v6237_v48  ;;  %v3586_v1 = vadd.f32 1e-12, %v3446_v19  ;;  %v3044_v9 = vpop.f32.mrb[253].mxu1  ;;  %3550 = vadd.xlane.f32.xlu0 %v3549_v10  ;;  %v3552_v63 = vadd.f32 %v3364_v52, %v3363_v21  ;;  %v7751_v33 = vld [vmem:[#allocation25_spill] sm:$0xff]  ;;  %v7752_v28 = vld [vmem:[#allocation27_spill] sm:$0xff] }
 0x473   : > { %v3045_v0 = vpop.f32.mrb[254].mxu1  ;;  %v4733_v52 = vld [vmem:[%s5175_s20 + $0x3f8] sm:$0xff]  ;;  %v7754_v9 = vld [vmem:[#allocation28_spill] sm:$0xff]  ;;  %s3969_s20 = sshll.u32 %s6969_s10, 4  ;;  %s7570_s20 = int_to_ptr.vmem [resolvable:$true] %s3969_s20 }
 0x474   : > { %v4523_v61 = vpop.eup %4522  ;;  %v7387_v55 = vadd.f32 %v4732_v5, %v3043_v6  ;;  %4528 = vrsqrt.f32 %v3586_v1  ;;  %v3046_v31 = vadd.f32 %v3045_v0, %v6237_v48  ;;  %v3047_v42 = vpop.f32.mrb[255].mxu1  ;;  %3553 = vadd.xlane.f32.xlu1 %v3552_v63  ;;  %v7753_v48 = vld [vmem:[#allocation26_spill] sm:$0xff]  ;;  %v3367_v5 = vmul.f32 %v7384_v44, %v7384_v44  ;;  %s4848_s21 = scalar_lea.vmem %s7570_s20, 16384  ;;  %p4855_p7 = scmp.lt.s32.totalorder %s7570_s20, %s4853_s18 }
 0x475   : > { %v3733_v24 = vmul.f32 %v4523_v61, %v7751_v33  ;;  %v3734_v21 = vmul.f32 %v4523_v61, %v7752_v28  ;;  %p4849_p4 = scmp.ne.s32.totalorder %s7570_s20, %s4848_s21  ;;  %p4856_p9 = scmp.lt.s32.totalorder %s4854_s16, %s4848_s21 }
 0x476   : > { %v4525_v10 = vpop.eup %4524  ;;  %v7393_v19 = vadd.f32 %v4733_v52, %v3046_v31  ;;  %v3366_v6 = vmul.f32 %v7387_v55, %v7387_v55  ;;  %v7756_v52 = vld [vmem:[#allocation31_spill] sm:$0xff] }
 0x477   : > { %3861 = vst [vmem:[%s6969_s10 + $0x160] sm:$0xff] %v3733_v24  ;;  %3862 = vst [vmem:[%s6969_s10 + $0x168] sm:$0xff] %v3734_v21  ;;  %v3735_v1 = vmul.f32 %v4525_v10, %v7753_v48  ;;  %v3736_v63 = vmul.f32 %v4525_v10, %v7754_v9  ;;  %v3449_v0 = vpop.xlane.xlu0 %3448  ;;  %v7755_v21 = vld [vmem:[#allocation29_spill] sm:$0xff]  ;;  %v7757_v48 = vld [vmem:[#allocation30_spill] sm:$0xff]  ;;  %p4850_p8 = pnand %p4849_p4, %p5121_p6  ;;  %p4857_p12 = por %p4856_p9, %p4855_p7 }
 0x478   : > { %v3587_v47 = vadd.f32 1e-12, %v3449_v0  ;;  %v3555_v61 = vadd.f32 %v3366_v6, %v3365_v18  ;;  %v3368_v31 = vmul.f32 %v7393_v19, %v7393_v19  ;;  %v7758_v9 = vld [vmem:[#allocation32_spill] sm:$0xff] }
 0x479   : > { %3863 = vst [vmem:[%s6969_s10 + $0x170] sm:$0xff] %v3735_v1  ;;  %3864 = vst [vmem:[%s6969_s10 + $0x178] sm:$0xff] %v3736_v63  ;;  %v3452_v42 = vpop.xlane.xlu1 %3451  ;;  %p4851_p3 = pneg %p4850_p8 }
 0x47a   : > { %4530 = vrsqrt.f32 %v3587_v47  ;;  %v3588_v33 = vadd.f32 1e-12, %v3452_v42  ;;  %3556 = vadd.xlane.f32.xlu0 %v3555_v61  ;;  %v3558_v24 = vadd.f32 %v3368_v31, %v3367_v5  ;;  %v7759_v42 = vld [vmem:[#allocation33_spill] sm:$0xff] }
 0x47b   : > { %p4858_p0 = pnand %p4857_p12, %p4851_p3 }
 0x47c   : > { %v4527_v28 = vpop.eup %4526  ;;  %4532 = vrsqrt.f32 %v3588_v33  ;;  %3559 = vadd.xlane.f32.xlu1 %v3558_v24  ;;  %v7760_v24 = vld [vmem:[#allocation35_spill] sm:$0xff] }
 0x47d   : > { %v3737_v10 = vmul.f32 %v4527_v28, %v7755_v21  ;;  %v3738_v18 = vmul.f32 %v4527_v28, %v7756_v52 }
 0x47e   : > { %v4529_v6 = vpop.eup %4528 }
 0x47f   : > { %3865 = vst [vmem:[%s6969_s10 + $0x180] sm:$0xff] %v3737_v10  ;;  %3866 = vst [vmem:[%s6969_s10 + $0x188] sm:$0xff] %v3738_v18  ;;  %v3739_v1 = vmul.f32 %v4529_v6, %v7757_v48  ;;  %v3740_v63 = vmul.f32 %v4529_v6, %v7758_v9  ;;  %v3455_v0 = vpop.xlane.xlu0 %3454  ;;  %v7761_v10 = vld [vmem:[#allocation34_spill] sm:$0xff]  ;;  %v7762_v18 = vld [vmem:[#allocation36_spill] sm:$0xff] }
 0x480   : > { %v3589_v47 = vadd.f32 1e-12, %v3455_v0 }
 0x481   : > { %3867 = vst [vmem:[%s6969_s10 + $0x190] sm:$0xff] %v3739_v1  ;;  %3868 = vst [vmem:[%s6969_s10 + $0x198] sm:$0xff] %v3740_v63  ;;  %v3458_v61 = vpop.xlane.xlu1 %3457 }
 0x482   : > { %4534 = vrsqrt.f32 %v3589_v47  ;;  %v3590_v5 = vadd.f32 1e-12, %v3458_v61  ;;  %v7763_v47 = vld [vmem:[#allocation37_spill] sm:$0xff] }
 0x484   : > { %v4531_v31 = vpop.eup %4530  ;;  %4536 = vrsqrt.f32 %v3590_v5  ;;  %v7764_v5 = vld [vmem:[#allocation39_spill] sm:$0xff] }
 0x485   : > { %v3741_v33 = vmul.f32 %v4531_v31, %v7759_v42  ;;  %v3742_v28 = vmul.f32 %v4531_v31, %v7760_v24 }
 0x486   : > { %v4533_v21 = vpop.eup %4532 }
 0x487   : > { %3869 = vst [vmem:[%s6969_s10 + $0x1a0] sm:$0xff] %v3741_v33  ;;  %3870 = vst [vmem:[%s6969_s10 + $0x1a8] sm:$0xff] %v3742_v28  ;;  %v3743_v52 = vmul.f32 %v4533_v21, %v7761_v10  ;;  %v3744_v6 = vmul.f32 %v4533_v21, %v7762_v18  ;;  %v3461_v48 = vpop.xlane.xlu0 %3460  ;;  %v7765_v33 = vld [vmem:[#allocation38_spill] sm:$0xff]  ;;  %v7766_v28 = vld [vmem:[#allocation40_spill] sm:$0xff] }
 0x488   : > { %v3591_v1 = vadd.f32 1e-12, %v3461_v48 }
 0x489   : > { %3871 = vst [vmem:[%s6969_s10 + $0x1b0] sm:$0xff] %v3743_v52  ;;  %3872 = vst [vmem:[%s6969_s10 + $0x1b8] sm:$0xff] %v3744_v6  ;;  %v3464_v9 = vpop.xlane.xlu1 %3463 }
 0x48a   : > { %4538 = vrsqrt.f32 %v3591_v1  ;;  %v3592_v63 = vadd.f32 1e-12, %v3464_v9  ;;  %v7767_v1 = vld [vmem:[#allocation41_spill] sm:$0xff] }
 0x48c   : > { %v4535_v0 = vpop.eup %4534  ;;  %4540 = vrsqrt.f32 %v3592_v63  ;;  %v7768_v63 = vld [vmem:[#allocation43_spill] sm:$0xff] }
 0x48d   : > { %v3745_v61 = vmul.f32 %v4535_v0, %v7763_v47  ;;  %v3746_v31 = vmul.f32 %v4535_v0, %v7764_v5 }
 0x48e   : > { %v4537_v42 = vpop.eup %4536 }
 0x48f   : > { %3873 = vst [vmem:[%s6969_s10 + $0x1c0] sm:$0xff] %v3745_v61  ;;  %3874 = vst [vmem:[%s6969_s10 + $0x1c8] sm:$0xff] %v3746_v31  ;;  %v3747_v24 = vmul.f32 %v4537_v42, %v7765_v33  ;;  %v3748_v21 = vmul.f32 %v4537_v42, %v7766_v28  ;;  %v3467_v10 = vpop.xlane.xlu0 %3466  ;;  %v7769_v61 = vld [vmem:[#allocation42_spill] sm:$0xff]  ;;  %v7770_v31 = vld [vmem:[#allocation44_spill] sm:$0xff] }
 0x490   : > { %v3593_v52 = vadd.f32 1e-12, %v3467_v10 }
 0x491   : > { %3875 = vst [vmem:[%s6969_s10 + $0x1d0] sm:$0xff] %v3747_v24  ;;  %3876 = vst [vmem:[%s6969_s10 + $0x1d8] sm:$0xff] %v3748_v21  ;;  %v3470_v18 = vpop.xlane.xlu1 %3469 }
 0x492   : > { %4542 = vrsqrt.f32 %v3593_v52  ;;  %v3594_v6 = vadd.f32 1e-12, %v3470_v18  ;;  %v7771_v52 = vld [vmem:[#allocation45_spill] sm:$0xff] }
 0x494   : > { %v4539_v48 = vpop.eup %4538  ;;  %4544 = vrsqrt.f32 %v3594_v6  ;;  %v7772_v6 = vld [vmem:[#allocation47_spill] sm:$0xff] }
 0x495   : > { %v3749_v9 = vmul.f32 %v4539_v48, %v7767_v1  ;;  %v3750_v0 = vmul.f32 %v4539_v48, %v7768_v63 }
 0x496   : > { %v4541_v47 = vpop.eup %4540 }
 0x497   : > { %3877 = vst [vmem:[%s6969_s10 + $0x1e0] sm:$0xff] %v3749_v9  ;;  %3878 = vst [vmem:[%s6969_s10 + $0x1e8] sm:$0xff] %v3750_v0  ;;  %v3751_v5 = vmul.f32 %v4541_v47, %v7769_v61  ;;  %v3752_v42 = vmul.f32 %v4541_v47, %v7770_v31  ;;  %v3473_v33 = vpop.xlane.xlu0 %3472  ;;  %v7773_v9 = vld [vmem:[#allocation46_spill] sm:$0xff]  ;;  %v7774_v0 = vld [vmem:[#allocation48_spill] sm:$0xff] }
 0x498   : > { %v3595_v24 = vadd.f32 1e-12, %v3473_v33 }
 0x499   : > { %3879 = vst [vmem:[%s6969_s10 + $0x1f0] sm:$0xff] %v3751_v5  ;;  %3880 = vst [vmem:[%s6969_s10 + $0x1f8] sm:$0xff] %v3752_v42  ;;  %v3476_v28 = vpop.xlane.xlu1 %3475 }
 0x49a   : > { %4546 = vrsqrt.f32 %v3595_v24  ;;  %v3596_v21 = vadd.f32 1e-12, %v3476_v28  ;;  %v7775_v24 = vld [vmem:[#allocation49_spill] sm:$0xff] }
 0x49c   : > { %v4543_v10 = vpop.eup %4542  ;;  %4548 = vrsqrt.f32 %v3596_v21  ;;  %v7776_v21 = vld [vmem:[#allocation51_spill] sm:$0xff] }
 0x49d   : > { %v3753_v18 = vmul.f32 %v4543_v10, %v7771_v52  ;;  %v3754_v48 = vmul.f32 %v4543_v10, %v7772_v6 }
 0x49e   : > { %v4545_v1 = vpop.eup %4544 }
 0x49f   : > { %3881 = vst [vmem:[%s6969_s10 + $0x200] sm:$0xff] %v3753_v18  ;;  %3882 = vst [vmem:[%s6969_s10 + $0x208] sm:$0xff] %v3754_v48  ;;  %v3755_v63 = vmul.f32 %v4545_v1, %v7773_v9  ;;  %v3756_v47 = vmul.f32 %v4545_v1, %v7774_v0  ;;  %v3479_v61 = vpop.xlane.xlu0 %3478  ;;  %v7777_v18 = vld [vmem:[#allocation50_spill] sm:$0xff]  ;;  %v7778_v48 = vld [vmem:[#allocation52_spill] sm:$0xff] }
 0x4a0   : > { %v3597_v5 = vadd.f32 1e-12, %v3479_v61 }
 0x4a1   : > { %3883 = vst [vmem:[%s6969_s10 + $0x210] sm:$0xff] %v3755_v63  ;;  %3884 = vst [vmem:[%s6969_s10 + $0x218] sm:$0xff] %v3756_v47  ;;  %v3482_v31 = vpop.xlane.xlu1 %3481 }
 0x4a2   : > { %4550 = vrsqrt.f32 %v3597_v5  ;;  %v3598_v42 = vadd.f32 1e-12, %v3482_v31  ;;  %v7779_v5 = vld [vmem:[#allocation53_spill] sm:$0xff] }
 0x4a4   : > { %v4547_v33 = vpop.eup %4546  ;;  %4552 = vrsqrt.f32 %v3598_v42  ;;  %v7780_v42 = vld [vmem:[#allocation55_spill] sm:$0xff] }
 0x4a5   : > { %v3757_v28 = vmul.f32 %v4547_v33, %v7775_v24  ;;  %v3758_v10 = vmul.f32 %v4547_v33, %v7776_v21 }
 0x4a6   : > { %v4549_v52 = vpop.eup %4548 }
 0x4a7   : > { %3885 = vst [vmem:[%s6969_s10 + $0x220] sm:$0xff] %v3757_v28  ;;  %3886 = vst [vmem:[%s6969_s10 + $0x228] sm:$0xff] %v3758_v10  ;;  %v3759_v6 = vmul.f32 %v4549_v52, %v7777_v18  ;;  %v3760_v1 = vmul.f32 %v4549_v52, %v7778_v48  ;;  %v3485_v9 = vpop.xlane.xlu0 %3484  ;;  %v7781_v28 = vld [vmem:[#allocation54_spill] sm:$0xff]  ;;  %v7782_v10 = vld [vmem:[#allocation56_spill] sm:$0xff] }
 0x4a8   : > { %v3599_v63 = vadd.f32 1e-12, %v3485_v9 }
 0x4a9   : > { %3887 = vst [vmem:[%s6969_s10 + $0x230] sm:$0xff] %v3759_v6  ;;  %3888 = vst [vmem:[%s6969_s10 + $0x238] sm:$0xff] %v3760_v1  ;;  %v3488_v0 = vpop.xlane.xlu1 %3487 }
 0x4aa   : > { %4554 = vrsqrt.f32 %v3599_v63  ;;  %v3600_v47 = vadd.f32 1e-12, %v3488_v0  ;;  %v7783_v63 = vld [vmem:[#allocation57_spill] sm:$0xff] }
 0x4ac   : > { %v4551_v61 = vpop.eup %4550  ;;  %4556 = vrsqrt.f32 %v3600_v47  ;;  %v7784_v47 = vld [vmem:[#allocation59_spill] sm:$0xff] }
 0x4ad   : > { %v3761_v31 = vmul.f32 %v4551_v61, %v7779_v5  ;;  %v3762_v33 = vmul.f32 %v4551_v61, %v7780_v42 }
 0x4ae   : > { %v4553_v24 = vpop.eup %4552 }
 0x4af   : > { %3889 = vst [vmem:[%s6969_s10 + $0x240] sm:$0xff] %v3761_v31  ;;  %3890 = vst [vmem:[%s6969_s10 + $0x248] sm:$0xff] %v3762_v33  ;;  %v3763_v21 = vmul.f32 %v4553_v24, %v7781_v28  ;;  %v3764_v52 = vmul.f32 %v4553_v24, %v7782_v10  ;;  %v3491_v18 = vpop.xlane.xlu0 %3490  ;;  %v7785_v31 = vld [vmem:[#allocation58_spill] sm:$0xff]  ;;  %v7786_v33 = vld [vmem:[#allocation60_spill] sm:$0xff] }
 0x4b0   : > { %v3601_v6 = vadd.f32 1e-12, %v3491_v18 }
 0x4b1   : > { %3891 = vst [vmem:[%s6969_s10 + $0x250] sm:$0xff] %v3763_v21  ;;  %3892 = vst [vmem:[%s6969_s10 + $0x258] sm:$0xff] %v3764_v52  ;;  %v3494_v48 = vpop.xlane.xlu1 %3493 }
 0x4b2   : > { %4558 = vrsqrt.f32 %v3601_v6  ;;  %v3602_v1 = vadd.f32 1e-12, %v3494_v48 }
 0x4b4   : > { %v4555_v9 = vpop.eup %4554  ;;  %4560 = vrsqrt.f32 %v3602_v1 }
 0x4b5   : > { %v3765_v0 = vmul.f32 %v4555_v9, %v7783_v63  ;;  %v3766_v61 = vmul.f32 %v4555_v9, %v7784_v47 }
 0x4b6   : > { %v4557_v5 = vpop.eup %4556 }
 0x4b7   : > { %3893 = vst [vmem:[%s6969_s10 + $0x260] sm:$0xff] %v3765_v0  ;;  %3894 = vst [vmem:[%s6969_s10 + $0x268] sm:$0xff] %v3766_v61  ;;  %v3767_v42 = vmul.f32 %v4557_v5, %v7785_v31  ;;  %v3768_v24 = vmul.f32 %v4557_v5, %v7786_v33  ;;  %v3497_v28 = vpop.xlane.xlu0 %3496 }
 0x4b8   : > { %v3603_v21 = vadd.f32 1e-12, %v3497_v28 }
 0x4b9   : > { %3895 = vst [vmem:[%s6969_s10 + $0x270] sm:$0xff] %v3767_v42  ;;  %3896 = vst [vmem:[%s6969_s10 + $0x278] sm:$0xff] %v3768_v24  ;;  %v7787_v42 = vld [vmem:[#allocation61_spill] sm:$0xff]  ;;  %v7788_v24 = vld [vmem:[#allocation62_spill] sm:$0xff] }
 0x4ba   : > { %4562 = vrsqrt.f32 %v3603_v21  ;;  %v3500_v10 = vpop.xlane.xlu1 %3499 }
 0x4bb   : > { %v3604_v18 = vadd.f32 1e-12, %v3500_v10 }
 0x4bc   : > { %v4559_v52 = vpop.eup %4558 }
 0x4bd   : > { %v3769_v6 = vmul.f32 %v4559_v52, %v6941_v54  ;;  %v3770_v48 = vmul.f32 %v4559_v52, %v6953_v20  ;;  %4564 = vrsqrt.f32 %v3604_v18 }
 0x4be   : > { %v4561_v1 = vpop.eup %4560 }
 0x4bf   : > { %3897 = vst [vmem:[%s6969_s10 + $0x280] sm:$0xff] %v3769_v6  ;;  %3898 = vst [vmem:[%s6969_s10 + $0x288] sm:$0xff] %v3770_v48  ;;  %v3771_v9 = vmul.f32 %v4561_v1, %v6949_v26  ;;  %v3772_v63 = vmul.f32 %v4561_v1, %v6961_v51  ;;  %v3503_v0 = vpop.xlane.xlu0 %3502 }
 0x4c0   : > { %v3605_v47 = vadd.f32 1e-12, %v3503_v0 }
 0x4c1   : > { %3899 = vst [vmem:[%s6969_s10 + $0x290] sm:$0xff] %v3771_v9  ;;  %3900 = vst [vmem:[%s6969_s10 + $0x298] sm:$0xff] %v3772_v63 }
 0x4c2   : > { %4566 = vrsqrt.f32 %v3605_v47  ;;  %v3506_v54 = vpop.xlane.xlu1 %3505 }
 0x4c3   : > { %v3606_v20 = vadd.f32 1e-12, %v3506_v54 }
 0x4c4   : > { %v4563_v61 = vpop.eup %4562 }
 0x4c5   : > { %v3773_v5 = vmul.f32 %v4563_v61, %v6981_v59  ;;  %v3774_v31 = vmul.f32 %v4563_v61, %v6996_v34  ;;  %4568 = vrsqrt.f32 %v3606_v20 }
 0x4c7   : > { %3901 = vst [vmem:[%s6969_s10 + $0x2a0] sm:$0xff] %v3773_v5  ;;  %3902 = vst [vmem:[%s6969_s10 + $0x2a8] sm:$0xff] %v3774_v31  ;;  %v4565_v26 = vpop.eup %4564  ;;  %v3509_v51 = vpop.xlane.xlu0 %3508 }
 0x4c8   : > { %v3775_v33 = vmul.f32 %v4565_v26, %v7787_v42  ;;  %v3776_v28 = vmul.f32 %v4565_v26, %v7788_v24  ;;  %v3607_v21 = vadd.f32 1e-12, %v3509_v51 }
 0x4ca   : > { %3903 = vst [vmem:[%s6969_s10 + $0x2b0] sm:$0xff] %v3775_v33  ;;  %3904 = vst [vmem:[%s6969_s10 + $0x2b8] sm:$0xff] %v3776_v28  ;;  %4570 = vrsqrt.f32 %v3607_v21  ;;  %v3512_v59 = vpop.xlane.xlu1 %3511 }
 0x4cb   : > { %v3608_v10 = vadd.f32 1e-12, %v3512_v59 }
 0x4cc   : > { %v4567_v34 = vpop.eup %4566 }
 0x4cd   : > { %v3777_v52 = vmul.f32 %v4567_v34, %v7032_v22  ;;  %v3778_v18 = vmul.f32 %v4567_v34, %v7038_v11  ;;  %4572 = vrsqrt.f32 %v3608_v10 }
 0x4cf   : > { %v4569_v6 = vpop.eup %4568  ;;  %3905 = vst [vmem:[%s6969_s10 + $0x2c0] sm:$0xff] %v3777_v52  ;;  %3906 = vst [vmem:[%s6969_s10 + $0x2c8] sm:$0xff] %v3778_v18 }
 0x4d0   : > { %v3515_v48 = vpop.xlane.xlu0 %3514  ;;  %v3779_v1 = vmul.f32 %v4569_v6, %v7041_v50  ;;  %v3780_v9 = vmul.f32 %v4569_v6, %v7057_v62 }
 0x4d1   : > { %v3609_v63 = vadd.f32 1e-12, %v3515_v48 }
 0x4d2   : > { %v3518_v0 = vpop.xlane.xlu1 %3517  ;;  %3907 = vst [vmem:[%s6969_s10 + $0x2d0] sm:$0xff] %v3779_v1  ;;  %3908 = vst [vmem:[%s6969_s10 + $0x2d8] sm:$0xff] %v3780_v9 }
 0x4d3   : > { %4574 = vrsqrt.f32 %v3609_v63  ;;  %v3610_v22 = vadd.f32 1e-12, %v3518_v0 }
 0x4d4   : > { %v4571_v11 = vpop.eup %4570 }
 0x4d5   : > { %4576 = vrsqrt.f32 %v3610_v22  ;;  %v3781_v47 = vmul.f32 %v4571_v11, %v7076_v40  ;;  %v3782_v54 = vmul.f32 %v4571_v11, %v7080_v49 }
 0x4d7   : > { %v4573_v61 = vpop.eup %4572  ;;  %3909 = vst [vmem:[%s6969_s10 + $0x2e0] sm:$0xff] %v3781_v47  ;;  %3910 = vst [vmem:[%s6969_s10 + $0x2e8] sm:$0xff] %v3782_v54 }
 0x4d8   : > { %v3521_v50 = vpop.xlane.xlu0 %3520  ;;  %v3783_v62 = vmul.f32 %v4573_v61, %v7085_v39  ;;  %v3784_v20 = vmul.f32 %v4573_v61, %v7099_v38 }
 0x4d9   : > { %v3611_v5 = vadd.f32 1e-12, %v3521_v50 }
 0x4da   : > { %v3524_v31 = vpop.xlane.xlu1 %3523  ;;  %3911 = vst [vmem:[%s6969_s10 + $0x2f0] sm:$0xff] %v3783_v62  ;;  %3912 = vst [vmem:[%s6969_s10 + $0x2f8] sm:$0xff] %v3784_v20 }
 0x4db   : > { %4578 = vrsqrt.f32 %v3611_v5  ;;  %v3612_v40 = vadd.f32 1e-12, %v3524_v31 }
 0x4dd   : > { %v4575_v26 = vpop.eup %4574  ;;  %4580 = vrsqrt.f32 %v3612_v40 }
 0x4de   : > { %v3785_v49 = vmul.f32 %v4575_v26, %v7118_v27  ;;  %v3786_v51 = vmul.f32 %v4575_v26, %v7122_v57 }
 0x4df   : > { %v4577_v42 = vpop.eup %4576 }
 0x4e0   : > { %3913 = vst [vmem:[%s6969_s10 + $0x300] sm:$0xff] %v3785_v49  ;;  %3914 = vst [vmem:[%s6969_s10 + $0x308] sm:$0xff] %v3786_v51  ;;  %v3787_v39 = vmul.f32 %v4577_v42, %v7125_v13  ;;  %v3788_v38 = vmul.f32 %v4577_v42, %v7135_v8  ;;  %v3527_v33 = vpop.xlane.xlu0 %3526 }
 0x4e1   : > { %v3613_v24 = vadd.f32 1e-12, %v3527_v33 }
 0x4e2   : > { %3915 = vst [vmem:[%s6969_s10 + $0x310] sm:$0xff] %v3787_v39  ;;  %3916 = vst [vmem:[%s6969_s10 + $0x318] sm:$0xff] %v3788_v38  ;;  %v3530_v28 = vpop.xlane.xlu1 %3529 }
 0x4e3   : > { %4582 = vrsqrt.f32 %v3613_v24  ;;  %v3614_v27 = vadd.f32 1e-12, %v3530_v28 }
 0x4e5   : > { %v4579_v21 = vpop.eup %4578  ;;  %4584 = vrsqrt.f32 %v3614_v27 }
 0x4e6   : > { %v3789_v57 = vmul.f32 %v4579_v21, %v7160_v4  ;;  %v3790_v59 = vmul.f32 %v4579_v21, %v7164_v36 }
 0x4e7   : > { %v4581_v10 = vpop.eup %4580  ;;  %v3533_v34 = vpop.xlane.xlu0 %3532 }
 0x4e8   : > { %3917 = vst [vmem:[%s6969_s10 + $0x320] sm:$0xff] %v3789_v57  ;;  %3918 = vst [vmem:[%s6969_s10 + $0x328] sm:$0xff] %v3790_v59  ;;  %v3791_v13 = vmul.f32 %v4581_v10, %v7167_v41  ;;  %v3792_v8 = vmul.f32 %v4581_v10, %v7177_v3  ;;  %v3615_v52 = vadd.f32 1e-12, %v3533_v34 }
 0x4ea   : > { %3919 = vst [vmem:[%s6969_s10 + $0x330] sm:$0xff] %v3791_v13  ;;  %3920 = vst [vmem:[%s6969_s10 + $0x338] sm:$0xff] %v3792_v8  ;;  %4586 = vrsqrt.f32 %v3615_v52  ;;  %v3536_v18 = vpop.xlane.xlu1 %3535 }
 0x4eb   : > { %v3616_v4 = vadd.f32 1e-12, %v3536_v18 }
 0x4ed   : > { %v4583_v36 = vpop.eup %4582  ;;  %4588 = vrsqrt.f32 %v3616_v4 }
 0x4ee   : > { %v3793_v6 = vmul.f32 %v4583_v36, %v7202_v43  ;;  %v3794_v48 = vmul.f32 %v4583_v36, %v7206_v7 }
 0x4ef   : > { %v3539_v1 = vpop.xlane.xlu0 %3538  ;;  %v4585_v41 = vpop.eup %4584 }
 0x4f0   : > { %3921 = vst [vmem:[%s6969_s10 + $0x340] sm:$0xff] %v3793_v6  ;;  %3922 = vst [vmem:[%s6969_s10 + $0x348] sm:$0xff] %v3794_v48  ;;  %v3617_v3 = vadd.f32 1e-12, %v3539_v1  ;;  %v3795_v9 = vmul.f32 %v4585_v41, %v7211_v17  ;;  %v3796_v63 = vmul.f32 %v4585_v41, %v7227_v45 }
 0x4f2   : > { %4590 = vrsqrt.f32 %v3617_v3  ;;  %v3542_v0 = vpop.xlane.xlu1 %3541  ;;  %3923 = vst [vmem:[%s6969_s10 + $0x350] sm:$0xff] %v3795_v9  ;;  %3924 = vst [vmem:[%s6969_s10 + $0x358] sm:$0xff] %v3796_v63 }
 0x4f3   : > { %v3618_v43 = vadd.f32 1e-12, %v3542_v0 }
 0x4f4   : > { %v4587_v7 = vpop.eup %4586 }
 0x4f5   : > { %4592 = vrsqrt.f32 %v3618_v43  ;;  %v3797_v22 = vmul.f32 %v4587_v7, %v7244_v56  ;;  %v3798_v11 = vmul.f32 %v4587_v7, %v7251_v29 }
 0x4f7   : > { %v3545_v47 = vpop.xlane.xlu0 %3544  ;;  %v4589_v54 = vpop.eup %4588  ;;  %3925 = vst [vmem:[%s6969_s10 + $0x360] sm:$0xff] %v3797_v22  ;;  %3926 = vst [vmem:[%s6969_s10 + $0x368] sm:$0xff] %v3798_v11 }
 0x4f8   : > { %v3619_v17 = vadd.f32 1e-12, %v3545_v47  ;;  %v3799_v45 = vmul.f32 %v4589_v54, %v7247_v60  ;;  %v3800_v61 = vmul.f32 %v4589_v54, %v7267_v32 }
 0x4f9   : > { %v3548_v50 = vpop.xlane.xlu1 %3547 }
 0x4fa   : > { %4594 = vrsqrt.f32 %v3619_v17  ;;  %v3620_v62 = vadd.f32 1e-12, %v3548_v50  ;;  %3927 = vst [vmem:[%s6969_s10 + $0x370] sm:$0xff] %v3799_v45  ;;  %3928 = vst [vmem:[%s6969_s10 + $0x378] sm:$0xff] %v3800_v61 }
 0x4fc   : > { %v4591_v56 = vpop.eup %4590  ;;  %4596 = vrsqrt.f32 %v3620_v62 }
 0x4fd   : > { %v3801_v29 = vmul.f32 %v4591_v56, %v7270_v23  ;;  %v3802_v20 = vmul.f32 %v4591_v56, %v7282_v30 }
 0x4ff   : > { %v4593_v5 = vpop.eup %4592  ;;  %3929 = vst [vmem:[%s6969_s10 + $0x380] sm:$0xff] %v3801_v29  ;;  %3930 = vst [vmem:[%s6969_s10 + $0x388] sm:$0xff] %v3802_v20  ;;  %v3551_v60 = vpop.xlane.xlu0 %3550 }
 0x500   : > { %v3803_v32 = vmul.f32 %v4593_v5, %v7286_v16  ;;  %v3804_v31 = vmul.f32 %v4593_v5, %v7295_v14  ;;  %v3621_v40 = vadd.f32 1e-12, %v3551_v60 }
 0x501   : > { %v3554_v26 = vpop.xlane.xlu1 %3553 }
 0x502   : > { %3931 = vst [vmem:[%s6969_s10 + $0x390] sm:$0xff] %v3803_v32  ;;  %3932 = vst [vmem:[%s6969_s10 + $0x398] sm:$0xff] %v3804_v31  ;;  %4598 = vrsqrt.f32 %v3621_v40  ;;  %v3622_v23 = vadd.f32 1e-12, %v3554_v26 }
 0x504   : > { %v4595_v49 = vpop.eup %4594  ;;  %4600 = vrsqrt.f32 %v3622_v23 }
 0x505   : > { %v3805_v30 = vmul.f32 %v4595_v49, %v7310_v37  ;;  %v3806_v51 = vmul.f32 %v4595_v49, %v7319_v12 }
 0x506   : > { %v4597_v42 = vpop.eup %4596 }
 0x507   : > { %3933 = vst [vmem:[%s6969_s10 + $0x3a0] sm:$0xff] %v3805_v30  ;;  %3934 = vst [vmem:[%s6969_s10 + $0x3a8] sm:$0xff] %v3806_v51  ;;  %v3807_v16 = vmul.f32 %v4597_v42, %v7316_v25  ;;  %v3808_v14 = vmul.f32 %v4597_v42, %v7327_v2  ;;  %v3557_v39 = vpop.xlane.xlu0 %3556 }
 0x508   : > { %v3623_v38 = vadd.f32 1e-12, %v3557_v39 }
 0x509   : > { %3935 = vst [vmem:[%s6969_s10 + $0x3b0] sm:$0xff] %v3807_v16  ;;  %3936 = vst [vmem:[%s6969_s10 + $0x3b8] sm:$0xff] %v3808_v14  ;;  %v3560_v37 = vpop.xlane.xlu1 %3559 }
 0x50a   : > { %4602 = vrsqrt.f32 %v3623_v38  ;;  %v3624_v12 = vadd.f32 1e-12, %v3560_v37 }
 0x50c   : > { %v4599_v33 = vpop.eup %4598  ;;  %4604 = vrsqrt.f32 %v3624_v12 }
 0x50d   : > { %v3809_v24 = vmul.f32 %v4599_v33, %v7344_v15  ;;  %v3810_v28 = vmul.f32 %v4599_v33, %v7353_v58 }
 0x50e   : > { %v4601_v25 = vpop.eup %4600 }
 0x50f   : > { %3937 = vst [vmem:[%s6969_s10 + $0x3c0] sm:$0xff] %v3809_v24  ;;  %3938 = vst [vmem:[%s6969_s10 + $0x3c8] sm:$0xff] %v3810_v28  ;;  %v3811_v2 = vmul.f32 %v4601_v25, %v7350_v46  ;;  %v3812_v27 = vmul.f32 %v4601_v25, %v7361_v35 }
 0x511   : > { %3939 = vst [vmem:[%s6969_s10 + $0x3d0] sm:$0xff] %v3811_v2  ;;  %3940 = vst [vmem:[%s6969_s10 + $0x3d8] sm:$0xff] %v3812_v27 }
 0x514   : > { %v4603_v15 = vpop.eup %4602 }
 0x515   : > { %v3813_v58 = vmul.f32 %v4603_v15, %v7378_v53  ;;  %v3814_v21 = vmul.f32 %v4603_v15, %v7387_v55 }
 0x516   : > { %v4605_v57 = vpop.eup %4604 }
 0x517   : > { %3941 = vst [vmem:[%s6969_s10 + $0x3e0] sm:$0xff] %v3813_v58  ;;  %3942 = vst [vmem:[%s6969_s10 + $0x3e8] sm:$0xff] %v3814_v21  ;;  %v3815_v46 = vmul.f32 %v4605_v57, %v7384_v44  ;;  %v3816_v35 = vmul.f32 %v4605_v57, %v7393_v19 }
 0x519   : > { %3943 = vst [vmem:[%s6969_s10 + $0x3f0] sm:$0xff] %v3815_v46  ;;  %3944 = vst [vmem:[%s6969_s10 + $0x3f8] sm:$0xff] %v3816_v35 }
 0x51a   : > { %4861 = shalt.err (!%p4858_p0)
}
 0x51b   : > { %s4862_s22 = scalar_lea.hbm %s7568_s19, 16384  ;;  %s4866_s25 = scalar_lea.hbm %s7627_s8, 65536 }
 0x51c   : > { %p4863_p5 = scmp.ne.s32.totalorder %s7568_s19, %s4862_s22  ;;  %p4867_p13 = scmp.lt.u32.totalorder %s7568_s19, %s7627_s8 }
 0x51d   : > { %p4868_p2 = scmp.lt.u32.totalorder %s4866_s25, %s4862_s22  ;;  %p4870_p4 = scmp.lt.u32.totalorder %s4862_s22, %s7568_s19 }
 0x51e   : > { %p4864_p10 = pnand %p4863_p5, %p5121_p6 }
 0x51f   : > { %p4869_p1 = por %p4868_p2, %p4867_p13 }
 0x520   : > { %p4865_p11 = pneg %p4864_p10 }
 0x521   : > { %p4871_p8 = por %p4870_p4, %p4869_p1 }
 0x523   : > { %p4872_p3 = pnand %p4871_p8, %p4865_p11 }
 0x525   : > { %4875 = shalt.err (!%p4872_p3)
}
 0x526   : > { %s4932_s21 = smov 256   ;;  %s4933_s11 = smov 16  }
 0x527   : > { %4250 = dma.vmem_to_hbm [thread:$0]  (%p5121_p6), %s7570_s20, 16384, %s7568_s19, %s3951_s9, %s4932_s21, %s4932_s21, %s4933_s11  }
 0x528 PF: > { %p4277_p7 = scmp.ge.s32.totalorder %s4922_s30, 2  ;;  %s3992_s18 = sand.u32 1, %s4910_s27  }
 0x529   : > { %p7789_p9 = scmp.ne.s32.totalorder %s7680_s12, 0  ;;  %s3993_s16 = scalar_lea.sflag [#allocation4], %s3992_s18 }
 0x52b   : > { %p4267_p12 = pnand %p4277_p7, %p7789_p9 }
 0x52d   : > { %4905 = dma.done.wait (!%p4267_p12), %s3993_s16, 16384  }
 0x52e   : > { %4907 = vsyncadd (!%p4267_p12), %s3993_s16, 4294950912  ;;  %p24_p0 = scmp.ge.s32.totalorder %s5107_s26, 6   ;;  %s7790_s27 = smov %s4914_s28 }
 0x52f   : > { %s7791_s28 = smov %s4918_s29  ;;  %s7792_s29 = smov %s5117_s23 }
 0x530   : > { %s7793_s30 = smov %s5107_s26  ;;  %26 = sbr.rel (!%p24_p0) target bundleno = 7 (0x7), region = 117 }
 0x537   :  { %3998 = vsyncpa [#allocation3], 1 }
 0x538   :  { %4000 = vsyncpa [#allocation3 + $0x1], 1 }
 0x539   :  { %4001 = vsyncpa [#allocation6], 1 }
 0x53a   :  { %4002 = vsyncpa [#allocation9], 1 }
 0x53b   :  { %4003 = vsyncpa [#allocation4], 1 }
 0x53c   :  { %4005 = vsyncpa [#allocation4 + $0x1], 1 }

</bundles_post_ra>
